<compile_context>
chip_gen: v7x
topology: tpu7x:2x2x1
jax: 0.10.0
libtpu: 0.0.40
codegen_flags: <defaults>
</compile_context>

<pallas_src>
import math

import jax
import jax.numpy as jnp
from jax import lax
from jax.experimental import pallas as pl
from jax.experimental.pallas import tpu as pltpu


# The 16 distinct (parity, macro-offset) windows a 3x3/pad=1 conv needs when the
# 2Hx2W image is stored as 4 parity planes of shape (H, W):
#   (di, oi): input row parity and macro-row offset (buffer row start = 1 + oi).
_ROW_OFFS = ((0, 0), (0, 1), (1, -1), (1, 0))
_WINDOWS = tuple((di, oi, dj, oj) for (di, oi) in _ROW_OFFS for (dj, oj) in _ROW_OFFS)


# ----------------------------- in-kernel math ------------------------------ #

def _gelu(x):
    # tanh-formulation GELU: tanh lowers to the EUP (its own issue slot) — much
    # cheaper than a rational erf approximation on the VALU.  Kept in f32.
    c = 0.7978845608028654  # sqrt(2/pi)
    return 0.5 * x * (1.0 + jnp.tanh(c * (x + 0.044715 * (x * x * x))))


# ------------------------------- Pallas kernel ------------------------------ #

def _fused_up_conv_kernel(x_ref, enc_ref, w_up_ref, up_s_ref, up_t_ref,
                          w_win_ref, c_s_ref, c_t_ref, o_ref, cat_buf):
    # Per grid step (one batch element):
    #   x_ref    : (1, H*W, 2*dim)          bf16  low-res tokens x channels
    #   enc_ref  : (1, 4, H, W, dim)        bf16  encoder features, parity split:
    #                                             [di*2+dj, i, j, c] = enc[2i+di, 2j+dj, c]
    #   w_up_ref : (2*dim, 4*dim)           bf16  deconv weight, cols = (di, dj, oc)
    #   up_s/t   : (1, 4*dim)               f32   folded conv-bias + BN (eval mode)
    #   w_win_ref: (16, 2*dim, 4*dim)       bf16  per-window weights; output lanes are
    #                                             (pe, qe, oc) with zeros where a class
    #                                             does not use that window
    #   c_s/t    : (1, 4*dim)               f32   folded conv-bias + BN, tiled over class
    #   o_ref    : (1, H*W, 4*dim)          bf16  output, lanes ordered (pe, qe, oc)
    #   cat_buf  : (4, H+2, W+2, 2*dim)     bf16  zero-halo parity staging (VMEM scratch)
    _, _, H, W, dim = enc_ref.shape
    c2 = 2 * dim
    HW = H * W

    # ---- UpBlock: ConvTranspose2d(k=2, s=2) + BN + GELU — one bf16 MXU matmul ----
    y = jnp.dot(x_ref[0], w_up_ref[...], preferred_element_type=jnp.float32)  # (HW, 4*dim)
    y = _gelu(y * up_s_ref[...] + up_t_ref[...]).astype(jnp.bfloat16)

    # ---- stage cat([enc, up]) into the zero-halo, parity-split bf16 buffer.  This
    #      realizes the pixel-shuffle, torch.cat and pad=1 with no HBM round trips. ----
    z_row = jnp.zeros((1, W + 2, c2), jnp.bfloat16)       # hoisted: no per-iter broadcast
    z_col = jnp.zeros((H + 2, 1, c2), jnp.bfloat16)
    for dd in range(4):                                   # dd = di*2 + dj
        di, dj = dd // 2, dd % 2
        r0 = H + 1 if di == 0 else 0                      # only halo row this plane reads
        c0 = W + 1 if dj == 0 else 0                      # only halo col this plane reads
        cat_buf[dd, r0:r0 + 1, :, :] = z_row
        cat_buf[dd, :, c0:c0 + 1, :] = z_col
        up_dd = y[:, dd * dim:(dd + 1) * dim].reshape(H, W, dim)
        cat_buf[dd, 1:H + 1, 1:W + 1, :] = jnp.concatenate(
            [enc_ref[0, dd], up_dd], axis=-1)             # one full-channel store

    # ---- ConvBlock: 3x3 conv (pad=1) over cat channels + BN + GELU.
    #      16 window dots; K = 2*dim merges the concat halves, N = 4*dim carries the
    #      4 output-parity classes -> accumulator is already lane-dense (HW, 128). ----
    acc = jnp.zeros((HW, 4 * dim), jnp.float32)
    for widx, (di, oi, dj, oj) in enumerate(_WINDOWS):
        dd = di * 2 + dj
        ii0, jj0 = 1 + oi, 1 + oj
        win = cat_buf[dd, ii0:ii0 + H, jj0:jj0 + W, :].reshape(HW, c2)
        acc = acc + jnp.dot(win, w_win_ref[widx], preferred_element_type=jnp.float32)

    out = _gelu(acc * c_s_ref[...] + c_t_ref[...])        # f32 epilogue, lane-dense
    o_ref[0] = out.astype(o_ref.dtype)                    # bf16 writeback


# ----------------------------- parameters & glue ---------------------------- #

def _fold_bn(conv_bias, gamma, beta, mean, var, eps=1e-5):
    scale = gamma / jnp.sqrt(var + eps)
    shift = (conv_bias - mean) * scale + beta
    return scale.astype(jnp.float32), shift.astype(jnp.float32)


def _build_window_weights(conv_w, dim):
    """conv_w (dim, 2*dim, 3, 3) -> (16, 2*dim, 4*dim) bf16 per-window weights.

    For window (di, oi, dj, oj) and output class (pe, qe), the tap it supplies is
    (dh, dw) = (2*oi + di - pe + 1, 2*oj + dj - qe + 1) if both lie in [0, 3)."""
    c2 = 2 * dim
    w_taps = conv_w.transpose(2, 3, 1, 0)                 # (3, 3, Cin=2*dim, Cout=dim)
    zero_blk = jnp.zeros((c2, dim), conv_w.dtype)
    blocks = []
    for (di, oi, dj, oj) in _WINDOWS:
        cls_blocks = []
        for pe in range(2):
            dh = 2 * oi + di - pe + 1
            for qe in range(2):
                dw = 2 * oj + dj - qe + 1
                if 0 <= dh <= 2 and 0 <= dw <= 2:
                    cls_blocks.append(w_taps[dh, dw])      # (2*dim, dim)
                else:
                    cls_blocks.append(zero_blk)
        blocks.append(jnp.concatenate(cls_blocks, axis=-1))   # (2*dim, 4*dim)
    return jnp.stack(blocks).astype(jnp.bfloat16)              # (16, 2*dim, 4*dim)


def init_params(key, dim):
    """Deterministic synthetic parameters, shapes exactly as in the PyTorch module."""
    ks = jax.random.split(key, 12)
    c2 = 2 * dim
    return {
        # UpBlock: ConvTranspose2d(in=2*dim, out=dim, k=2, s=2) + BatchNorm2d(dim)
        "up_w": jax.random.normal(ks[0], (c2, dim, 2, 2), jnp.float32) * 0.05,
        "up_b": jax.random.normal(ks[1], (dim,), jnp.float32) * 0.05,
        "up_gamma": 1.0 + 0.1 * jax.random.normal(ks[2], (dim,), jnp.float32),
        "up_beta": 0.1 * jax.random.normal(ks[3], (dim,), jnp.float32),
        "up_mean": 0.1 * jax.random.normal(ks[4], (dim,), jnp.float32),
        "up_var": 0.5 + jax.random.uniform(ks[5], (dim,), jnp.float32),
        # ConvBlock: Conv2d(in=2*dim, out=dim, k=3, pad=1) + BatchNorm2d(dim)
        "conv_w": jax.random.normal(ks[6], (dim, c2, 3, 3), jnp.float32) * 0.05,
        "conv_b": jax.random.normal(ks[7], (dim,), jnp.float32) * 0.05,
        "conv_gamma": 1.0 + 0.1 * jax.random.normal(ks[8], (dim,), jnp.float32),
        "conv_beta": 0.1 * jax.random.normal(ks[9], (dim,), jnp.float32),
        "conv_mean": 0.1 * jax.random.normal(ks[10], (dim,), jnp.float32),
        "conv_var": 0.5 + jax.random.uniform(ks[11], (dim,), jnp.float32),
    }


def basic_layer_up_forward(x_in, encoder_output, params):
    """x_in: (B, L, 2*dim), encoder_output: (B, 4*L, dim)  ->  (B, 4*L, dim) bf16."""
    b, l1, c2 = x_in.shape
    dim = c2 // 2
    h = int(round(math.sqrt(l1)))
    w = h
    assert h * w == l1, "BasicLayerUp assumes a square token grid"
    assert encoder_output.shape == (b, 4 * l1, dim), encoder_output.shape
    hw = h * w

    # --- fold eval-mode BatchNorm (+ conv bias) into per-channel scale/shift ---
    s_up, t_up = _fold_bn(params["up_b"], params["up_gamma"], params["up_beta"],
                          params["up_mean"], params["up_var"])
    s_c, t_c = _fold_bn(params["conv_b"], params["conv_gamma"], params["conv_beta"],
                        params["conv_mean"], params["conv_var"])

    # ConvTranspose2d weight (Cin, Cout, 2, 2) -> (Cin, (di, dj, oc)); bf16 for the MXU.
    w_up = params["up_w"].transpose(0, 2, 3, 1).reshape(c2, 4 * dim).astype(jnp.bfloat16)
    up_scale = jnp.tile(s_up, 4)[None, :]
    up_shift = jnp.tile(t_up, 4)[None, :]

    # Conv2d weights packed per window with the 4 output-parity classes on lanes.
    w_win = _build_window_weights(params["conv_w"], dim)          # (16, 2*dim, 4*dim)
    c_scale = jnp.tile(s_c, 4)[None, :]
    c_shift = jnp.tile(t_c, 4)[None, :]

    # Parity-split encoder features: enc[2i+di, 2j+dj, c] -> [di*2+dj, i, j, c].
    enc_q = (encoder_output.reshape(b, h, 2, w, 2, dim)
             .transpose(0, 2, 4, 1, 3, 5)
             .reshape(b, 4, h, w, dim)
             .astype(jnp.bfloat16))
    x_bf = x_in.astype(jnp.bfloat16)                               # (B, H*W, 2*dim)

    out_q = pl.pallas_call(
        _fused_up_conv_kernel,
        out_shape=jax.ShapeDtypeStruct((b, hw, 4 * dim), jnp.bfloat16),
        grid=(b,),
        in_specs=[
            pl.BlockSpec((1, hw, c2), lambda i: (i, 0, 0)),
            pl.BlockSpec((1, 4, h, w, dim), lambda i: (i, 0, 0, 0, 0)),
            pl.BlockSpec((c2, 4 * dim), lambda i: (0, 0)),
            pl.BlockSpec((1, 4 * dim), lambda i: (0, 0)),
            pl.BlockSpec((1, 4 * dim), lambda i: (0, 0)),
            pl.BlockSpec((16, c2, 4 * dim), lambda i: (0, 0, 0)),
            pl.BlockSpec((1, 4 * dim), lambda i: (0, 0)),
            pl.BlockSpec((1, 4 * dim), lambda i: (0, 0)),
        ],
        out_specs=pl.BlockSpec((1, hw, 4 * dim), lambda i: (i, 0, 0)),
        scratch_shapes=[pltpu.VMEM((4, h + 2, w + 2, c2), jnp.bfloat16)],
        compiler_params=pltpu.CompilerParams(
            dimension_semantics=("parallel",),
            vmem_limit_bytes=32 * 1024 * 1024),
    )(x_bf, enc_q, w_up, up_scale, up_shift, w_win, c_scale, c_shift)

    # Un-shuffle the 4 parity classes back to row-major tokens: one cheap bf16 XLA pass.
    out = (out_q.reshape(b, h, w, 2, 2, dim)
           .transpose(0, 1, 3, 2, 4, 5)
           .reshape(b, 4 * hw, dim))
    # TODO(synk): self.layers = BasicLayer(...) is not defined in the provided source;
    #             treated as identity (returns its input unchanged).
    return out


# ----------------------------- pure-JAX reference --------------------------- #

def _reference_forward(x_in, encoder_output, params, eps=1e-5):
    b, l1, c2 = x_in.shape
    dim = c2 // 2
    h = int(round(math.sqrt(l1)))
    w = h
    x = x_in.reshape(b, h, w, c2)
    enc = encoder_output.reshape(b, 2 * h, 2 * w, dim)

    def bn(v, pfx):
        g, bt = params[pfx + "_gamma"], params[pfx + "_beta"]
        mu, var = params[pfx + "_mean"], params[pfx + "_var"]
        return (v - mu) * (g / jnp.sqrt(var + eps)) + bt

    # ConvTranspose2d(k=2, s=2): out[b, 2i+p, 2j+q, oc] = sum_c x[b,i,j,c]*W[c,oc,p,q]
    y = jnp.einsum("bijc,copq->bipjqo", x, params["up_w"])
    y = y.reshape(b, 2 * h, 2 * w, dim) + params["up_b"]
    up = jax.nn.gelu(bn(y, "up"), approximate=False)

    cat = jnp.concatenate([enc, up], axis=-1)
    wc = params["conv_w"].transpose(2, 3, 1, 0)          # (3, 3, Cin, Cout)  HWIO
    z = lax.conv_general_dilated(cat, wc, window_strides=(1, 1), padding="SAME",
                                 dimension_numbers=("NHWC", "HWIO", "NHWC"))
    z = z + params["conv_b"]
    out = jax.nn.gelu(bn(z, "conv"), approximate=False)
    return out.reshape(b, 4 * h * w, dim)


# ----------------------------------- main ----------------------------------- #

if __name__ == "__main__":
    dim = 32                    # BasicLayerUp(dim=32): `input` carries 2*dim = 64 channels
    B, H_in = 2, 8              # 8x8 low-res input -> 16x16 output
    key = jax.random.PRNGKey(0)
    k_in, k_enc, k_p = jax.random.split(key, 3)

    x_in = jax.random.normal(k_in, (B, H_in * H_in, 2 * dim), jnp.float32)           # (2, 64, 64)
    enc = jax.random.normal(k_enc, (B, (2 * H_in) * (2 * H_in), dim), jnp.float32)   # (2, 256, 32)
    params = init_params(k_p, dim)

    fwd = jax.jit(basic_layer_up_forward)
    out = jax.block_until_ready(fwd(x_in, enc, params))

    assert out.shape == (B, (2 * H_in) * (2 * H_in), dim), out.shape
    assert bool(jnp.all(jnp.isfinite(out.astype(jnp.float32))))

    # Sanity check vs a plain-XLA f32 reference.  Tolerance is loose on purpose:
    # bf16 MXU inputs, bf16 kernel output and tanh-GELU (vs exact erf) are intentional
    # inference-mode approximations of the PyTorch module.
    ref = jax.block_until_ready(jax.jit(_reference_forward)(x_in, enc, params))
    err = float(jnp.max(jnp.abs(out.astype(jnp.float32) - ref)))
    assert err < 1.2e-1, f"max abs err vs f32 reference = {err}"

    print("KERNEL_OK")
</pallas_src>

<mosaic_0001>
module attributes {stable_mosaic.version = 11 : i64} {
  func.func @_fused_up_conv_kernel(%arg0: i32, %arg1: memref<1x64x64xbf16, #tpu.memory_space<vmem>>, %arg2: memref<1x4x8x8x32xbf16, #tpu.memory_space<vmem>>, %arg3: memref<64x128xbf16, #tpu.memory_space<vmem>>, %arg4: memref<1x128xf32, #tpu.memory_space<vmem>>, %arg5: memref<1x128xf32, #tpu.memory_space<vmem>>, %arg6: memref<16x64x128xbf16, #tpu.memory_space<vmem>>, %arg7: memref<1x128xf32, #tpu.memory_space<vmem>>, %arg8: memref<1x128xf32, #tpu.memory_space<vmem>>, %arg9: memref<1x64x128xbf16, #tpu.memory_space<vmem>>, %arg10: memref<4x10x10x64xbf16, #tpu.memory_space<vmem>>) attributes {dimension_semantics = [#tpu.dimension_semantics<parallel>], iteration_bounds = array<i64: 2>, scalar_prefetch = 0 : i64, scratch_operands = 1 : i64, tpu.core_type = #tpu.core_type<tc>, window_params = [{transform_indices = @transform_0, window_bounds = array<i64: 1, 64, 64>}, {transform_indices = @transform_1, window_bounds = array<i64: 1, 4, 8, 8, 32>}, {pipeline_mode = #tpu.pipeline_mode<synchronous>, transform_indices = @transform_2, window_bounds = array<i64: 64, 128>}, {pipeline_mode = #tpu.pipeline_mode<synchronous>, transform_indices = @transform_3, window_bounds = array<i64: 1, 128>}, {pipeline_mode = #tpu.pipeline_mode<synchronous>, transform_indices = @transform_4, window_bounds = array<i64: 1, 128>}, {pipeline_mode = #tpu.pipeline_mode<synchronous>, transform_indices = @transform_5, window_bounds = array<i64: 16, 64, 128>}, {pipeline_mode = #tpu.pipeline_mode<synchronous>, transform_indices = @transform_6, window_bounds = array<i64: 1, 128>}, {pipeline_mode = #tpu.pipeline_mode<synchronous>, transform_indices = @transform_7, window_bounds = array<i64: 1, 128>}, {transform_indices = @transform_8, window_bounds = array<i64: 1, 64, 128>}]} {
    %c0 = arith.constant 0 : index
    %c0_0 = arith.constant 0 : index
    %c0_1 = arith.constant 0 : index
    %0 = vector.load %arg1[%c0, %c0_0, %c0_1] : memref<1x64x64xbf16, #tpu.memory_space<vmem>>, vector<1x64x64xbf16>
    %1 = vector.shape_cast %0 : vector<1x64x64xbf16> to vector<64x64xbf16>
    %c0_2 = arith.constant 0 : index
    %c0_3 = arith.constant 0 : index
    %2 = vector.load %arg3[%c0_2, %c0_3] : memref<64x128xbf16, #tpu.memory_space<vmem>>, vector<64x128xbf16>
    %cst = arith.constant dense<0.000000e+00> : vector<64x128xf32>
    %3 = tpu.matmul %1, %2, %cst {dimension_numbers = #tpu.dot_dimension_numbers<[1], [0], [0], [1], [0, 0, 1, 1], [], []>} : vector<64x64xbf16>, vector<64x128xbf16>, vector<64x128xf32> -> vector<64x128xf32>
    %c0_4 = arith.constant 0 : index
    %c0_5 = arith.constant 0 : index
    %4 = vector.load %arg4[%c0_4, %c0_5] : memref<1x128xf32, #tpu.memory_space<vmem>>, vector<1x128xf32>
    %5 = vector.broadcast %4 : vector<1x128xf32> to vector<64x128xf32>
    %6 = arith.mulf %3, %5 : vector<64x128xf32>
    %c0_6 = arith.constant 0 : index
    %c0_7 = arith.constant 0 : index
    %7 = vector.load %arg5[%c0_6, %c0_7] : memref<1x128xf32, #tpu.memory_space<vmem>>, vector<1x128xf32>
    %8 = vector.broadcast %7 : vector<1x128xf32> to vector<64x128xf32>
    %9 = arith.addf %6, %8 : vector<64x128xf32>
    %cst_8 = arith.constant 5.000000e-01 : f32
    %10 = vector.broadcast %cst_8 : f32 to vector<64x128xf32>
    %11 = arith.mulf %10, %9 : vector<64x128xf32>
    %12 = arith.mulf %9, %9 : vector<64x128xf32>
    %13 = arith.mulf %12, %9 : vector<64x128xf32>
    %cst_9 = arith.constant 4.471500e-02 : f32
    %14 = vector.broadcast %cst_9 : f32 to vector<64x128xf32>
    %15 = arith.mulf %14, %13 : vector<64x128xf32>
    %16 = arith.addf %9, %15 : vector<64x128xf32>
    %cst_10 = arith.constant 0.797884583 : f32
    %17 = vector.broadcast %cst_10 : f32 to vector<64x128xf32>
    %18 = arith.mulf %17, %16 : vector<64x128xf32>
    %19 = math.tanh %18 : vector<64x128xf32>
    %cst_11 = arith.constant 1.000000e+00 : f32
    %20 = vector.broadcast %cst_11 : f32 to vector<64x128xf32>
    %21 = arith.addf %20, %19 : vector<64x128xf32>
    %22 = arith.mulf %11, %21 : vector<64x128xf32>
    %23 = arith.truncf %22 : vector<64x128xf32> to vector<64x128xbf16>
    %cst_12 = arith.constant 0.000000e+00 : bf16
    %24 = vector.broadcast %cst_12 : bf16 to vector<1x10x64xbf16>
    %cst_13 = arith.constant 0.000000e+00 : bf16
    %25 = vector.broadcast %cst_13 : bf16 to vector<10x1x64xbf16>
    %c0_14 = arith.constant 0 : index
    %c9 = arith.constant 9 : index
    %c0_15 = arith.constant 0 : index
    %c0_16 = arith.constant 0 : index
    %26 = vector.load %arg10[%c0_14, %c9, %c0_15, %c0_16] : memref<4x10x10x64xbf16, #tpu.memory_space<vmem>>, vector<1x1x10x64xbf16>
    %27 = vector.shape_cast %26 : vector<1x1x10x64xbf16> to vector<1x10x64xbf16>
    %28 = vector.shape_cast %24 : vector<1x10x64xbf16> to vector<1x1x10x64xbf16>
    tpu.vector_store %arg10[%c0_14, %c9, %c0_15, %c0_16], %28 {strides = array<i32>} : memref<4x10x10x64xbf16, #tpu.memory_space<vmem>>, vector<1x1x10x64xbf16>,
    %c0_17 = arith.constant 0 : index
    %c0_18 = arith.constant 0 : index
    %c9_19 = arith.constant 9 : index
    %c0_20 = arith.constant 0 : index
    %29 = vector.load %arg10[%c0_17, %c0_18, %c9_19, %c0_20] : memref<4x10x10x64xbf16, #tpu.memory_space<vmem>>, vector<1x10x1x64xbf16>
    %30 = vector.shape_cast %29 : vector<1x10x1x64xbf16> to vector<10x1x64xbf16>
    %31 = vector.shape_cast %25 : vector<10x1x64xbf16> to vector<1x10x1x64xbf16>
    tpu.vector_store %arg10[%c0_17, %c0_18, %c9_19, %c0_20], %31 {strides = array<i32>} : memref<4x10x10x64xbf16, #tpu.memory_space<vmem>>, vector<1x10x1x64xbf16>,
    %32 = vector.extract_strided_slice %23 {offsets = [0, 0], sizes = [64, 32], strides = [1, 1]} : vector<64x128xbf16> to vector<64x32xbf16>
    %33 = vector.shape_cast %32 : vector<64x32xbf16> to vector<8x8x32xbf16>
    %c0_21 = arith.constant 0 : index
    %c0_22 = arith.constant 0 : index
    %c0_23 = arith.constant 0 : index
    %c0_24 = arith.constant 0 : index
    %c0_25 = arith.constant 0 : index
    %34 = vector.load %arg2[%c0_21, %c0_22, %c0_23, %c0_24, %c0_25] : memref<1x4x8x8x32xbf16, #tpu.memory_space<vmem>>, vector<1x1x8x8x32xbf16>
    %35 = vector.shape_cast %34 : vector<1x1x8x8x32xbf16> to vector<8x8x32xbf16>
    %36 = tpu.concatenate %35, %33 in 2 : vector<8x8x32xbf16>, vector<8x8x32xbf16> -> vector<8x8x64xbf16>
    %c0_26 = arith.constant 0 : index
    %c1 = arith.constant 1 : index
    %c1_27 = arith.constant 1 : index
    %c0_28 = arith.constant 0 : index
    %37 = vector.load %arg10[%c0_26, %c1, %c1_27, %c0_28] : memref<4x10x10x64xbf16, #tpu.memory_space<vmem>>, vector<1x8x8x64xbf16>
    %38 = vector.shape_cast %37 : vector<1x8x8x64xbf16> to vector<8x8x64xbf16>
    %39 = vector.shape_cast %36 : vector<8x8x64xbf16> to vector<1x8x8x64xbf16>
    tpu.vector_store %arg10[%c0_26, %c1, %c1_27, %c0_28], %39 {strides = array<i32>} : memref<4x10x10x64xbf16, #tpu.memory_space<vmem>>, vector<1x8x8x64xbf16>,
    %c1_29 = arith.constant 1 : index
    %c9_30 = arith.constant 9 : index
    %c0_31 = arith.constant 0 : index
    %c0_32 = arith.constant 0 : index
    %40 = vector.load %arg10[%c1_29, %c9_30, %c0_31, %c0_32] : memref<4x10x10x64xbf16, #tpu.memory_space<vmem>>, vector<1x1x10x64xbf16>
    %41 = vector.shape_cast %40 : vector<1x1x10x64xbf16> to vector<1x10x64xbf16>
    %42 = vector.shape_cast %24 : vector<1x10x64xbf16> to vector<1x1x10x64xbf16>
    tpu.vector_store %arg10[%c1_29, %c9_30, %c0_31, %c0_32], %42 {strides = array<i32>} : memref<4x10x10x64xbf16, #tpu.memory_space<vmem>>, vector<1x1x10x64xbf16>,
    %c1_33 = arith.constant 1 : index
    %c0_34 = arith.constant 0 : index
    %c0_35 = arith.constant 0 : index
    %c0_36 = arith.constant 0 : index
    %43 = vector.load %arg10[%c1_33, %c0_34, %c0_35, %c0_36] : memref<4x10x10x64xbf16, #tpu.memory_space<vmem>>, vector<1x10x1x64xbf16>
    %44 = vector.shape_cast %43 : vector<1x10x1x64xbf16> to vector<10x1x64xbf16>
    %45 = vector.shape_cast %25 : vector<10x1x64xbf16> to vector<1x10x1x64xbf16>
    tpu.vector_store %arg10[%c1_33, %c0_34, %c0_35, %c0_36], %45 {strides = array<i32>} : memref<4x10x10x64xbf16, #tpu.memory_space<vmem>>, vector<1x10x1x64xbf16>,
    %46 = vector.extract_strided_slice %23 {offsets = [0, 32], sizes = [64, 32], strides = [1, 1]} : vector<64x128xbf16> to vector<64x32xbf16>
    %47 = vector.shape_cast %46 : vector<64x32xbf16> to vector<8x8x32xbf16>
    %c0_37 = arith.constant 0 : index
    %c1_38 = arith.constant 1 : index
    %c0_39 = arith.constant 0 : index
    %c0_40 = arith.constant 0 : index
    %c0_41 = arith.constant 0 : index
    %48 = vector.load %arg2[%c0_37, %c1_38, %c0_39, %c0_40, %c0_41] : memref<1x4x8x8x32xbf16, #tpu.memory_space<vmem>>, vector<1x1x8x8x32xbf16>
    %49 = vector.shape_cast %48 : vector<1x1x8x8x32xbf16> to vector<8x8x32xbf16>
    %50 = tpu.concatenate %49, %47 in 2 : vector<8x8x32xbf16>, vector<8x8x32xbf16> -> vector<8x8x64xbf16>
    %c1_42 = arith.constant 1 : index
    %c1_43 = arith.constant 1 : index
    %c1_44 = arith.constant 1 : index
    %c0_45 = arith.constant 0 : index
    %51 = vector.load %arg10[%c1_42, %c1_43, %c1_44, %c0_45] : memref<4x10x10x64xbf16, #tpu.memory_space<vmem>>, vector<1x8x8x64xbf16>
    %52 = vector.shape_cast %51 : vector<1x8x8x64xbf16> to vector<8x8x64xbf16>
    %53 = vector.shape_cast %50 : vector<8x8x64xbf16> to vector<1x8x8x64xbf16>
    tpu.vector_store %arg10[%c1_42, %c1_43, %c1_44, %c0_45], %53 {strides = array<i32>} : memref<4x10x10x64xbf16, #tpu.memory_space<vmem>>, vector<1x8x8x64xbf16>,
    %c2 = arith.constant 2 : index
    %c0_46 = arith.constant 0 : index
    %c0_47 = arith.constant 0 : index
    %c0_48 = arith.constant 0 : index
    %54 = vector.load %arg10[%c2, %c0_46, %c0_47, %c0_48] : memref<4x10x10x64xbf16, #tpu.memory_space<vmem>>, vector<1x1x10x64xbf16>
    %55 = vector.shape_cast %54 : vector<1x1x10x64xbf16> to vector<1x10x64xbf16>
    %56 = vector.shape_cast %24 : vector<1x10x64xbf16> to vector<1x1x10x64xbf16>
    tpu.vector_store %arg10[%c2, %c0_46, %c0_47, %c0_48], %56 {strides = array<i32>} : memref<4x10x10x64xbf16, #tpu.memory_space<vmem>>, vector<1x1x10x64xbf16>,
    %c2_49 = arith.constant 2 : index
    %c0_50 = arith.constant 0 : index
    %c9_51 = arith.constant 9 : index
    %c0_52 = arith.constant 0 : index
    %57 = vector.load %arg10[%c2_49, %c0_50, %c9_51, %c0_52] : memref<4x10x10x64xbf16, #tpu.memory_space<vmem>>, vector<1x10x1x64xbf16>
    %58 = vector.shape_cast %57 : vector<1x10x1x64xbf16> to vector<10x1x64xbf16>
    %59 = vector.shape_cast %25 : vector<10x1x64xbf16> to vector<1x10x1x64xbf16>
    tpu.vector_store %arg10[%c2_49, %c0_50, %c9_51, %c0_52], %59 {strides = array<i32>} : memref<4x10x10x64xbf16, #tpu.memory_space<vmem>>, vector<1x10x1x64xbf16>,
    %60 = vector.extract_strided_slice %23 {offsets = [0, 64], sizes = [64, 32], strides = [1, 1]} : vector<64x128xbf16> to vector<64x32xbf16>
    %61 = vector.shape_cast %60 : vector<64x32xbf16> to vector<8x8x32xbf16>
    %c0_53 = arith.constant 0 : index
    %c2_54 = arith.constant 2 : index
    %c0_55 = arith.constant 0 : index
    %c0_56 = arith.constant 0 : index
    %c0_57 = arith.constant 0 : index
    %62 = vector.load %arg2[%c0_53, %c2_54, %c0_55, %c0_56, %c0_57] : memref<1x4x8x8x32xbf16, #tpu.memory_space<vmem>>, vector<1x1x8x8x32xbf16>
    %63 = vector.shape_cast %62 : vector<1x1x8x8x32xbf16> to vector<8x8x32xbf16>
    %64 = tpu.concatenate %63, %61 in 2 : vector<8x8x32xbf16>, vector<8x8x32xbf16> -> vector<8x8x64xbf16>
    %c2_58 = arith.constant 2 : index
    %c1_59 = arith.constant 1 : index
    %c1_60 = arith.constant 1 : index
    %c0_61 = arith.constant 0 : index
    %65 = vector.load %arg10[%c2_58, %c1_59, %c1_60, %c0_61] : memref<4x10x10x64xbf16, #tpu.memory_space<vmem>>, vector<1x8x8x64xbf16>
    %66 = vector.shape_cast %65 : vector<1x8x8x64xbf16> to vector<8x8x64xbf16>
    %67 = vector.shape_cast %64 : vector<8x8x64xbf16> to vector<1x8x8x64xbf16>
    tpu.vector_store %arg10[%c2_58, %c1_59, %c1_60, %c0_61], %67 {strides = array<i32>} : memref<4x10x10x64xbf16, #tpu.memory_space<vmem>>, vector<1x8x8x64xbf16>,
    %c3 = arith.constant 3 : index
    %c0_62 = arith.constant 0 : index
    %c0_63 = arith.constant 0 : index
    %c0_64 = arith.constant 0 : index
    %68 = vector.load %arg10[%c3, %c0_62, %c0_63, %c0_64] : memref<4x10x10x64xbf16, #tpu.memory_space<vmem>>, vector<1x1x10x64xbf16>
    %69 = vector.shape_cast %68 : vector<1x1x10x64xbf16> to vector<1x10x64xbf16>
    %70 = vector.shape_cast %24 : vector<1x10x64xbf16> to vector<1x1x10x64xbf16>
    tpu.vector_store %arg10[%c3, %c0_62, %c0_63, %c0_64], %70 {strides = array<i32>} : memref<4x10x10x64xbf16, #tpu.memory_space<vmem>>, vector<1x1x10x64xbf16>,
    %c3_65 = arith.constant 3 : index
    %c0_66 = arith.constant 0 : index
    %c0_67 = arith.constant 0 : index
    %c0_68 = arith.constant 0 : index
    %71 = vector.load %arg10[%c3_65, %c0_66, %c0_67, %c0_68] : memref<4x10x10x64xbf16, #tpu.memory_space<vmem>>, vector<1x10x1x64xbf16>
    %72 = vector.shape_cast %71 : vector<1x10x1x64xbf16> to vector<10x1x64xbf16>
    %73 = vector.shape_cast %25 : vector<10x1x64xbf16> to vector<1x10x1x64xbf16>
    tpu.vector_store %arg10[%c3_65, %c0_66, %c0_67, %c0_68], %73 {strides = array<i32>} : memref<4x10x10x64xbf16, #tpu.memory_space<vmem>>, vector<1x10x1x64xbf16>,
    %74 = vector.extract_strided_slice %23 {offsets = [0, 96], sizes = [64, 32], strides = [1, 1]} : vector<64x128xbf16> to vector<64x32xbf16>
    %75 = vector.shape_cast %74 : vector<64x32xbf16> to vector<8x8x32xbf16>
    %c0_69 = arith.constant 0 : index
    %c3_70 = arith.constant 3 : index
    %c0_71 = arith.constant 0 : index
    %c0_72 = arith.constant 0 : index
    %c0_73 = arith.constant 0 : index
    %76 = vector.load %arg2[%c0_69, %c3_70, %c0_71, %c0_72, %c0_73] : memref<1x4x8x8x32xbf16, #tpu.memory_space<vmem>>, vector<1x1x8x8x32xbf16>
    %77 = vector.shape_cast %76 : vector<1x1x8x8x32xbf16> to vector<8x8x32xbf16>
    %78 = tpu.concatenate %77, %75 in 2 : vector<8x8x32xbf16>, vector<8x8x32xbf16> -> vector<8x8x64xbf16>
    %c3_74 = arith.constant 3 : index
    %c1_75 = arith.constant 1 : index
    %c1_76 = arith.constant 1 : index
    %c0_77 = arith.constant 0 : index
    %79 = vector.load %arg10[%c3_74, %c1_75, %c1_76, %c0_77] : memref<4x10x10x64xbf16, #tpu.memory_space<vmem>>, vector<1x8x8x64xbf16>
    %80 = vector.shape_cast %79 : vector<1x8x8x64xbf16> to vector<8x8x64xbf16>
    %81 = vector.shape_cast %78 : vector<8x8x64xbf16> to vector<1x8x8x64xbf16>
    tpu.vector_store %arg10[%c3_74, %c1_75, %c1_76, %c0_77], %81 {strides = array<i32>} : memref<4x10x10x64xbf16, #tpu.memory_space<vmem>>, vector<1x8x8x64xbf16>,
    %cst_78 = arith.constant 0.000000e+00 : f32
    %82 = vector.broadcast %cst_78 : f32 to vector<64x128xf32>
    %c0_79 = arith.constant 0 : index
    %c1_80 = arith.constant 1 : index
    %c1_81 = arith.constant 1 : index
    %c0_82 = arith.constant 0 : index
    %83 = vector.load %arg10[%c0_79, %c1_80, %c1_81, %c0_82] : memref<4x10x10x64xbf16, #tpu.memory_space<vmem>>, vector<1x8x8x64xbf16>
    %84 = vector.shape_cast %83 : vector<1x8x8x64xbf16> to vector<8x8x64xbf16>
    %85 = vector.shape_cast %84 : vector<8x8x64xbf16> to vector<64x64xbf16>
    %c0_83 = arith.constant 0 : index
    %c0_84 = arith.constant 0 : index
    %c0_85 = arith.constant 0 : index
    %86 = vector.load %arg6[%c0_83, %c0_84, %c0_85] : memref<16x64x128xbf16, #tpu.memory_space<vmem>>, vector<1x64x128xbf16>
    %87 = vector.shape_cast %86 : vector<1x64x128xbf16> to vector<64x128xbf16>
    %cst_86 = arith.constant dense<0.000000e+00> : vector<64x128xf32>
    %88 = tpu.matmul %85, %87, %cst_86 {dimension_numbers = #tpu.dot_dimension_numbers<[1], [0], [0], [1], [0, 0, 1, 1], [], []>} : vector<64x64xbf16>, vector<64x128xbf16>, vector<64x128xf32> -> vector<64x128xf32>
    %89 = arith.addf %82, %88 : vector<64x128xf32>
    %c0_87 = arith.constant 0 : index
    %c1_88 = arith.constant 1 : index
    %c2_89 = arith.constant 2 : index
    %c0_90 = arith.constant 0 : index
    %90 = vector.load %arg10[%c0_87, %c1_88, %c2_89, %c0_90] : memref<4x10x10x64xbf16, #tpu.memory_space<vmem>>, vector<1x8x8x64xbf16>
    %91 = vector.shape_cast %90 : vector<1x8x8x64xbf16> to vector<8x8x64xbf16>
    %92 = vector.shape_cast %91 : vector<8x8x64xbf16> to vector<64x64xbf16>
    %c1_91 = arith.constant 1 : index
    %c0_92 = arith.constant 0 : index
    %c0_93 = arith.constant 0 : index
    %93 = vector.load %arg6[%c1_91, %c0_92, %c0_93] : memref<16x64x128xbf16, #tpu.memory_space<vmem>>, vector<1x64x128xbf16>
    %94 = vector.shape_cast %93 : vector<1x64x128xbf16> to vector<64x128xbf16>
    %cst_94 = arith.constant dense<0.000000e+00> : vector<64x128xf32>
    %95 = tpu.matmul %92, %94, %cst_94 {dimension_numbers = #tpu.dot_dimension_numbers<[1], [0], [0], [1], [0, 0, 1, 1], [], []>} : vector<64x64xbf16>, vector<64x128xbf16>, vector<64x128xf32> -> vector<64x128xf32>
    %96 = arith.addf %89, %95 : vector<64x128xf32>
    %c1_95 = arith.constant 1 : index
    %c1_96 = arith.constant 1 : index
    %c0_97 = arith.constant 0 : index
    %c0_98 = arith.constant 0 : index
    %97 = vector.load %arg10[%c1_95, %c1_96, %c0_97, %c0_98] : memref<4x10x10x64xbf16, #tpu.memory_space<vmem>>, vector<1x8x8x64xbf16>
    %98 = vector.shape_cast %97 : vector<1x8x8x64xbf16> to vector<8x8x64xbf16>
    %99 = vector.shape_cast %98 : vector<8x8x64xbf16> to vector<64x64xbf16>
    %c2_99 = arith.constant 2 : index
    %c0_100 = arith.constant 0 : index
    %c0_101 = arith.constant 0 : index
    %100 = vector.load %arg6[%c2_99, %c0_100, %c0_101] : memref<16x64x128xbf16, #tpu.memory_space<vmem>>, vector<1x64x128xbf16>
    %101 = vector.shape_cast %100 : vector<1x64x128xbf16> to vector<64x128xbf16>
    %cst_102 = arith.constant dense<0.000000e+00> : vector<64x128xf32>
    %102 = tpu.matmul %99, %101, %cst_102 {dimension_numbers = #tpu.dot_dimension_numbers<[1], [0], [0], [1], [0, 0, 1, 1], [], []>} : vector<64x64xbf16>, vector<64x128xbf16>, vector<64x128xf32> -> vector<64x128xf32>
    %103 = arith.addf %96, %102 : vector<64x128xf32>
    %c1_103 = arith.constant 1 : index
    %c1_104 = arith.constant 1 : index
    %c1_105 = arith.constant 1 : index
    %c0_106 = arith.constant 0 : index
    %104 = vector.load %arg10[%c1_103, %c1_104, %c1_105, %c0_106] : memref<4x10x10x64xbf16, #tpu.memory_space<vmem>>, vector<1x8x8x64xbf16>
    %105 = vector.shape_cast %104 : vector<1x8x8x64xbf16> to vector<8x8x64xbf16>
    %106 = vector.shape_cast %105 : vector<8x8x64xbf16> to vector<64x64xbf16>
    %c3_107 = arith.constant 3 : index
    %c0_108 = arith.constant 0 : index
    %c0_109 = arith.constant 0 : index
    %107 = vector.load %arg6[%c3_107, %c0_108, %c0_109] : memref<16x64x128xbf16, #tpu.memory_space<vmem>>, vector<1x64x128xbf16>
    %108 = vector.shape_cast %107 : vector<1x64x128xbf16> to vector<64x128xbf16>
    %cst_110 = arith.constant dense<0.000000e+00> : vector<64x128xf32>
    %109 = tpu.matmul %106, %108, %cst_110 {dimension_numbers = #tpu.dot_dimension_numbers<[1], [0], [0], [1], [0, 0, 1, 1], [], []>} : vector<64x64xbf16>, vector<64x128xbf16>, vector<64x128xf32> -> vector<64x128xf32>
    %110 = arith.addf %103, %109 : vector<64x128xf32>
    %c0_111 = arith.constant 0 : index
    %c2_112 = arith.constant 2 : index
    %c1_113 = arith.constant 1 : index
    %c0_114 = arith.constant 0 : index
    %111 = vector.load %arg10[%c0_111, %c2_112, %c1_113, %c0_114] : memref<4x10x10x64xbf16, #tpu.memory_space<vmem>>, vector<1x8x8x64xbf16>
    %112 = vector.shape_cast %111 : vector<1x8x8x64xbf16> to vector<8x8x64xbf16>
    %113 = vector.shape_cast %112 : vector<8x8x64xbf16> to vector<64x64xbf16>
    %c4 = arith.constant 4 : index
    %c0_115 = arith.constant 0 : index
    %c0_116 = arith.constant 0 : index
    %114 = vector.load %arg6[%c4, %c0_115, %c0_116] : memref<16x64x128xbf16, #tpu.memory_space<vmem>>, vector<1x64x128xbf16>
    %115 = vector.shape_cast %114 : vector<1x64x128xbf16> to vector<64x128xbf16>
    %cst_117 = arith.constant dense<0.000000e+00> : vector<64x128xf32>
    %116 = tpu.matmul %113, %115, %cst_117 {dimension_numbers = #tpu.dot_dimension_numbers<[1], [0], [0], [1], [0, 0, 1, 1], [], []>} : vector<64x64xbf16>, vector<64x128xbf16>, vector<64x128xf32> -> vector<64x128xf32>
    %117 = arith.addf %110, %116 : vector<64x128xf32>
    %c0_118 = arith.constant 0 : index
    %c2_119 = arith.constant 2 : index
    %c2_120 = arith.constant 2 : index
    %c0_121 = arith.constant 0 : index
    %118 = vector.load %arg10[%c0_118, %c2_119, %c2_120, %c0_121] : memref<4x10x10x64xbf16, #tpu.memory_space<vmem>>, vector<1x8x8x64xbf16>
    %119 = vector.shape_cast %118 : vector<1x8x8x64xbf16> to vector<8x8x64xbf16>
    %120 = vector.shape_cast %119 : vector<8x8x64xbf16> to vector<64x64xbf16>
    %c5 = arith.constant 5 : index
    %c0_122 = arith.constant 0 : index
    %c0_123 = arith.constant 0 : index
    %121 = vector.load %arg6[%c5, %c0_122, %c0_123] : memref<16x64x128xbf16, #tpu.memory_space<vmem>>, vector<1x64x128xbf16>
    %122 = vector.shape_cast %121 : vector<1x64x128xbf16> to vector<64x128xbf16>
    %cst_124 = arith.constant dense<0.000000e+00> : vector<64x128xf32>
    %123 = tpu.matmul %120, %122, %cst_124 {dimension_numbers = #tpu.dot_dimension_numbers<[1], [0], [0], [1], [0, 0, 1, 1], [], []>} : vector<64x64xbf16>, vector<64x128xbf16>, vector<64x128xf32> -> vector<64x128xf32>
    %124 = arith.addf %117, %123 : vector<64x128xf32>
    %c1_125 = arith.constant 1 : index
    %c2_126 = arith.constant 2 : index
    %c0_127 = arith.constant 0 : index
    %c0_128 = arith.constant 0 : index
    %125 = vector.load %arg10[%c1_125, %c2_126, %c0_127, %c0_128] : memref<4x10x10x64xbf16, #tpu.memory_space<vmem>>, vector<1x8x8x64xbf16>
    %126 = vector.shape_cast %125 : vector<1x8x8x64xbf16> to vector<8x8x64xbf16>
    %127 = vector.shape_cast %126 : vector<8x8x64xbf16> to vector<64x64xbf16>
    %c6 = arith.constant 6 : index
    %c0_129 = arith.constant 0 : index
    %c0_130 = arith.constant 0 : index
    %128 = vector.load %arg6[%c6, %c0_129, %c0_130] : memref<16x64x128xbf16, #tpu.memory_space<vmem>>, vector<1x64x128xbf16>
    %129 = vector.shape_cast %128 : vector<1x64x128xbf16> to vector<64x128xbf16>
    %cst_131 = arith.constant dense<0.000000e+00> : vector<64x128xf32>
    %130 = tpu.matmul %127, %129, %cst_131 {dimension_numbers = #tpu.dot_dimension_numbers<[1], [0], [0], [1], [0, 0, 1, 1], [], []>} : vector<64x64xbf16>, vector<64x128xbf16>, vector<64x128xf32> -> vector<64x128xf32>
    %131 = arith.addf %124, %130 : vector<64x128xf32>
    %c1_132 = arith.constant 1 : index
    %c2_133 = arith.constant 2 : index
    %c1_134 = arith.constant 1 : index
    %c0_135 = arith.constant 0 : index
    %132 = vector.load %arg10[%c1_132, %c2_133, %c1_134, %c0_135] : memref<4x10x10x64xbf16, #tpu.memory_space<vmem>>, vector<1x8x8x64xbf16>
    %133 = vector.shape_cast %132 : vector<1x8x8x64xbf16> to vector<8x8x64xbf16>
    %134 = vector.shape_cast %133 : vector<8x8x64xbf16> to vector<64x64xbf16>
    %c7 = arith.constant 7 : index
    %c0_136 = arith.constant 0 : index
    %c0_137 = arith.constant 0 : index
    %135 = vector.load %arg6[%c7, %c0_136, %c0_137] : memref<16x64x128xbf16, #tpu.memory_space<vmem>>, vector<1x64x128xbf16>
    %136 = vector.shape_cast %135 : vector<1x64x128xbf16> to vector<64x128xbf16>
    %cst_138 = arith.constant dense<0.000000e+00> : vector<64x128xf32>
    %137 = tpu.matmul %134, %136, %cst_138 {dimension_numbers = #tpu.dot_dimension_numbers<[1], [0], [0], [1], [0, 0, 1, 1], [], []>} : vector<64x64xbf16>, vector<64x128xbf16>, vector<64x128xf32> -> vector<64x128xf32>
    %138 = arith.addf %131, %137 : vector<64x128xf32>
    %c2_139 = arith.constant 2 : index
    %c0_140 = arith.constant 0 : index
    %c1_141 = arith.constant 1 : index
    %c0_142 = arith.constant 0 : index
    %139 = vector.load %arg10[%c2_139, %c0_140, %c1_141, %c0_142] : memref<4x10x10x64xbf16, #tpu.memory_space<vmem>>, vector<1x8x8x64xbf16>
    %140 = vector.shape_cast %139 : vector<1x8x8x64xbf16> to vector<8x8x64xbf16>
    %141 = vector.shape_cast %140 : vector<8x8x64xbf16> to vector<64x64xbf16>
    %c8 = arith.constant 8 : index
    %c0_143 = arith.constant 0 : index
    %c0_144 = arith.constant 0 : index
    %142 = vector.load %arg6[%c8, %c0_143, %c0_144] : memref<16x64x128xbf16, #tpu.memory_space<vmem>>, vector<1x64x128xbf16>
    %143 = vector.shape_cast %142 : vector<1x64x128xbf16> to vector<64x128xbf16>
    %cst_145 = arith.constant dense<0.000000e+00> : vector<64x128xf32>
    %144 = tpu.matmul %141, %143, %cst_145 {dimension_numbers = #tpu.dot_dimension_numbers<[1], [0], [0], [1], [0, 0, 1, 1], [], []>} : vector<64x64xbf16>, vector<64x128xbf16>, vector<64x128xf32> -> vector<64x128xf32>
    %145 = arith.addf %138, %144 : vector<64x128xf32>
    %c2_146 = arith.constant 2 : index
    %c0_147 = arith.constant 0 : index
    %c2_148 = arith.constant 2 : index
    %c0_149 = arith.constant 0 : index
    %146 = vector.load %arg10[%c2_146, %c0_147, %c2_148, %c0_149] : memref<4x10x10x64xbf16, #tpu.memory_space<vmem>>, vector<1x8x8x64xbf16>
    %147 = vector.shape_cast %146 : vector<1x8x8x64xbf16> to vector<8x8x64xbf16>
    %148 = vector.shape_cast %147 : vector<8x8x64xbf16> to vector<64x64xbf16>
    %c9_150 = arith.constant 9 : index
    %c0_151 = arith.constant 0 : index
    %c0_152 = arith.constant 0 : index
    %149 = vector.load %arg6[%c9_150, %c0_151, %c0_152] : memref<16x64x128xbf16, #tpu.memory_space<vmem>>, vector<1x64x128xbf16>
    %150 = vector.shape_cast %149 : vector<1x64x128xbf16> to vector<64x128xbf16>
    %cst_153 = arith.constant dense<0.000000e+00> : vector<64x128xf32>
    %151 = tpu.matmul %148, %150, %cst_153 {dimension_numbers = #tpu.dot_dimension_numbers<[1], [0], [0], [1], [0, 0, 1, 1], [], []>} : vector<64x64xbf16>, vector<64x128xbf16>, vector<64x128xf32> -> vector<64x128xf32>
    %152 = arith.addf %145, %151 : vector<64x128xf32>
    %c3_154 = arith.constant 3 : index
    %c0_155 = arith.constant 0 : index
    %c0_156 = arith.constant 0 : index
    %c0_157 = arith.constant 0 : index
    %153 = vector.load %arg10[%c3_154, %c0_155, %c0_156, %c0_157] : memref<4x10x10x64xbf16, #tpu.memory_space<vmem>>, vector<1x8x8x64xbf16>
    %154 = vector.shape_cast %153 : vector<1x8x8x64xbf16> to vector<8x8x64xbf16>
    %155 = vector.shape_cast %154 : vector<8x8x64xbf16> to vector<64x64xbf16>
    %c10 = arith.constant 10 : index
    %c0_158 = arith.constant 0 : index
    %c0_159 = arith.constant 0 : index
    %156 = vector.load %arg6[%c10, %c0_158, %c0_159] : memref<16x64x128xbf16, #tpu.memory_space<vmem>>, vector<1x64x128xbf16>
    %157 = vector.shape_cast %156 : vector<1x64x128xbf16> to vector<64x128xbf16>
    %cst_160 = arith.constant dense<0.000000e+00> : vector<64x128xf32>
    %158 = tpu.matmul %155, %157, %cst_160 {dimension_numbers = #tpu.dot_dimension_numbers<[1], [0], [0], [1], [0, 0, 1, 1], [], []>} : vector<64x64xbf16>, vector<64x128xbf16>, vector<64x128xf32> -> vector<64x128xf32>
    %159 = arith.addf %152, %158 : vector<64x128xf32>
    %c3_161 = arith.constant 3 : index
    %c0_162 = arith.constant 0 : index
    %c1_163 = arith.constant 1 : index
    %c0_164 = arith.constant 0 : index
    %160 = vector.load %arg10[%c3_161, %c0_162, %c1_163, %c0_164] : memref<4x10x10x64xbf16, #tpu.memory_space<vmem>>, vector<1x8x8x64xbf16>
    %161 = vector.shape_cast %160 : vector<1x8x8x64xbf16> to vector<8x8x64xbf16>
    %162 = vector.shape_cast %161 : vector<8x8x64xbf16> to vector<64x64xbf16>
    %c11 = arith.constant 11 : index
    %c0_165 = arith.constant 0 : index
    %c0_166 = arith.constant 0 : index
    %163 = vector.load %arg6[%c11, %c0_165, %c0_166] : memref<16x64x128xbf16, #tpu.memory_space<vmem>>, vector<1x64x128xbf16>
    %164 = vector.shape_cast %163 : vector<1x64x128xbf16> to vector<64x128xbf16>
    %cst_167 = arith.constant dense<0.000000e+00> : vector<64x128xf32>
    %165 = tpu.matmul %162, %164, %cst_167 {dimension_numbers = #tpu.dot_dimension_numbers<[1], [0], [0], [1], [0, 0, 1, 1], [], []>} : vector<64x64xbf16>, vector<64x128xbf16>, vector<64x128xf32> -> vector<64x128xf32>
    %166 = arith.addf %159, %165 : vector<64x128xf32>
    %c2_168 = arith.constant 2 : index
    %c1_169 = arith.constant 1 : index
    %c1_170 = arith.constant 1 : index
    %c0_171 = arith.constant 0 : index
    %167 = vector.load %arg10[%c2_168, %c1_169, %c1_170, %c0_171] : memref<4x10x10x64xbf16, #tpu.memory_space<vmem>>, vector<1x8x8x64xbf16>
    %168 = vector.shape_cast %167 : vector<1x8x8x64xbf16> to vector<8x8x64xbf16>
    %169 = vector.shape_cast %168 : vector<8x8x64xbf16> to vector<64x64xbf16>
    %c12 = arith.constant 12 : index
    %c0_172 = arith.constant 0 : index
    %c0_173 = arith.constant 0 : index
    %170 = vector.load %arg6[%c12, %c0_172, %c0_173] : memref<16x64x128xbf16, #tpu.memory_space<vmem>>, vector<1x64x128xbf16>
    %171 = vector.shape_cast %170 : vector<1x64x128xbf16> to vector<64x128xbf16>
    %cst_174 = arith.constant dense<0.000000e+00> : vector<64x128xf32>
    %172 = tpu.matmul %169, %171, %cst_174 {dimension_numbers = #tpu.dot_dimension_numbers<[1], [0], [0], [1], [0, 0, 1, 1], [], []>} : vector<64x64xbf16>, vector<64x128xbf16>, vector<64x128xf32> -> vector<64x128xf32>
    %173 = arith.addf %166, %172 : vector<64x128xf32>
    %c2_175 = arith.constant 2 : index
    %c1_176 = arith.constant 1 : index
    %c2_177 = arith.constant 2 : index
    %c0_178 = arith.constant 0 : index
    %174 = vector.load %arg10[%c2_175, %c1_176, %c2_177, %c0_178] : memref<4x10x10x64xbf16, #tpu.memory_space<vmem>>, vector<1x8x8x64xbf16>
    %175 = vector.shape_cast %174 : vector<1x8x8x64xbf16> to vector<8x8x64xbf16>
    %176 = vector.shape_cast %175 : vector<8x8x64xbf16> to vector<64x64xbf16>
    %c13 = arith.constant 13 : index
    %c0_179 = arith.constant 0 : index
    %c0_180 = arith.constant 0 : index
    %177 = vector.load %arg6[%c13, %c0_179, %c0_180] : memref<16x64x128xbf16, #tpu.memory_space<vmem>>, vector<1x64x128xbf16>
    %178 = vector.shape_cast %177 : vector<1x64x128xbf16> to vector<64x128xbf16>
    %cst_181 = arith.constant dense<0.000000e+00> : vector<64x128xf32>
    %179 = tpu.matmul %176, %178, %cst_181 {dimension_numbers = #tpu.dot_dimension_numbers<[1], [0], [0], [1], [0, 0, 1, 1], [], []>} : vector<64x64xbf16>, vector<64x128xbf16>, vector<64x128xf32> -> vector<64x128xf32>
    %180 = arith.addf %173, %179 : vector<64x128xf32>
    %c3_182 = arith.constant 3 : index
    %c1_183 = arith.constant 1 : index
    %c0_184 = arith.constant 0 : index
    %c0_185 = arith.constant 0 : index
    %181 = vector.load %arg10[%c3_182, %c1_183, %c0_184, %c0_185] : memref<4x10x10x64xbf16, #tpu.memory_space<vmem>>, vector<1x8x8x64xbf16>
    %182 = vector.shape_cast %181 : vector<1x8x8x64xbf16> to vector<8x8x64xbf16>
    %183 = vector.shape_cast %182 : vector<8x8x64xbf16> to vector<64x64xbf16>
    %c14 = arith.constant 14 : index
    %c0_186 = arith.constant 0 : index
    %c0_187 = arith.constant 0 : index
    %184 = vector.load %arg6[%c14, %c0_186, %c0_187] : memref<16x64x128xbf16, #tpu.memory_space<vmem>>, vector<1x64x128xbf16>
    %185 = vector.shape_cast %184 : vector<1x64x128xbf16> to vector<64x128xbf16>
    %cst_188 = arith.constant dense<0.000000e+00> : vector<64x128xf32>
    %186 = tpu.matmul %183, %185, %cst_188 {dimension_numbers = #tpu.dot_dimension_numbers<[1], [0], [0], [1], [0, 0, 1, 1], [], []>} : vector<64x64xbf16>, vector<64x128xbf16>, vector<64x128xf32> -> vector<64x128xf32>
    %187 = arith.addf %180, %186 : vector<64x128xf32>
    %c3_189 = arith.constant 3 : index
    %c1_190 = arith.constant 1 : index
    %c1_191 = arith.constant 1 : index
    %c0_192 = arith.constant 0 : index
    %188 = vector.load %arg10[%c3_189, %c1_190, %c1_191, %c0_192] : memref<4x10x10x64xbf16, #tpu.memory_space<vmem>>, vector<1x8x8x64xbf16>
    %189 = vector.shape_cast %188 : vector<1x8x8x64xbf16> to vector<8x8x64xbf16>
    %190 = vector.shape_cast %189 : vector<8x8x64xbf16> to vector<64x64xbf16>
    %c15 = arith.constant 15 : index
    %c0_193 = arith.constant 0 : index
    %c0_194 = arith.constant 0 : index
    %191 = vector.load %arg6[%c15, %c0_193, %c0_194] : memref<16x64x128xbf16, #tpu.memory_space<vmem>>, vector<1x64x128xbf16>
    %192 = vector.shape_cast %191 : vector<1x64x128xbf16> to vector<64x128xbf16>
    %cst_195 = arith.constant dense<0.000000e+00> : vector<64x128xf32>
    %193 = tpu.matmul %190, %192, %cst_195 {dimension_numbers = #tpu.dot_dimension_numbers<[1], [0], [0], [1], [0, 0, 1, 1], [], []>} : vector<64x64xbf16>, vector<64x128xbf16>, vector<64x128xf32> -> vector<64x128xf32>
    %194 = arith.addf %187, %193 : vector<64x128xf32>
    %c0_196 = arith.constant 0 : index
    %c0_197 = arith.constant 0 : index
    %195 = vector.load %arg7[%c0_196, %c0_197] : memref<1x128xf32, #tpu.memory_space<vmem>>, vector<1x128xf32>
    %196 = vector.broadcast %195 : vector<1x128xf32> to vector<64x128xf32>
    %197 = arith.mulf %194, %196 : vector<64x128xf32>
    %c0_198 = arith.constant 0 : index
    %c0_199 = arith.constant 0 : index
    %198 = vector.load %arg8[%c0_198, %c0_199] : memref<1x128xf32, #tpu.memory_space<vmem>>, vector<1x128xf32>
    %199 = vector.broadcast %198 : vector<1x128xf32> to vector<64x128xf32>
    %200 = arith.addf %197, %199 : vector<64x128xf32>
    %cst_200 = arith.constant 5.000000e-01 : f32
    %201 = vector.broadcast %cst_200 : f32 to vector<64x128xf32>
    %202 = arith.mulf %201, %200 : vector<64x128xf32>
    %203 = arith.mulf %200, %200 : vector<64x128xf32>
    %204 = arith.mulf %203, %200 : vector<64x128xf32>
    %cst_201 = arith.constant 4.471500e-02 : f32
    %205 = vector.broadcast %cst_201 : f32 to vector<64x128xf32>
    %206 = arith.mulf %205, %204 : vector<64x128xf32>
    %207 = arith.addf %200, %206 : vector<64x128xf32>
    %cst_202 = arith.constant 0.797884583 : f32
    %208 = vector.broadcast %cst_202 : f32 to vector<64x128xf32>
    %209 = arith.mulf %208, %207 : vector<64x128xf32>
    %210 = math.tanh %209 : vector<64x128xf32>
    %cst_203 = arith.constant 1.000000e+00 : f32
    %211 = vector.broadcast %cst_203 : f32 to vector<64x128xf32>
    %212 = arith.addf %211, %210 : vector<64x128xf32>
    %213 = arith.mulf %202, %212 : vector<64x128xf32>
    %214 = arith.truncf %213 : vector<64x128xf32> to vector<64x128xbf16>
    %c0_204 = arith.constant 0 : index
    %c0_205 = arith.constant 0 : index
    %c0_206 = arith.constant 0 : index
    %215 = vector.load %arg9[%c0_204, %c0_205, %c0_206] : memref<1x64x128xbf16, #tpu.memory_space<vmem>>, vector<1x64x128xbf16>
    %216 = vector.shape_cast %215 : vector<1x64x128xbf16> to vector<64x128xbf16>
    %217 = vector.shape_cast %214 : vector<64x128xbf16> to vector<1x64x128xbf16>
    tpu.vector_store %arg9[%c0_204, %c0_205, %c0_206], %217 {strides = array<i32>} : memref<1x64x128xbf16, #tpu.memory_space<vmem>>, vector<1x64x128xbf16>,
    return
  }
  func.func @transform_0(%arg0: i32) -> (i32, i32, i32) {
    %c0_i32 = arith.constant 0 : i32
    %c0_i32_0 = arith.constant 0 : i32
    %c0_i32_1 = arith.constant 0 : i32
    return %arg0, %c0_i32, %c0_i32_0 : i32, i32, i32
  }
  func.func @transform_1(%arg0: i32) -> (i32, i32, i32, i32, i32) {
    %c0_i32 = arith.constant 0 : i32
    %c0_i32_0 = arith.constant 0 : i32
    %c0_i32_1 = arith.constant 0 : i32
    %c0_i32_2 = arith.constant 0 : i32
    %c0_i32_3 = arith.constant 0 : i32
    return %arg0, %c0_i32, %c0_i32_0, %c0_i32_1, %c0_i32_2 : i32, i32, i32, i32, i32
  }
  func.func @transform_2(%arg0: i32) -> (i32, i32) {
    %c0_i32 = arith.constant 0 : i32
    %c0_i32_0 = arith.constant 0 : i32
    %c0_i32_1 = arith.constant 0 : i32
    return %c0_i32, %c0_i32_0 : i32, i32
  }
  func.func @transform_3(%arg0: i32) -> (i32, i32) {
    %c0_i32 = arith.constant 0 : i32
    %c0_i32_0 = arith.constant 0 : i32
    %c0_i32_1 = arith.constant 0 : i32
    return %c0_i32, %c0_i32_0 : i32, i32
  }
  func.func @transform_4(%arg0: i32) -> (i32, i32) {
    %c0_i32 = arith.constant 0 : i32
    %c0_i32_0 = arith.constant 0 : i32
    %c0_i32_1 = arith.constant 0 : i32
    return %c0_i32, %c0_i32_0 : i32, i32
  }
  func.func @transform_5(%arg0: i32) -> (i32, i32, i32) {
    %c0_i32 = arith.constant 0 : i32
    %c0_i32_0 = arith.constant 0 : i32
    %c0_i32_1 = arith.constant 0 : i32
    %c0_i32_2 = arith.constant 0 : i32
    return %c0_i32, %c0_i32_0, %c0_i32_1 : i32, i32, i32
  }
  func.func @transform_6(%arg0: i32) -> (i32, i32) {
    %c0_i32 = arith.constant 0 : i32
    %c0_i32_0 = arith.constant 0 : i32
    %c0_i32_1 = arith.constant 0 : i32
    return %c0_i32, %c0_i32_0 : i32, i32
  }
  func.func @transform_7(%arg0: i32) -> (i32, i32) {
    %c0_i32 = arith.constant 0 : i32
    %c0_i32_0 = arith.constant 0 : i32
    %c0_i32_1 = arith.constant 0 : i32
    return %c0_i32, %c0_i32_0 : i32, i32
  }
  func.func @transform_8(%arg0: i32) -> (i32, i32, i32) {
    %c0_i32 = arith.constant 0 : i32
    %c0_i32_0 = arith.constant 0 : i32
    %c0_i32_1 = arith.constant 0 : i32
    return %arg0, %c0_i32, %c0_i32_0 : i32, i32, i32
  }
}

</mosaic_0001>

<bundles_post_ra>
// kernel: tile.23
= control target key start
LH: loop header
LB: loop body
LE: loop exit
PB: predicated region body
PF: predicated region fallthrough
CT: control target
= control target key end

     0   :  { %s22_s0 = inlined_call_operand.vmem [shape: f32[32], index: 0, kind: input, shape index: {}]   ;;  %s23_s1 = inlined_call_operand.vmem [shape: f32[4,32], index: 1, kind: output, shape index: {}]  }
   0x1   :  { %v4_v0 = vld [vmem:[%s22_s0] ss:$0 sm:$0xff] }
   0x2   :  { %5 = vst [vmem:[%s23_s1] sm:$0xf] %v4_v0 }

// kernel: tile.24
= control target key start
LH: loop header
LB: loop body
LE: loop exit
PB: predicated region body
PF: predicated region fallthrough
CT: control target
= control target key end

     0   :  { %vm7_vm0 = vcmask 261120   ;;  %s37_s8 = smov 32   ;;  %s38_s9 = smov 64   ;;  %vm13_vm1 = vcmask 1048320   ;;  %vm19_vm2 = vcmask 785920   ;;  %vm25_vm3 = vcmask 523520   ;;  %s55_s0 = inlined_call_operand.vmem [shape: f32[4,32], index: 0, kind: input, shape index: {}]   ;;  %s56_s1 = inlined_call_operand.vmem [shape: f32[1,128], index: 1, kind: output, shape index: {}]  }
   0x1   :  { %v4_v0 = vld [vmem:[%s55_s0] sm:$0xf]  ;;  %s36_s0 = smov 96  }
   0x2   :  { %5 = vst [vmem:[#allocation1] sm:$0xf] %v4_v0 }
   0x9   :  { %v10_v1 = vld [vmem:[#allocation1 + $0x3] sm:$0x1]   ;;  %v22_v2 = vld [vmem:[#allocation1 + $0x1] sm:$0x1]   ;;  %v6_v3 = vld [vmem:[#allocation1] sm:$0x1]  }
   0xa   :  { %11 = vrot.lane.b32.xlu0 %v10_v1, %s36_s0  ;;  %23 = vrot.lane.b32.xlu1 %v22_v2, %s37_s8  ;;  %v16_v4 = vld [vmem:[#allocation1 + $0x2] sm:$0x1]   ;;  %8 = vst.msk [vmem:[#allocation0] sm:$0x1] %vm7_vm0, %v6_v3  }
   0xe   :  { %17 = vrot.lane.b32.xlu0 %v16_v4, %s38_s9 }
  0x7c   :  { %v12_v5 = vpop.permute.xlu0 %11   ;;  %v24_v6 = vpop.permute.xlu1 %23  }
  0x7d   :  { %14 = vst.msk [vmem:[#allocation0] sm:$0x1] %vm13_vm1, %v12_v5  }
  0x80   :  { %v18_v7 = vpop.permute.xlu0 %17  }
  0x81   :  { %20 = vst.msk [vmem:[#allocation0] sm:$0x1] %vm19_vm2, %v18_v7  }
  0x82   :  { %26 = vst.msk [vmem:[#allocation0] sm:$0x1] %vm25_vm3, %v24_v6  }
  0x89   :  { %v30_v8 = vld [vmem:[#allocation0] sm:$0x1] }
  0x8a   :  { %32 = vst [vmem:[%s56_s1] sm:$0x1] %v30_v8 }

// kernel: basic_layer_up_forward.1
= control target key start
LH: loop header
LB: loop body
LE: loop exit
PB: predicated region body
PF: predicated region fallthrough
CT: control target
= control target key end

     0   :  { %s6331_s27 = smov 0   ;;  %s7568_s0 = inlined_call_operand.vmem [shape: bf16[2,64,64], index: 0, kind: input, shape index: {}]   ;;  %s7569_s1 = inlined_call_operand.vmem [shape: bf16[2,4,8,8,32], index: 1, kind: input, shape index: {}]   ;;  %s7570_s2 = inlined_call_operand.vmem [shape: bf16[64,128], index: 2, kind: input, shape index: {}]   ;;  %s7571_s3 = inlined_call_operand.vmem [shape: f32[1,128], index: 3, kind: input, shape index: {}]   ;;  %s7572_s4 = inlined_call_operand.vmem [shape: f32[1,128], index: 4, kind: input, shape index: {}]   ;;  %s7573_s5 = inlined_call_operand.vmem [shape: bf16[16,64,128], index: 5, kind: input, shape index: {}]   ;;  %s7574_s6 = inlined_call_operand.vmem [shape: f32[1,128], index: 6, kind: input, shape index: {}]   ;;  %s7575_s7 = inlined_call_operand.vmem [shape: f32[1,128], index: 7, kind: input, shape index: {}]   ;;  %s7576_s8 = inlined_call_operand.vmem [shape: bf16[2,64,128], index: 8, kind: output, shape index: {}]  }
   0x1 LB: > { %s5117_s28 = sadd.s32 4294967295, %s6280_s27   ;;  %p5121_p0 = scmp.ge.s32.totalorder %s6280_s27, 1  ;;  %s6280_s27 = sphi %s6331_s27, %s18_s27  }
   0x2   : > { %p272_p1 = scmp.lt.s32.totalorder %s6280_s27, 3 }
   0x4   : > { %p273_p2 = pnand %p5121_p0, %p272_p1 }
   0x5   : > { %v6152_v0 = vld [vmem:[%s7570_s2] sm:$0xff] (!%p273_p2)   ;;  %p311_p3 = scmp.lt.s32.totalorder (!%p273_p2), %s5117_s28, 1  ;;  %v6153_v1 = vld [vmem:[%s7570_s2 + $0x8] sm:$0xff] (!%p273_p2)   ;;  %vm387_vm0 = vcmask (!%p273_p2), 523264   ;;  %v6154_v2 = vld [vmem:[%s7570_s2 + $0x10] sm:$0xff] (!%p273_p2)   ;;  %vm572_vm1 = vcmask (!%p273_p2), 519168  }
   0x6   : > { %276 = sbr.rel (%p273_p2) target bundleno = 848 (0x350), region = 52  ;;  %5740 = vmatprep.subr.bf16.mxu0 (!%p273_p2), %v6152_v0  ;;  %v6155_v4 = vld [vmem:[%s7570_s2 + $0x18] sm:$0xff] (!%p273_p2)   ;;  %vm574_vm2 = vcmask (!%p273_p2), 516096   ;;  %vm577_vm3 = vsmask.f32 (!%p273_p2), 7938  ;;  %v6282_v26 = vmov (!%p273_p2), 0  }
   0x7   : > { %5741 = vmatpush3.bf16.msra.mxu0 (!%p273_p2), %v6152_v0  ;;  %vm6365_vm4 = vmand (!%p273_p2), %vm572_vm1, %vm577_vm3  ;;  %vm788_vm5 = vsmask.f32 (!%p273_p2), 256  ;;  %v848_v9 = vld [vmem:[#allocation2 + $0x68] sm:$0x1] (!%p273_p2)  ;;  %v842_v12 = vld [vmem:[#allocation2 + $0x58] sm:$0x1] (!%p273_p2) }
   0x8   : > { %5742 = vmatprep.subr.bf16.mxu0 (!%p273_p2), %v6153_v1  ;;  %vm6370_vm6 = vmand (!%p273_p2), %vm574_vm2, %vm788_vm5  ;;  %v851_v14 = vld [vmem:[#allocation2 + $0x70] sm:$0x1] (!%p273_p2)  ;;  %v845_v15 = vld [vmem:[#allocation2 + $0x60] sm:$0x1] (!%p273_p2)  ;;  %836 = vst.msk [vmem:[#allocation2 + $0x98] sm:$0xf] (!%p273_p2), %vm572_vm1, %v6282_v26 }
   0x9   : > { %v849_v11 = vsel (!%p273_p2), %vm6370_vm6, 0, %v848_v9  ;;  %v843_v13 = vsel (!%p273_p2), %vm6370_vm6, 0, %v842_v12  ;;  %v852_v16 = vsel (!%p273_p2), %vm6370_vm6, 0, %v851_v14  ;;  %v846_v17 = vsel (!%p273_p2), %vm6370_vm6, 0, %v845_v15  ;;  %v860_v18 = vld [vmem:[#allocation2 + $0x88] sm:$0x1] (!%p273_p2)  ;;  %vm6414_vm7 = vmand (!%p273_p2), %vm574_vm2, %vm577_vm3 }
   0xa   : > { %850 = vst [vmem:[#allocation2 + $0x68] sm:$0x1] (!%p273_p2), %v849_v11  ;;  %844 = vst [vmem:[#allocation2 + $0x58] sm:$0x1] (!%p273_p2), %v843_v13  ;;  %v861_v19 = vsel (!%p273_p2), %vm6370_vm6, 0, %v860_v18  ;;  %v6160_v28 = vld [vmem:[%s7573_s5 + $0xe0] sm:$0xff] (!%p273_p2)  }
   0xb   : > { %5743 = vmatpush3.bf16.msra.mxu0 (!%p273_p2), %v6153_v1  ;;  %853 = vst [vmem:[#allocation2 + $0x70] sm:$0x1] (!%p273_p2), %v852_v16  ;;  %847 = vst [vmem:[#allocation2 + $0x60] sm:$0x1] (!%p273_p2), %v846_v17  ;;  %v857_v20 = vld [vmem:[#allocation2 + $0x80] sm:$0x1] (!%p273_p2)  ;;  %5868 = vmatprep.subr.bf16.mxu1 (!%p273_p2), %v6160_v28 }
   0xc   : > { %5744 = vmatprep.subr.bf16.mxu0 (!%p273_p2), %v6154_v2  ;;  %862 = vst [vmem:[#allocation2 + $0x88] sm:$0x1] (!%p273_p2), %v861_v19  ;;  %v858_v21 = vsel (!%p273_p2), %vm6370_vm6, 0, %v857_v20  ;;  %v854_v22 = vld [vmem:[#allocation2 + $0x78] sm:$0x1] (!%p273_p2)  ;;  %v6161_v29 = vld [vmem:[%s7573_s5 + $0xe8] sm:$0xff] (!%p273_p2)   ;;  %5869 = vmatpush3.bf16.msra.mxu1 (!%p273_p2), %v6160_v28 }
   0xd   : > { %s7588_s28 = smov (!%p311_p3, %s5117_s28), 1  ;;  %859 = vst [vmem:[#allocation2 + $0x80] sm:$0x1] %v858_v21  ;;  %v855_v23 = vsel %vm6370_vm6, 0, %v854_v22  ;;  %v863_v24 = vld [vmem:[#allocation2 + $0x90] sm:$0x1]  ;;  %5870 = vmatprep.subr.bf16.mxu1 %v6161_v29 }
   0xe   : > { %s5562_s13 = sshll.u32 %s7588_s28, 5  ;;  %856 = vst [vmem:[#allocation2 + $0x78] sm:$0x1] %v855_v23  ;;  %v864_v25 = vsel %vm6370_vm6, 0, %v863_v24  ;;  %837 = vst.msk [vmem:[#allocation2 + $0x9c] sm:$0x1] %vm574_vm2, %v6282_v26 }
   0xf   : > { %s315_s16 = scalar_lea.vmem %s7568_s0, %s5562_s13  ;;  %5745 = vmatpush3.bf16.msra.mxu0 %v6154_v2  ;;  %573 = vst.msk [vmem:[#allocation2 + $0x48] sm:$0xf] %vm572_vm1, %v6282_v26  ;;  %1056 = vst.msk [vmem:[#allocation2 + $0xa0] sm:$0xf] %vm572_vm1, %v6282_v26  ;;  %v866_v27 = vld [vmem:[#allocation2 + $0x98] sm:$0x1] }
  0x10   : > { %v6156_v3 = vld [vmem:[%s315_s16] sm:$0xff]   ;;  %5746 = vmatprep.subr.bf16.mxu0 %v6155_v4  ;;  %v6157_v5 = vld [vmem:[%s315_s16 + $0x8] sm:$0xff]   ;;  %v6158_v6 = vld [vmem:[%s315_s16 + $0x10] sm:$0xff]   ;;  %575 = vst.msk [vmem:[#allocation2 + $0x4c] sm:$0x1] %vm574_vm2, %v6282_v26  ;;  %v867_v30 = vsel %vm6370_vm6, 0, %v866_v27  ;;  %5871 = vmatpush3.bf16.msra.mxu1 %v6161_v29 }
  0x11   : > { %5748 = vmatprep.mubr.msk.bf16.mxu0 %vm387_vm0, %v6156_v3  ;;  %v6159_v7 = vld [vmem:[%s315_s16 + $0x18] sm:$0xff]   ;;  %1057 = vst.msk [vmem:[#allocation2 + $0xa4] sm:$0x1] %vm574_vm2, %v6282_v26  ;;  %1292 = vst.msk [vmem:[#allocation2 + $0xf4] sm:$0x1] %vm574_vm2, %v6282_v26  ;;  %v6162_v31 = vld [vmem:[%s7573_s5 + $0xf0] sm:$0xff]  }
  0x12   : > { %1291 = vst.msk [vmem:[#allocation2 + $0xf0] sm:$0xf] %vm572_vm1, %v6282_v26  ;;  %865 = vst [vmem:[#allocation2 + $0x90] sm:$0x1] %v864_v25  ;;  %5872 = vmatprep.subr.bf16.mxu1 %v6162_v31  ;;  %v6163_v32 = vld [vmem:[%s7573_s5 + $0xf8] sm:$0xff]   ;;  %s5563_s11 = sshll.u32 %s7588_s28, 7 }
  0x13   : > { %5747 = vmatpush3.bf16.msra.mxu0 %v6155_v4  ;;  %868 = vst [vmem:[#allocation2 + $0x98] sm:$0x1] %v867_v30  ;;  %v1067_v34 = vld [vmem:[#allocation2 + $0xbc] sm:$0x1]  ;;  %v5140_v36 = vld [vmem:[%s7571_s3] ss:$0 sm:$0xff]  ;;  %s6472_s15 = scalar_lea.vmem %s7569_s1, %s5563_s11 }
  0x14   : > { %5873 = vmatpush3.bf16.msra.mxu1 %v6162_v31  ;;  %v1068_v35 = vsel %vm6414_vm7, 0, %v1067_v34  ;;  %v5141_v38 = vld [vmem:[%s7572_s4] ss:$0 sm:$0xff]  ;;  %vm653_vm8 = vcmask 261120   ;;  %s6283_s16 = smov 96   ;;  %s6284_s17 = smov 32  }
  0x15   : > { %5874 = vmatprep.subr.bf16.mxu1 %v6163_v32  ;;  %1069 = vst [vmem:[#allocation2 + $0xbc] sm:$0x1] %v1068_v35  ;;  %vm1541_vm9 = vsmask.f32 3328  ;;  %vm1542_vm10 = vsmask.f32 7440 }
  0x16   : > { %5749 = vmatmul.mubr.msk.bf16.vlgmr.msra.gmra.mrb[0].mxu0 %vm387_vm0, %v6157_v5  ;;  %s6285_s20 = smov 64   ;;  %vm6625_vm11 = vmor %vm1541_vm9, %vm1542_vm10  ;;  %vm1688_vm12 = vcmask 1042432   ;;  %vm1689_vm13 = vcmask 1046532   ;;  %v7024_v8 = vld [vmem:[%s7573_s5 + $0x140] sm:$0xff]  }
  0x17   : > { %5752 = vmatprep.mubr.msk.bf16.mxu0 %vm387_vm0, %v6158_v6  ;;  %vm6765_vm14 = vmor %vm1688_vm12, %vm1689_vm13  ;;  %v7375_v33 = vld [vmem:[%s7573_s5 + $0x1c0] sm:$0xff]  }
  0x18   : > { %5875 = vmatpush3.bf16.msra.mxu1 %v6163_v32 }
  0x1e   : > { %5753 = vmatmul.mubr.msk.bf16.gmra.mrb[4].mxu0 %vm387_vm0, %v6159_v7 }
  0xe9   : > { %v5750_v37 = vpop.f32.mrb[0].mxu0 }
  0xea   : > { %v474_v39 = vmul.f32 %v5750_v37, %v5140_v36  ;;  %v434_v40 = vpop.f32.mrb[1].mxu0 }
  0xeb   : > { %v472_v41 = vmul.f32 %v5140_v36, %v434_v40  ;;  %v5751_v42 = vpop.f32.mrb[2].mxu0 }
  0xec   : > { %v6426_v43 = vadd.f32 %v5141_v38, %v474_v39  ;;  %v475_v44 = vmul.f32 %v5751_v42, %v5140_v36  ;;  %v437_v45 = vpop.f32.mrb[3].mxu0 }
  0xed   : > { %v6428_v46 = vadd.f32 %v5141_v38, %v472_v41  ;;  %v473_v47 = vmul.f32 %v5140_v36, %v437_v45 }
  0xee   : > { %v505_v48 = vmul.f32 %v6426_v43, %v6426_v43  ;;  %v6432_v49 = vadd.f32 %v5141_v38, %v475_v44  ;;  %v497_v42 = vmul.f32 0.5, %v6426_v43 }
  0xef   : > { %v503_v50 = vmul.f32 %v6428_v46, %v6428_v46  ;;  %v6436_v51 = vadd.f32 %v5141_v38, %v473_v47 }
  0xf0   : > { %v513_v52 = vmul.f32 %v505_v48, %v6426_v43  ;;  %v506_v53 = vmul.f32 %v6432_v49, %v6432_v49  ;;  %v495_v48 = vmul.f32 0.5, %v6428_v46 }
  0xf1   : > { %v511_v54 = vmul.f32 %v503_v50, %v6428_v46  ;;  %v504_v55 = vmul.f32 %v6436_v51, %v6436_v51  ;;  %v5754_v56 = vpop.f32.mrb[4].mxu0 }
  0xf2   : > { %v521_v57 = vmul.f32 0.044715, %v513_v52  ;;  %v514_v58 = vmul.f32 %v506_v53, %v6432_v49  ;;  %v478_v59 = vmul.f32 %v5754_v56, %v5140_v36  ;;  %v450_v60 = vpop.f32.mrb[5].mxu0 }
  0xf3   : > { %v519_v61 = vmul.f32 0.044715, %v511_v54  ;;  %v512_v62 = vmul.f32 %v504_v55, %v6436_v51  ;;  %v476_v63 = vmul.f32 %v5140_v36, %v450_v60  ;;  %v5755_v0 = vpop.f32.mrb[6].mxu0  ;;  %v5160_v54 = vld [vmem:[%s6472_s15 + $0x28] sm:$0xf]  ;;  %v498_v55 = vmul.f32 0.5, %v6432_v49 }
  0xf4   : > { %v529_v1 = vadd.f32 %v521_v57, %v6426_v43  ;;  %v522_v2 = vmul.f32 0.044715, %v514_v58  ;;  %v6447_v3 = vadd.f32 %v5141_v38, %v478_v59  ;;  %v479_v4 = vmul.f32 %v5755_v0, %v5140_v36  ;;  %v453_v5 = vpop.f32.mrb[7].mxu0  ;;  %v1061_v60 = vld [vmem:[#allocation2 + $0xac] sm:$0x1] }
  0xf5   : > { %v527_v6 = vadd.f32 %v519_v61, %v6428_v46  ;;  %v520_v7 = vmul.f32 0.044715, %v512_v62  ;;  %v6450_v9 = vadd.f32 %v5141_v38, %v476_v63  ;;  %v477_v11 = vmul.f32 %v5140_v36, %v453_v5  ;;  %v5158_v46 = vld [vmem:[%s6472_s15 + $0x20] sm:$0xf]  ;;  %v582_v0 = vld [vmem:[#allocation2 + $0xc] sm:$0x1] }
  0xf6   : > { %v537_v12 = vmul.f32 0.7978846, %v529_v1  ;;  %v530_v13 = vadd.f32 %v522_v2, %v6432_v49  ;;  %v509_v14 = vmul.f32 %v6447_v3, %v6447_v3  ;;  %v6455_v15 = vadd.f32 %v5141_v38, %v479_v4  ;;  %v5161_v2 = vld [vmem:[%s6472_s15 + $0x2c] sm:$0xf]  ;;  %v5159_v5 = vld [vmem:[%s6472_s15 + $0x24] sm:$0xf] }
  0xf7   : > { %v535_v16 = vmul.f32 0.7978846, %v527_v6  ;;  %v528_v17 = vadd.f32 %v520_v7, %v6436_v51  ;;  %v507_v18 = vmul.f32 %v6450_v9, %v6450_v9  ;;  %v492_v19 = vadd.f32 %v5141_v38, %v477_v11 }
  0xf8   : > { %6240 = vtanh.f32 %v537_v12  ;;  %v538_v20 = vmul.f32 0.7978846, %v530_v13  ;;  %v517_v21 = vmul.f32 %v509_v14, %v6447_v3  ;;  %v510_v22 = vmul.f32 %v6455_v15, %v6455_v15 }
  0xf9   : > { %6242 = vtanh.f32 %v535_v16  ;;  %v536_v23 = vmul.f32 0.7978846, %v528_v17  ;;  %v515_v24 = vmul.f32 %v507_v18, %v6450_v9  ;;  %v508_v25 = vmul.f32 %v492_v19, %v492_v19  ;;  %v1064_v18 = vld [vmem:[#allocation2 + $0xb4] sm:$0x1] }
  0xfa   : > { %6244 = vtanh.f32 %v538_v20  ;;  %v525_v26 = vmul.f32 0.044715, %v517_v21  ;;  %v518_v27 = vmul.f32 %v510_v22, %v6455_v15  ;;  %v496_v58 = vmul.f32 0.5, %v6436_v51 }
  0xfb   : > { %6246 = vtanh.f32 %v536_v23  ;;  %v523_v28 = vmul.f32 0.044715, %v515_v24  ;;  %v516_v29 = vmul.f32 %v508_v25, %v492_v19  ;;  %v500_v43 = vmul.f32 0.5, %v492_v19 }
  0xfc   : > { %v533_v30 = vadd.f32 %v525_v26, %v6447_v3  ;;  %v526_v31 = vmul.f32 0.044715, %v518_v27  ;;  %v1062_v63 = vsel %vm6414_vm7, 0, %v1061_v60  ;;  %v583_v51 = vsel %vm6414_vm7, 0, %v582_v0  ;;  %v1013_v60 = vld [vmem:[#allocation2 + $0x60] sm:$0xf] }
  0xfd   : > { %v524_v32 = vmul.f32 0.044715, %v516_v29  ;;  %v531_v35 = vadd.f32 %v523_v28, %v6450_v9  ;;  %1063 = vst [vmem:[#allocation2 + $0xac] sm:$0x1] %v1062_v63  ;;  %v501_v7 = vmul.f32 0.5, %v6447_v3  ;;  %v6498_v11 = vmul.f32 0.5, %v6450_v9 }
  0xfe   : > { %v541_v34 = vmul.f32 0.7978846, %v533_v30  ;;  %v534_v37 = vadd.f32 %v526_v31, %v6455_v15  ;;  %584 = vst [vmem:[#allocation2 + $0xc] sm:$0x1] %v583_v51  ;;  %v6507_v17 = vmul.f32 0.5, %v6455_v15  ;;  %v1065_v20 = vsel %vm6414_vm7, 0, %v1064_v18 }
  0xff   : > { %v532_v36 = vadd.f32 %v524_v32, %v492_v19  ;;  %v539_v41 = vmul.f32 0.7978846, %v531_v35  ;;  %1066 = vst [vmem:[#allocation2 + $0xb4] sm:$0x1] %v1065_v20  ;;  %v1022_v15 = vld [vmem:[#allocation2 + $0x6c] sm:$0x1] }
 0x100   : > { %6248 = vtanh.f32 %v541_v34  ;;  %v542_v47 = vmul.f32 0.7978846, %v534_v37  ;;  %v5164_v35 = vld [vmem:[%s6472_s15 + $0x38] sm:$0xf]  ;;  %v585_v18 = vld [vmem:[#allocation2 + $0x14] sm:$0x1] }
 0x101   : > { %v540_v38 = vmul.f32 0.7978846, %v532_v36  ;;  %v1019_v36 = vld [vmem:[#allocation2 + $0x68] sm:$0xf] }
 0x102   : > { %v6241_v39 = vpop.eup %6240 }
 0x103   : > { %v6243_v40 = vpop.eup %6242  ;;  %6250 = vtanh.f32 %v540_v38  ;;  %v553_v44 = vadd.f32 1.0, %v6241_v39 }
 0x104   : > { %v6245_v45 = vpop.eup %6244  ;;  %v551_v50 = vadd.f32 1.0, %v6243_v40  ;;  %6252 = vtanh.f32 %v539_v41 }
 0x105   : > { %v6247_v52 = vpop.eup %6246  ;;  %v561_v53 = vmul.f32 %v553_v44, %v497_v42  ;;  %v554_v56 = vadd.f32 1.0, %v6245_v45  ;;  %6254 = vtanh.f32 %v542_v47  ;;  %v1007_v44 = vld [vmem:[#allocation2 + $0x58] sm:$0xf]  ;;  %v1010_v45 = vld [vmem:[#allocation2 + $0x5c] sm:$0x1] }
 0x106   : > { %v559_v57 = vmul.f32 %v551_v50, %v495_v48  ;;  %v552_v59 = vadd.f32 1.0, %v6247_v52 }
 0x107   : > { %v6479_v61 = vpack.c.bf16 %v561_v53, %v561_v53  ;;  %v562_v62 = vmul.f32 %v554_v56, %v498_v55  ;;  %v1025_v55 = vld [vmem:[#allocation2 + $0x70] sm:$0xf]  ;;  %v1028_v56 = vld [vmem:[#allocation2 + $0x74] sm:$0x1] }
 0x108   : > { %v6484_v49 = vpack.c.bf16 %v559_v57, %v559_v57  ;;  %v560_v1 = vmul.f32 %v552_v59, %v496_v58 }
 0x109   : > { %1101 = vrot.lane.b32.xlu1 %v6479_v61, %s6283_s16  ;;  %v886_v4 = vsel %vm653_vm8, %v5160_v54, %v6479_v61  ;;  %v6494_v6 = vpack.c.bf16 %v562_v62, %v562_v62 }
 0x10a   : > { %v6249_v12 = vpop.eup %6248  ;;  %v5168_v13 = vcombine.low %v886_v4, %v886_v4  ;;  %1097 = vrot.lane.b32.xlu0 %v6484_v49, %s6283_s16  ;;  %v880_v14 = vsel %vm653_vm8, %v5158_v46, %v6484_v49  ;;  %v6504_v16 = vpack.c.bf16 %v560_v1, %v560_v1  ;;  %v1016_v46 = vld [vmem:[#allocation2 + $0x64] sm:$0x1]  ;;  %v5163_v4 = vld [vmem:[%s6472_s15 + $0x34] sm:$0xf] }
 0x10b   : > { %v5166_v19 = vcombine.low %v880_v14, %v880_v14  ;;  %v889_v3 = vsel %vm653_vm8, %v5161_v2, %v6494_v6  ;;  %v557_v9 = vadd.f32 1.0, %v6249_v12 }
 0x10c   : > { %v943_v21 = vshrl.u32 %v5168_v13, 16  ;;  %v946_v22 = vshll.u32 %v5168_v13, 16  ;;  %v883_v23 = vsel %vm653_vm8, %v5159_v5, %v6504_v16  ;;  %v5169_v24 = vcombine.low %v889_v3, %v889_v3  ;;  %v1070_v5 = vld [vmem:[#allocation2 + $0xc4] sm:$0x1] }
 0x10d   : > { %v6251_v25 = vpop.eup %6250  ;;  %v927_v26 = vshrl.u32 %v5166_v19, 16  ;;  %v930_v27 = vshll.u32 %v5166_v19, 16  ;;  %637 = vrot.lane.b32.xlu1 %v6484_v49, %s6284_s17  ;;  %v5167_v28 = vcombine.low %v883_v23, %v883_v23  ;;  %v565_v29 = vmul.f32 %v557_v9, %v501_v7  ;;  %v1076_v19 = vld [vmem:[#allocation2 + $0xd4] sm:$0x1]  ;;  %v588_v23 = vld [vmem:[#allocation2 + $0x1c] sm:$0x1] }
 0x10e   : > { %v945_v30 = vrot.slane %v943_v21, 7  ;;  %1099 = vrot.lane.b32.xlu0 %v6504_v16, %s6283_s16  ;;  %v951_v31 = vshrl.u32 %v5169_v24, 16  ;;  %v954_v32 = vshll.u32 %v5169_v24, 16  ;;  %v556_v34 = vadd.f32 1.0, %v6251_v25  ;;  %v6253_v50 = vpop.eup %6252 }
 0x10f   : > { %v929_v37 = vrot.slane %v927_v26, 7  ;;  %v935_v38 = vshrl.u32 %v5167_v28, 16  ;;  %v938_v39 = vshll.u32 %v5167_v28, 16  ;;  %v6520_v40 = vpack.c.bf16 %v565_v29, %v565_v29  ;;  %v6255_v58 = vpop.eup %6254  ;;  %v6553_v26 = vld [vmem:[#allocation2 + $0x98] sm:$0xf]  ;;  %v6560_v28 = vld [vmem:[%s7573_s5 + $0x100] sm:$0xff]  }
 0x110   : > { %v948_v41 = vor.u32 %v946_v22, %v945_v30  ;;  %v949_v42 = vrot.slane %v945_v30, 4  ;;  %v953_v47 = vrot.slane %v951_v31, 7  ;;  %v564_v48 = vmul.f32 %v556_v34, %v500_v43  ;;  %v1079_v22 = vld [vmem:[#allocation2 + $0xdc] sm:$0x1]  ;;  %v5162_v31 = vld [vmem:[%s6472_s15 + $0x30] sm:$0xf]  ;;  %5884 = vmatprep.subr.bf16.mxu1 %v6560_v28 }
 0x111   : > { %v932_v52 = vor.u32 %v930_v27, %v929_v37  ;;  %v933_v53 = vrot.slane %v929_v37, 4  ;;  %v937_v54 = vrot.slane %v935_v38, 7  ;;  %1103 = vrot.lane.b32.xlu1 %v6494_v6, %s6283_s16  ;;  %v898_v57 = vsel %vm653_vm8, %v5164_v35, %v6520_v40  ;;  %v1073_v35 = vld [vmem:[#allocation2 + $0xcc] sm:$0x1]  ;;  %v5165_v37 = vld [vmem:[%s6472_s15 + $0x3c] sm:$0xf] }
 0x112   : > { %v1020_v59 = vsel %vm6365_vm4, %v948_v41, %v1019_v36  ;;  %v1023_v43 = vsel %vm6370_vm6, %v949_v42, %v1022_v15  ;;  %v956_v62 = vor.u32 %v954_v32, %v953_v47  ;;  %v957_v63 = vrot.slane %v953_v47, 4  ;;  %639 = vrot.lane.b32.xlu0 %v6504_v16, %s6284_s17  ;;  %v1043_v41 = vld [vmem:[#allocation2 + $0x88] sm:$0xf]  ;;  %v1046_v42 = vld [vmem:[#allocation2 + $0x8c] sm:$0x1] }
 0x113   : > { %1021 = vst [vmem:[#allocation2 + $0x68] sm:$0xf] %v1020_v59  ;;  %1024 = vst [vmem:[#allocation2 + $0x6c] sm:$0x1] %v1023_v43  ;;  %v1008_v0 = vsel %vm6365_vm4, %v932_v52, %v1007_v44  ;;  %v1011_v1 = vsel %vm6370_vm6, %v933_v53, %v1010_v45  ;;  %v940_v2 = vor.u32 %v938_v39, %v937_v54  ;;  %v941_v51 = vrot.slane %v937_v54, 4 }
 0x114   : > { %1009 = vst [vmem:[#allocation2 + $0x58] sm:$0xf] %v1008_v0  ;;  %1012 = vst [vmem:[#allocation2 + $0x5c] sm:$0x1] %v1011_v1  ;;  %v1026_v7 = vsel %vm6365_vm4, %v956_v62, %v1025_v55  ;;  %v1029_v12 = vsel %vm6370_vm6, %v957_v63, %v1028_v56  ;;  %v6541_v13 = vpack.c.bf16 %v564_v48, %v564_v48  ;;  %v555_v20 = vadd.f32 1.0, %v6253_v50 }
 0x115   : > { %v5172_v14 = vcombine.low %v898_v57, %v898_v57  ;;  %v1014_v3 = vsel %vm6365_vm4, %v940_v2, %v1013_v60  ;;  %v1017_v9 = vsel %vm6370_vm6, %v941_v51, %v1016_v46  ;;  %1027 = vst [vmem:[#allocation2 + $0x70] sm:$0xf] %v1026_v7  ;;  %1030 = vst [vmem:[#allocation2 + $0x74] sm:$0x1] %v1029_v12  ;;  %v558_v21 = vadd.f32 1.0, %v6255_v58 }
 0x116   : > { %1015 = vst [vmem:[#allocation2 + $0x60] sm:$0xf] %v1014_v3  ;;  %1018 = vst [vmem:[#allocation2 + $0x64] sm:$0x1] %v1017_v9  ;;  %1107 = vrot.lane.b32.xlu1 %v6541_v13, %s6283_s16  ;;  %v895_v24 = vsel %vm653_vm8, %v5163_v4, %v6541_v13  ;;  %1109 = vrot.lane.b32.xlu0 %v6520_v40, %s6283_s16  ;;  %v1071_v27 = vsel %vm6414_vm7, 0, %v1070_v5  ;;  %v563_v30 = vmul.f32 %v555_v20, %v6498_v11 }
 0x117   : > { %v975_v25 = vshrl.u32 %v5172_v14, 16  ;;  %v978_v15 = vshll.u32 %v5172_v14, 16  ;;  %v5171_v29 = vcombine.low %v895_v24, %v895_v24  ;;  %v566_v32 = vmul.f32 %v558_v21, %v6507_v17  ;;  %1072 = vst [vmem:[#allocation2 + $0xc4] sm:$0x1] %v1071_v27  ;;  %v1037_v59 = vld [vmem:[#allocation2 + $0x80] sm:$0xf] }
 0x118   : > { %v586_v34 = vsel %vm6414_vm7, 0, %v585_v18  ;;  %v1077_v38 = vsel %vm6414_vm7, 0, %v1076_v19  ;;  %v1080_v39 = vsel %vm6414_vm7, 0, %v1079_v22  ;;  %v589_v11 = vsel %vm6414_vm7, 0, %v588_v23  ;;  %v1040_v43 = vld [vmem:[#allocation2 + $0x84] sm:$0x1] }
 0x119   : > { %v977_v36 = vrot.slane %v975_v25, 7  ;;  %587 = vst [vmem:[#allocation2 + $0x14] sm:$0x1] %v586_v34  ;;  %v967_v17 = vshrl.u32 %v5171_v29, 16  ;;  %v6575_v44 = vpack.c.bf16 %v563_v30, %v563_v30  ;;  %v6577_v45 = vpack.c.bf16 %v566_v32, %v566_v32  ;;  %1078 = vst [vmem:[#allocation2 + $0xd4] sm:$0x1] %v1077_v38 }
 0x11a   : > { %v3069_v47 = vshrl.u32 %v6553_v26, 16  ;;  %1081 = vst [vmem:[#allocation2 + $0xdc] sm:$0x1] %v1080_v39  ;;  %590 = vst [vmem:[#allocation2 + $0x1c] sm:$0x1] %v589_v11  ;;  %v970_v48 = vshll.u32 %v5171_v29, 16  ;;  %641 = vrot.lane.b32.xlu1 %v6479_v61, %s6284_s17 }
 0x11b   : > { %v980_v50 = vor.u32 %v978_v15, %v977_v36  ;;  %v981_v52 = vrot.slane %v977_v36, 4  ;;  %v2956_v53 = vld [vmem:[#allocation2 + $0x68] sm:$0xf]  ;;  %v1074_v54 = vsel %vm6414_vm7, 0, %v1073_v35  ;;  %v969_v55 = vrot.slane %v967_v17, 7  ;;  %1105 = vrot.lane.b32.xlu0 %v6575_v44, %s6283_s16 }
 0x11c   : > { %v892_v56 = vsel %vm653_vm8, %v5162_v31, %v6575_v44  ;;  %v901_v57 = vsel %vm653_vm8, %v5165_v37, %v6577_v45  ;;  %v2985_v58 = vshrl.u32 %v2956_v53, 16  ;;  %1075 = vst [vmem:[#allocation2 + $0xcc] sm:$0x1] %v1074_v54  ;;  %v2957_v51 = vld [vmem:[#allocation2 + $0x6c] sm:$0x1]  ;;  %v3072_v4 = vshll.u32 %v6553_v26, 16 }
 0x11d   : > { %v1044_v60 = vsel %vm6365_vm4, %v980_v50, %v1043_v41  ;;  %v1047_v46 = vsel %vm6370_vm6, %v981_v52, %v1046_v42  ;;  %v5170_v62 = vcombine.low %v892_v56, %v892_v56  ;;  %v5173_v63 = vcombine.low %v901_v57, %v901_v57  ;;  %v2954_v2 = vld [vmem:[#allocation2 + $0x60] sm:$0xf]  ;;  %v2955_v14 = vld [vmem:[#allocation2 + $0x64] sm:$0x1]  ;;  %v1031_v9 = vld [vmem:[#allocation2 + $0x78] sm:$0xf] }
 0x11e   : > { %v972_v0 = vor.u32 %v970_v48, %v969_v55  ;;  %v973_v1 = vrot.slane %v969_v55, 4  ;;  %1045 = vst [vmem:[#allocation2 + $0x88] sm:$0xf] %v1044_v60  ;;  %1048 = vst [vmem:[#allocation2 + $0x8c] sm:$0x1] %v1047_v46  ;;  %645 = vrot.lane.b32.xlu1 %v6575_v44, %s6284_s17  ;;  %v2987_v18 = vrot.slane %v2985_v58, 4 }
 0x11f   : > { %v959_v5 = vshrl.u32 %v5170_v62, 16  ;;  %v962_v7 = vshll.u32 %v5170_v62, 16  ;;  %v983_v12 = vshrl.u32 %v5173_v63, 16  ;;  %v1034_v20 = vld [vmem:[#allocation2 + $0x7c] sm:$0x1]  ;;  %643 = vrot.lane.b32.xlu0 %v6494_v6, %s6284_s17  ;;  %v2971_v22 = vshrl.u32 %v2954_v2, 16 }
 0x120   : > { %v1038_v19 = vsel %vm6365_vm4, %v972_v0, %v1037_v59  ;;  %v1041_v3 = vsel %vm6370_vm6, %v973_v1, %v1040_v43  ;;  %v1052_v21 = vld [vmem:[#allocation2 + $0x94] sm:$0x1]  ;;  %v2974_v23 = vshll.u32 %v2954_v2, 16  ;;  %v986_v15 = vshll.u32 %v5173_v63, 16  ;;  %v2958_v29 = vld [vmem:[#allocation2 + $0x70] sm:$0xf] }
 0x121   : > { %1039 = vst [vmem:[#allocation2 + $0x80] sm:$0xf] %v1038_v19  ;;  %1042 = vst [vmem:[#allocation2 + $0x84] sm:$0x1] %v1041_v3  ;;  %v961_v24 = vrot.slane %v959_v5, 7  ;;  %v985_v25 = vrot.slane %v983_v12, 7 }
 0x122   : > { %v2988_v27 = vshll.u32 %v2956_v53, 16  ;;  %v1049_v30 = vld [vmem:[#allocation2 + $0x90] sm:$0xf]  ;;  %v2973_v31 = vrot.slane %v2971_v22, 4  ;;  %v2976_v32 = vrot.slane %v2974_v23, 5  ;;  %v2980_v34 = vshll.u32 %v2955_v14, 16  ;;  %649 = vrot.lane.b32.xlu1 %v6520_v40, %s6284_s17 }
 0x123   : > { %v2994_v35 = vshll.u32 %v2957_v51, 16  ;;  %v964_v36 = vor.u32 %v962_v7, %v961_v24  ;;  %v965_v37 = vrot.slane %v961_v24, 4  ;;  %v988_v38 = vor.u32 %v986_v15, %v985_v25  ;;  %647 = vrot.lane.b32.xlu0 %v6541_v13, %s6284_s17  ;;  %v6619_v57 = vld [vmem:[#allocation2 + $0x9c] sm:$0x1]  ;;  %v2959_v43 = vld [vmem:[#allocation2 + $0x74] sm:$0x1] }
 0x124   : > { %v989_v39 = vrot.slane %v985_v25, 4  ;;  %v2977_v11 = vor.u32 %v2976_v32, %v2973_v31  ;;  %v2990_v17 = vrot.slane %v2988_v27, 5  ;;  %v2999_v41 = vshrl.u32 %v2958_v29, 16  ;;  %v594_v63 = vld [vmem:[#allocation2 + $0x2c] sm:$0x1]  ;;  %v6167_v23 = vld [vmem:[%s7573_s5 + $0x20] sm:$0xff]  }
 0x125   : > { %v6609_v42 = vrot.slane %v3069_v47, 4  ;;  %v1032_v48 = vsel %vm6365_vm4, %v964_v36, %v1031_v9  ;;  %v1035_v50 = vsel %vm6370_vm6, %v965_v37, %v1034_v20  ;;  %v1050_v52 = vsel %vm6365_vm4, %v988_v38, %v1049_v30  ;;  %v2964_v54 = vld [vmem:[#allocation2 + $0x88] sm:$0xf]  ;;  %v2965_v7 = vld [vmem:[#allocation2 + $0x8c] sm:$0x1]  ;;  %5756 = vmatprep.subr.bf16.mxu0 %v6167_v23 }
 0x126   : > { %v1053_v53 = vsel %vm6370_vm6, %v989_v39, %v1052_v21  ;;  %1033 = vst [vmem:[#allocation2 + $0x78] sm:$0xf] %v1032_v48  ;;  %1036 = vst [vmem:[#allocation2 + $0x7c] sm:$0x1] %v1035_v50  ;;  %v2978_v26 = vrot.slane %v2977_v11, 4  ;;  %v2982_v47 = vrot.slane %v2980_v34, 5  ;;  %v2991_v55 = vor.u32 %v2990_v17, %v2987_v18  ;;  %1332 = vrot.lane.b32.xlu1 %v6484_v49, %s6285_s20 }
 0x127   : > { %1051 = vst [vmem:[#allocation2 + $0x90] sm:$0xf] %v1050_v52  ;;  %1054 = vst [vmem:[#allocation2 + $0x94] sm:$0x1] %v1053_v53  ;;  %v3002_v56 = vshll.u32 %v2958_v29, 16  ;;  %v2996_v59 = vrot.slane %v2994_v35, 5  ;;  %651 = vrot.lane.b32.xlu0 %v6577_v45, %s6284_s17  ;;  %5757 = vmatpush3.bf16.msra.mxu0 %v6167_v23  ;;  %s325_s17 = scalar_lea.vmem %s7576_s8, %s5562_s13 }
 0x128   : > { %v3041_v60 = vshrl.u32 %v2964_v54, 16  ;;  %v3044_v46 = vshll.u32 %v2964_v54, 16  ;;  %v6629_v62 = vrot.slane %v3072_v4, 5  ;;  %v2983_v0 = vsel %vm6625_vm11, %v2978_v26, %v2982_v47  ;;  %v2962_v51 = vld [vmem:[#allocation2 + $0x80] sm:$0xf]  ;;  %v6169_v17 = vld [vmem:[%s7573_s5 + $0x28] sm:$0xff]  }
 0x129   : > { %v2992_v49 = vrot.slane %v2991_v55, 4  ;;  %v3001_v1 = vrot.slane %v2999_v41, 4  ;;  %v3004_v2 = vrot.slane %v3002_v56, 5  ;;  %v2963_v5 = vld [vmem:[#allocation2 + $0x84] sm:$0x1]  ;;  %v3027_v12 = vshrl.u32 %v2962_v51, 16  ;;  %5758 = vmatprep.subr.bf16.mxu0 %v6169_v17 }
 0x12a   : > { %v3030_v14 = vshll.u32 %v2962_v51, 16  ;;  %v3043_v4 = vrot.slane %v3041_v60, 4  ;;  %v3046_v19 = vrot.slane %v3044_v46, 5  ;;  %v3078_v3 = vshll.u32 %v6619_v57, 16  ;;  %1336 = vrot.lane.b32.xlu1 %v6479_v61, %s6285_s20  ;;  %v591_v34 = vld [vmem:[#allocation2 + $0x24] sm:$0x1] }
 0x12b   : > { %v2997_v18 = vsel %vm6625_vm11, %v2992_v49, %v2996_v59  ;;  %v3008_v20 = vshll.u32 %v2959_v43, 16  ;;  %v3029_v21 = vrot.slane %v3027_v12, 4  ;;  %1334 = vrot.lane.b32.xlu0 %v6504_v16, %s6285_s20  ;;  %v3005_v24 = vor.u32 %v3004_v2, %v3001_v1  ;;  %v600_v38 = vld [vmem:[#allocation2 + $0x3c] sm:$0x1]  ;;  %v597_v39 = vld [vmem:[#allocation2 + $0x34] sm:$0x1]  ;;  %5759 = vmatpush3.bf16.msra.mxu0 %v6169_v17 }
 0x12c   : > { %v5362_v9 = vcombine.low %v2983_v0, %v2997_v18  ;;  %v3032_v22 = vrot.slane %v3030_v14, 5  ;;  %v3036_v25 = vshll.u32 %v2963_v5, 16  ;;  %v3050_v15 = vshll.u32 %v2965_v7, 16  ;;  %v839_v11 = vld [vmem:[#allocation2 + $0x50] sm:$0x1]  ;;  %v6171_v57 = vld [vmem:[%s7573_s5 + $0x38] sm:$0xff]  }
 0x12d   : > { %v595_v27 = vsel %vm6414_vm7, 0, %v594_v63  ;;  %v2960_v29 = vld [vmem:[#allocation2 + $0x78] sm:$0xf]  ;;  %v2961_v61 = vld [vmem:[#allocation2 + $0x7c] sm:$0x1]  ;;  %v3047_v31 = vor.u32 %v3046_v19, %v3043_v4  ;;  %v3075_v16 = vor.u32 %v6629_v62, %v6609_v42  ;;  %v3010_v41 = vrot.slane %v3008_v20, 5 }
 0x12e   : > { %5876 = vmatprep.mubr.msk.bf16.mxu1 %vm387_vm0, %v5362_v9  ;;  %v3033_v30 = vor.u32 %v3032_v22, %v3029_v21  ;;  %v2966_v32 = vld [vmem:[#allocation2 + $0x90] sm:$0xf]  ;;  %596 = vst [vmem:[#allocation2 + $0x2c] sm:$0x1] %v595_v27  ;;  %v3013_v35 = vshrl.u32 %v2960_v29, 16  ;;  %v3016_v36 = vshll.u32 %v2960_v29, 16  ;;  %1340 = vrot.lane.b32.xlu1 %v6575_v44, %s6285_s20 }
 0x12f   : > { %v3022_v37 = vshll.u32 %v2961_v61, 16  ;;  %v3055_v50 = vshrl.u32 %v2966_v32, 16  ;;  %v3058_v52 = vshll.u32 %v2966_v32, 16  ;;  %v1320_v53 = vld [vmem:[#allocation2 + $0x138] sm:$0x1]  ;;  %1338 = vrot.lane.b32.xlu0 %v6494_v6, %s6285_s20  ;;  %v3006_v54 = vrot.slane %v3005_v24, 4 }
 0x130   : > { %v3034_v48 = vrot.slane %v3033_v30, 4  ;;  %v3015_v26 = vrot.slane %v3013_v35, 4  ;;  %v3018_v47 = vrot.slane %v3016_v36, 5  ;;  %v3038_v55 = vrot.slane %v3036_v25, 5  ;;  %v1296_v56 = vld [vmem:[#allocation2 + $0xf8] sm:$0x1] }
 0x131   : > { %v3048_v59 = vrot.slane %v3047_v31, 4  ;;  %v3052_v43 = vrot.slane %v3050_v15, 5  ;;  %v3057_v60 = vrot.slane %v3055_v50, 4  ;;  %v3060_v46 = vrot.slane %v3058_v52, 5  ;;  %v603_v63 = vld [vmem:[#allocation2 + $0x44] sm:$0x1] }
 0x132   : > { %v3019_v44 = vor.u32 %v3018_v47, %v3015_v26  ;;  %v3024_v0 = vrot.slane %v3022_v37, 5  ;;  %v3039_v49 = vsel %vm6625_vm11, %v3034_v48, %v3038_v55  ;;  %v2967_v1 = vld [vmem:[#allocation2 + $0x94] sm:$0x1]  ;;  %v592_v6 = vsel %vm6414_vm7, 0, %v591_v34  ;;  %v1058_v2 = vld [vmem:[#allocation2 + $0xa4] sm:$0x1]  ;;  %1344 = vrot.lane.b32.xlu1 %v6520_v40, %s6285_s20 }
 0x133   : > { %v3061_v51 = vor.u32 %v3060_v46, %v3057_v60  ;;  %593 = vst [vmem:[#allocation2 + $0x24] sm:$0x1] %v592_v6  ;;  %v601_v5 = vsel %vm6414_vm7, 0, %v600_v38  ;;  %v598_v7 = vsel %vm6414_vm7, 0, %v597_v39  ;;  %v840_v12 = vsel %vm6370_vm6, 0, %v839_v11  ;;  %1342 = vrot.lane.b32.xlu0 %v6541_v13, %s6285_s20  ;;  %v6165_v15 = vld [vmem:[%s7573_s5 + $0x108] sm:$0xff]  }
 0x134   : > { %v1302_v14 = vld [vmem:[#allocation2 + $0x108] sm:$0x1]  ;;  %v3020_v18 = vrot.slane %v3019_v44, 4  ;;  %602 = vst [vmem:[#allocation2 + $0x3c] sm:$0x1] %v601_v5  ;;  %v1321_v40 = vsel %vm6370_vm6, 0, %v1320_v53  ;;  %v3011_v9 = vsel %vm6625_vm11, %v3006_v54, %v3010_v41  ;;  %v3053_v20 = vsel %vm6625_vm11, %v3048_v59, %v3052_v43 }
 0x135   : > { %599 = vst [vmem:[#allocation2 + $0x34] sm:$0x1] %v598_v7  ;;  %841 = vst [vmem:[#allocation2 + $0x50] sm:$0x1] %v840_v12  ;;  %v1297_v4 = vsel %vm6370_vm6, 0, %v1296_v56  ;;  %v604_v19 = vsel %vm6414_vm7, 0, %v603_v63  ;;  %v5364_v22 = vcombine.low %v3039_v49, %v3053_v20 }
 0x136   : > { %1322 = vst [vmem:[#allocation2 + $0x138] sm:$0x1] %v1321_v40  ;;  %1298 = vst [vmem:[#allocation2 + $0xf8] sm:$0x1] %v1297_v4  ;;  %v1059_v13 = vsel %vm6414_vm7, 0, %v1058_v2  ;;  %v3025_v21 = vsel %vm6625_vm11, %v3020_v18, %v3024_v0  ;;  %v3064_v23 = vshll.u32 %v2967_v1, 16  ;;  %1346 = vrot.lane.b32.xlu1 %v6577_v45, %s6285_s20 }
 0x137   : > { %605 = vst [vmem:[#allocation2 + $0x44] sm:$0x1] %v604_v19  ;;  %1060 = vst [vmem:[#allocation2 + $0xa4] sm:$0x1] %v1059_v13  ;;  %v1303_v24 = vsel %vm6370_vm6, 0, %v1302_v14  ;;  %v5363_v25 = vcombine.low %v3011_v9, %v3025_v21  ;;  %1111 = vrot.lane.b32.xlu0 %v6577_v45, %s6283_s16  ;;  %v3062_v29 = vrot.slane %v3061_v51, 4 }
 0x138   : > { %1304 = vst [vmem:[#allocation2 + $0x108] sm:$0x1] %v1303_v24  ;;  %v1299_v27 = vld [vmem:[#allocation2 + $0x100] sm:$0x1]  ;;  %v3076_v61 = vrot.slane %v3075_v16, 4  ;;  %v3080_v30 = vrot.slane %v3078_v3, 5 }
 0x139   : > { %v1300_v31 = vsel %vm6370_vm6, 0, %v1299_v27  ;;  %5877 = vmatmul.mubr.msk.bf16.vlgmr.msra.gmra.mrb[0].mxu1 %vm387_vm0, %v5363_v25  ;;  %v6170_v32 = vld [vmem:[%s7573_s5 + $0x30] sm:$0xff]   ;;  %v1308_v34 = vld [vmem:[#allocation2 + $0x118] sm:$0x1]  ;;  %v3066_v45 = vrot.slane %v3064_v23, 5  ;;  %v6173_v41 = vld [vmem:[%s7573_s5] sm:$0xff]  }
 0x13a   : > { %1301 = vst [vmem:[#allocation2 + $0x100] sm:$0x1] %v1300_v31  ;;  %5880 = vmatprep.mubr.msk.bf16.mxu1 %vm387_vm0, %v5364_v22  ;;  %5885 = vmatpush3.bf16.msra.mxu1 %v6560_v28  ;;  %v1309_v42 = vsel %vm6370_vm6, 0, %v1308_v34  ;;  %v6166_v62 = vld [vmem:[%s7573_s5 + $0x110] sm:$0xff]   ;;  %v3081_v28 = vsel %vm6625_vm11, %v3076_v61, %v3080_v30  ;;  %v6168_v16 = vld [vmem:[%s7573_s5 + $0x118] sm:$0xff]   ;;  %v6172_v50 = vld [vmem:[%s7573_s5 + $0x120] sm:$0xff]  }
 0x13b   : > { %5886 = vmatprep.subr.bf16.mxu1 %v6165_v15  ;;  %5760 = vmatprep.subr.bf16.mxu0 %v6170_v32  ;;  %1310 = vst [vmem:[#allocation2 + $0x118] sm:$0x1] %v1309_v42  ;;  %v3067_v3 = vsel %vm6625_vm11, %v3062_v29, %v3066_v45  ;;  %v1305_v35 = vld [vmem:[#allocation2 + $0x110] sm:$0x1]  ;;  %v1314_v38 = vld [vmem:[#allocation2 + $0x128] sm:$0x1] }
 0x13c   : > { %5761 = vmatpush3.bf16.msra.mxu0 %v6170_v32  ;;  %v1306_v36 = vsel %vm6370_vm6, 0, %v1305_v35  ;;  %v5365_v37 = vcombine.low %v3067_v3, %v3081_v28  ;;  %v1315_v39 = vsel %vm6370_vm6, 0, %v1314_v38  ;;  %v1311_v11 = vld [vmem:[#allocation2 + $0x120] sm:$0x1]  ;;  %v1317_v48 = vld [vmem:[#allocation2 + $0x130] sm:$0x1] }
 0x13d   : > { %5762 = vmatprep.subr.bf16.mxu0 %v6171_v57  ;;  %1307 = vst [vmem:[#allocation2 + $0x110] sm:$0x1] %v1306_v36  ;;  %1316 = vst [vmem:[#allocation2 + $0x128] sm:$0x1] %v1315_v39  ;;  %v1312_v17 = vsel %vm6370_vm6, 0, %v1311_v11  ;;  %v1318_v52 = vsel %vm6370_vm6, 0, %v1317_v48 }
 0x13e   : > { %5887 = vmatpush3.bf16.msra.mxu1 %v6165_v15  ;;  %1313 = vst [vmem:[#allocation2 + $0x120] sm:$0x1] %v1312_v17  ;;  %v1082_v53 = vld [vmem:[#allocation2 + $0xe4] sm:$0x1]  ;;  %1319 = vst [vmem:[#allocation2 + $0x130] sm:$0x1] %v1318_v52 }
 0x13f   : > { %5888 = vmatprep.subr.bf16.mxu1 %v6166_v62  ;;  %v1083_v54 = vsel %vm6414_vm7, 0, %v1082_v53  ;;  %v3212_v26 = vld [vmem:[#allocation2 + $0xa0] sm:$0xf]  ;;  %v2104_v60 = vld [vmem:[#allocation2 + $0x58] sm:$0xf] }
 0x140   : > { %5763 = vmatpush3.bf16.msra.mxu0 %v6171_v57  ;;  %1084 = vst [vmem:[#allocation2 + $0xe4] sm:$0x1] %v1083_v54  ;;  %v3229_v47 = vshrl.u32 %v3212_v26, 16  ;;  %v3232_v55 = vshll.u32 %v3212_v26, 16  ;;  %v1293_v46 = vld [vmem:[#allocation2 + $0xf0] sm:$0x1] }
 0x141   : > { %5881 = vmatmul.mubr.msk.bf16.gmra.mrb[4].mxu1 %vm387_vm0, %v5365_v37  ;;  %5772 = vmatprep.subr.bf16.mxu0 %v6173_v41  ;;  %v1294_v44 = vsel %vm6370_vm6, 0, %v1293_v46  ;;  %v2105_v0 = vld [vmem:[#allocation2 + $0x5c] sm:$0x1]  ;;  %v2106_v49 = vld [vmem:[#allocation2 + $0x60] sm:$0xf]  ;;  %v2121_v2 = vshrl.u32 %v2104_v60, 16 }
 0x142   : > { %5889 = vmatpush3.bf16.msra.mxu1 %v6166_v62  ;;  %v3231_v56 = vrot.slane %v3229_v47, 4  ;;  %v3234_v59 = vrot.slane %v3232_v55, 5  ;;  %v579_v1 = vld [vmem:[#allocation2 + $0x4] sm:$0x1]  ;;  %v1085_v6 = vld [vmem:[#allocation2 + $0xec] sm:$0x1] }
 0x143   : > { %5890 = vmatprep.subr.bf16.mxu1 %v6168_v16  ;;  %1295 = vst [vmem:[#allocation2 + $0xf0] sm:$0x1] %v1294_v44  ;;  %v2124_v51 = vshll.u32 %v2104_v60, 16  ;;  %v580_v5 = vsel %vm6414_vm7, 0, %v579_v1  ;;  %v1086_v7 = vsel %vm6414_vm7, 0, %v1085_v6  ;;  %v2135_v40 = vshrl.u32 %v2106_v49, 16 }
 0x144   : > { %v3235_v43 = vor.u32 %v3234_v59, %v3231_v56  ;;  %v2110_v12 = vld [vmem:[#allocation2 + $0x70] sm:$0xf]  ;;  %v2114_v14 = vld [vmem:[#allocation2 + $0x80] sm:$0xf]  ;;  %v6747_v18 = vld [vmem:[#allocation2 + $0xa4] sm:$0x1] }
 0x145   : > { %581 = vst [vmem:[#allocation2 + $0x4] sm:$0x1] %v580_v5  ;;  %1087 = vst [vmem:[#allocation2 + $0xec] sm:$0x1] %v1086_v7  ;;  %v2138_v4 = vshll.u32 %v2106_v49, 16  ;;  %v3238_v9 = vshll.u32 %v6747_v18, 16 }
 0x146   : > { %5891 = vmatpush3.bf16.msra.mxu1 %v6168_v16  ;;  %v6739_v63 = vrot.slane %v3235_v43, 4  ;;  %v2118_v19 = vld [vmem:[#allocation2 + $0x90] sm:$0xf]  ;;  %v2130_v20 = vshll.u32 %v2105_v0, 16  ;;  %v2108_v13 = vld [vmem:[#allocation2 + $0x68] sm:$0xf] }
 0x147   : > { %5900 = vmatprep.subr.bf16.mxu1 %v6172_v50  ;;  %v2112_v21 = vld [vmem:[#allocation2 + $0x78] sm:$0xf]  ;;  %v2163_v22 = vshrl.u32 %v2110_v12, 16  ;;  %v2166_v23 = vshll.u32 %v2110_v12, 16  ;;  %v2191_v24 = vshrl.u32 %v2114_v14, 16  ;;  %v2194_v25 = vshll.u32 %v2114_v14, 16 }
 0x148   : > { %v2116_v15 = vld [vmem:[#allocation2 + $0x88] sm:$0xf]  ;;  %v2123_v27 = vrot.slane %v2121_v2, 4  ;;  %v2126_v29 = vrot.slane %v2124_v51, 5  ;;  %v2219_v61 = vshrl.u32 %v2118_v19, 16  ;;  %v2222_v30 = vshll.u32 %v2118_v19, 16 }
 0x149   : > { %v2107_v31 = vld [vmem:[#allocation2 + $0x64] sm:$0x1]  ;;  %v2137_v32 = vrot.slane %v2135_v40, 4  ;;  %v2140_v34 = vrot.slane %v2138_v4, 5  ;;  %v2149_v45 = vshrl.u32 %v2108_v13, 16  ;;  %v2152_v42 = vshll.u32 %v2108_v13, 16 }
 0x14a   : > { %v2177_v57 = vshrl.u32 %v2112_v21, 16  ;;  %v2180_v62 = vshll.u32 %v2112_v21, 16  ;;  %v2205_v3 = vshrl.u32 %v2116_v15, 16  ;;  %v2208_v28 = vshll.u32 %v2116_v15, 16  ;;  %v2109_v50 = vld [vmem:[#allocation2 + $0x6c] sm:$0x1] }
 0x14b   : > { %v2165_v35 = vrot.slane %v2163_v22, 4  ;;  %v2168_v36 = vrot.slane %v2166_v23, 5  ;;  %v2193_v37 = vrot.slane %v2191_v24, 4  ;;  %v2196_v16 = vrot.slane %v2194_v25, 5  ;;  %v2111_v52 = vld [vmem:[#allocation2 + $0x74] sm:$0x1] }
 0x14c   : > { %v3496_v38 = vrot.slane %v6747_v18, 5  ;;  %v2144_v39 = vshll.u32 %v2107_v31, 16  ;;  %v2221_v11 = vrot.slane %v2219_v61, 4  ;;  %v2224_v17 = vrot.slane %v2222_v30, 5  ;;  %v2115_v26 = vld [vmem:[#allocation2 + $0x84] sm:$0x1] }
 0x14d   : > { %v2127_v41 = vor.u32 %v2126_v29, %v2123_v27  ;;  %v2141_v48 = vor.u32 %v2140_v34, %v2137_v32  ;;  %v2151_v53 = vrot.slane %v2149_v45, 4  ;;  %v2154_v54 = vrot.slane %v2152_v42, 5  ;;  %v2119_v0 = vld [vmem:[#allocation2 + $0x94] sm:$0x1]  ;;  %v2113_v6 = vld [vmem:[#allocation2 + $0x7c] sm:$0x1] }
 0x14e   : > { %v2179_v47 = vrot.slane %v2177_v57, 4  ;;  %v2182_v55 = vrot.slane %v2180_v62, 5  ;;  %v2207_v56 = vrot.slane %v2205_v3, 4  ;;  %v2210_v59 = vrot.slane %v2208_v28, 5  ;;  %v2117_v2 = vld [vmem:[#allocation2 + $0x8c] sm:$0x1] }
 0x14f   : > { %v6751_v43 = vrot.slane %v3238_v9, 5  ;;  %v2132_v60 = vrot.slane %v2130_v20, 5  ;;  %v2169_v46 = vor.u32 %v2168_v36, %v2165_v35  ;;  %v2197_v44 = vor.u32 %v2196_v16, %v2193_v37  ;;  %v3470_v5 = vld [vmem:[#allocation2 + $0xa0] sm:$0xe]  ;;  %v5176_v29 = vld [vmem:[%s6472_s15 + $0x48] sm:$0xf] }
 0x150   : > { %v2146_v49 = vrot.slane %v2144_v39, 5  ;;  %v2158_v1 = vshll.u32 %v2109_v50, 16  ;;  %v2225_v51 = vor.u32 %v2224_v17, %v2221_v11  ;;  %v2128_v7 = vrot.slane %v2127_v41, 4  ;;  %v3802_v61 = vld [vmem:[#allocation2 + $0xf0] sm:$0xf]  ;;  %v6229_v42 = vld [vmem:[%s7573_s5 + $0xd8] sm:$0xff]  }
 0x151   : > { %v2142_v12 = vrot.slane %v2141_v48, 4  ;;  %v2172_v14 = vshll.u32 %v2111_v52, 16  ;;  %v2200_v40 = vshll.u32 %v2115_v26, 16  ;;  %v2155_v4 = vor.u32 %v2154_v54, %v2151_v53  ;;  %v5174_v45 = vld [vmem:[%s6472_s15 + $0x40] sm:$0xf] }
 0x152   : > { %v2183_v19 = vor.u32 %v2182_v55, %v2179_v47  ;;  %v2211_v13 = vor.u32 %v2210_v59, %v2207_v56  ;;  %v2228_v9 = vshll.u32 %v2119_v0, 16  ;;  %v2170_v20 = vrot.slane %v2169_v46, 4  ;;  %v621_v54 = vld [vmem:[%s6472_s15] sm:$0xf]  ;;  %v5175_v56 = vld [vmem:[%s6472_s15 + $0x44] sm:$0xf] }
 0x153   : > { %v2186_v21 = vshll.u32 %v2113_v6, 16  ;;  %v2198_v22 = vrot.slane %v2197_v44, 4  ;;  %v2214_v23 = vshll.u32 %v2117_v2, 16  ;;  %v3241_v24 = vsel %vm6625_vm11, %v6739_v63, %v6751_v43  ;;  %v6793_v18 = vld [vmem:[#allocation2 + $0xf4] sm:$0x1] }
 0x154   : > { %v5394_v25 = vrot.slane %v3470_v5, 9  ;;  %v2160_v15 = vrot.slane %v2158_v1, 5  ;;  %v2226_v27 = vrot.slane %v2225_v51, 4  ;;  %v2133_v30 = vsel %vm6625_vm11, %v2128_v7, %v2132_v60  ;;  %v1254_v6 = vld [vmem:[#allocation2 + $0xb8] sm:$0xf] }
 0x155   : > { %v2147_v31 = vsel %vm6625_vm11, %v2142_v12, %v2146_v49  ;;  %v2174_v32 = vrot.slane %v2172_v14, 5  ;;  %v2202_v34 = vrot.slane %v2200_v40, 5  ;;  %v2156_v57 = vrot.slane %v2155_v4, 4  ;;  %v1257_v14 = vld [vmem:[#allocation2 + $0xbc] sm:$0x1] }
 0x156   : > { %v2184_v62 = vrot.slane %v2183_v19, 4  ;;  %v2212_v3 = vrot.slane %v2211_v13, 4  ;;  %v2230_v28 = vrot.slane %v2228_v9, 5  ;;  %v2188_v37 = vrot.slane %v2186_v21, 5  ;;  %v1242_v19 = vld [vmem:[#allocation2 + $0xa8] sm:$0xf] }
 0x157   : > { %v2175_v36 = vsel %vm6625_vm11, %v2170_v20, %v2174_v32  ;;  %v2203_v16 = vsel %vm6625_vm11, %v2198_v22, %v2202_v34  ;;  %v2216_v39 = vrot.slane %v2214_v23, 5  ;;  %v3819_v41 = vshrl.u32 %v3802_v61, 16  ;;  %v5177_v23 = vld [vmem:[%s6472_s15 + $0x4c] sm:$0xf] }
 0x158   : > { %v3822_v48 = vshll.u32 %v3802_v61, 16  ;;  %v2231_v50 = vsel %vm6625_vm11, %v2226_v27, %v2230_v28  ;;  %v6782_v26 = vsel %vm6765_vm14, %v5394_v25, %v3496_v38  ;;  %v6784_v47 = vcombine.low %v2133_v30, %v2147_v31 }
 0x159   : > { %v2161_v59 = vsel %vm6625_vm11, %v2156_v57, %v2160_v15  ;;  %v2189_v60 = vsel %vm6625_vm11, %v2184_v62, %v2188_v37  ;;  %v2217_v46 = vsel %vm6625_vm11, %v2212_v3, %v2216_v39  ;;  %v6802_v7 = vrot.slane %v3819_v41, 4  ;;  %v622_v62 = vld [vmem:[%s6472_s15 + $0x4] sm:$0xf] }
 0x15a   : > { %v6795_v49 = vcombine.low %v2161_v59, %v2175_v36  ;;  %v6797_v38 = vcombine.low %v2189_v60, %v2203_v16  ;;  %v6799_v1 = vcombine.low %v2217_v46, %v2231_v50  ;;  %v6804_v12 = vrot.slane %v3822_v48, 5  ;;  %v785_v36 = vld [vmem:[#allocation2 + $0x8] sm:$0xf]  ;;  %v5179_v50 = vld [vmem:[%s6472_s15 + $0x54] sm:$0xf] }
 0x15b   : > { %v3828_v25 = vshll.u32 %v6793_v18, 16 }
 0x15c   : > { %v3825_v59 = vor.u32 %v6804_v12, %v6802_v7 }
 0x17b   : > { %v1102_v35 = vpop.permute.xlu1 %1101 }
 0x17c   : > { %v1121_v11 = vsel %vm653_vm8, %v5176_v29, %v1102_v35  ;;  %v1098_v17 = vpop.permute.xlu0 %1097  ;;  %v1245_v29 = vld [vmem:[#allocation2 + $0xac] sm:$0x1] }
 0x17d   : > { %v5184_v52 = vcombine.low %v1121_v11, %v1121_v11  ;;  %v1115_v53 = vsel %vm653_vm8, %v5174_v45, %v1098_v17  ;;  %v790_v17 = vld [vmem:[#allocation2 + $0xc] sm:$0x1] }
 0x17e   : > { %v5182_v55 = vcombine.low %v1115_v53, %v1115_v53 }
 0x17f   : > { %v1178_v44 = vshrl.u32 %v5184_v52, 16  ;;  %v638_v0 = vpop.permute.xlu1 %637  ;;  %v1181_v4 = vshll.u32 %v5184_v52, 16 }
 0x180   : > { %v1162_v2 = vshrl.u32 %v5182_v55, 16  ;;  %v656_v51 = vsel %vm653_vm8, %v621_v54, %v638_v0  ;;  %v1100_v5 = vpop.permute.xlu0 %1099  ;;  %v1165_v21 = vshll.u32 %v5182_v55, 16  ;;  %v1248_v54 = vld [vmem:[#allocation2 + $0xb0] sm:$0xf]  ;;  %v1251_v55 = vld [vmem:[#allocation2 + $0xb4] sm:$0x1] }
 0x181   : > { %v1180_v40 = vrot.slane %v1178_v44, 7  ;;  %v5150_v13 = vcombine.low %v656_v51, %v656_v51  ;;  %v1118_v9 = vsel %vm653_vm8, %v5175_v56, %v1100_v5 }
 0x182   : > { %v1164_v20 = vrot.slane %v1162_v2, 7  ;;  %v5183_v22 = vcombine.low %v1118_v9, %v1118_v9  ;;  %v623_v9 = vld [vmem:[%s6472_s15 + $0x8] sm:$0xf] }
 0x183   : > { %v1183_v15 = vor.u32 %v1181_v4, %v1180_v40  ;;  %v1184_v27 = vrot.slane %v1180_v40, 4  ;;  %v703_v61 = vshrl.u32 %v5150_v13, 16  ;;  %v706_v30 = vshll.u32 %v5150_v13, 16  ;;  %v1104_v31 = vpop.permute.xlu1 %1103  ;;  %v1260_v4 = vld [vmem:[#allocation2 + $0xc0] sm:$0xf] }
 0x184   : > { %v1167_v32 = vor.u32 %v1165_v21, %v1164_v20  ;;  %v1168_v34 = vrot.slane %v1164_v20, 4  ;;  %v1170_v45 = vshrl.u32 %v5183_v22, 16  ;;  %v1173_v57 = vshll.u32 %v5183_v22, 16  ;;  %v640_v3 = vpop.permute.xlu0 %639  ;;  %v1263_v20 = vld [vmem:[#allocation2 + $0xc4] sm:$0x1] }
 0x185   : > { %v1255_v28 = vsel %vm6365_vm4, %v1183_v15, %v1254_v6  ;;  %v1258_v35 = vsel %vm6370_vm6, %v1184_v27, %v1257_v14  ;;  %v705_v37 = vrot.slane %v703_v61, 7  ;;  %v1124_v16 = vsel %vm653_vm8, %v5177_v23, %v1104_v31  ;;  %v5180_v6 = vld [vmem:[%s6472_s15 + $0x58] sm:$0xf]  ;;  %v793_v61 = vld [vmem:[#allocation2 + $0x10] sm:$0xf] }
 0x186   : > { %1256 = vst [vmem:[#allocation2 + $0xb8] sm:$0xf] %v1255_v28  ;;  %1259 = vst [vmem:[#allocation2 + $0xbc] sm:$0x1] %v1258_v35  ;;  %v1243_v39 = vsel %vm6365_vm4, %v1167_v32, %v1242_v19  ;;  %v1246_v11 = vsel %vm6370_vm6, %v1168_v34, %v1245_v29  ;;  %v1172_v41 = vrot.slane %v1170_v45, 7  ;;  %v5185_v48 = vcombine.low %v1124_v16, %v1124_v16 }
 0x187   : > { %1244 = vst [vmem:[#allocation2 + $0xa8] sm:$0xf] %v1243_v39  ;;  %1247 = vst [vmem:[#allocation2 + $0xac] sm:$0x1] %v1246_v11  ;;  %v708_v52 = vor.u32 %v706_v30, %v705_v37  ;;  %v709_v53 = vrot.slane %v705_v37, 4  ;;  %v659_v56 = vsel %vm653_vm8, %v622_v62, %v640_v3  ;;  %v6835_v23 = vrot.slane %v3825_v59, 4 }
 0x188   : > { %v1175_v60 = vor.u32 %v1173_v57, %v1172_v41  ;;  %v1176_v46 = vrot.slane %v1172_v41, 4  ;;  %v1186_v44 = vshrl.u32 %v5185_v48, 16  ;;  %v1189_v0 = vshll.u32 %v5185_v48, 16  ;;  %v1108_v18 = vpop.permute.xlu1 %1107  ;;  %v1110_v2 = vpop.permute.xlu0 %1109  ;;  %v1272_v45 = vld [vmem:[#allocation2 + $0xd0] sm:$0xf] }
 0x189   : > { %v786_v51 = vsel %vm6365_vm4, %v708_v52, %v785_v36  ;;  %v791_v5 = vsel %vm6370_vm6, %v709_v53, %v790_v17  ;;  %v5151_v14 = vcombine.low %v659_v56, %v659_v56  ;;  %v1130_v40 = vsel %vm653_vm8, %v5179_v50, %v1108_v18  ;;  %v5178_v28 = vld [vmem:[%s6472_s15 + $0x50] sm:$0xf]  ;;  %v796_v37 = vld [vmem:[#allocation2 + $0x14] sm:$0x1] }
 0x18a   : > { %787 = vst [vmem:[#allocation2 + $0x8] sm:$0xf] %v786_v51  ;;  %792 = vst [vmem:[#allocation2 + $0xc] sm:$0x1] %v791_v5  ;;  %v1249_v7 = vsel %vm6365_vm4, %v1175_v60, %v1248_v54  ;;  %v1252_v12 = vsel %vm6370_vm6, %v1176_v46, %v1251_v55  ;;  %v1188_v19 = vrot.slane %v1186_v44, 7  ;;  %v5187_v13 = vcombine.low %v1130_v40, %v1130_v40 }
 0x18b   : > { %1250 = vst [vmem:[#allocation2 + $0xb0] sm:$0xf] %v1249_v7  ;;  %1253 = vst [vmem:[#allocation2 + $0xb4] sm:$0x1] %v1252_v12  ;;  %v711_v21 = vshrl.u32 %v5151_v14, 16  ;;  %v1133_v22 = vsel %vm653_vm8, %v5180_v6, %v1110_v2  ;;  %v6837_v15 = vrot.slane %v3828_v25, 5 }
 0x18c   : > { %v1191_v27 = vor.u32 %v1189_v0, %v1188_v19  ;;  %v1192_v29 = vrot.slane %v1188_v19, 4  ;;  %v714_v30 = vshll.u32 %v5151_v14, 16  ;;  %v1202_v31 = vshrl.u32 %v5187_v13, 16  ;;  %v642_v32 = vpop.permute.xlu1 %641  ;;  %v625_v11 = vld [vmem:[%s6472_s15 + $0x10] sm:$0xf] }
 0x18d   : > { %v713_v34 = vrot.slane %v711_v21, 7  ;;  %v1205_v57 = vshll.u32 %v5187_v13, 16  ;;  %v5188_v62 = vcombine.low %v1133_v22, %v1133_v22  ;;  %v662_v3 = vsel %vm653_vm8, %v623_v9, %v642_v32  ;;  %v1106_v35 = vpop.permute.xlu0 %1105  ;;  %v1275_v48 = vld [vmem:[#allocation2 + $0xd4] sm:$0x1]  ;;  %v624_v60 = vld [vmem:[%s6472_s15 + $0xc] sm:$0xf] }
 0x18e   : > { %v1261_v36 = vsel %vm6365_vm4, %v1191_v27, %v1260_v4  ;;  %v1264_v25 = vsel %vm6370_vm6, %v1192_v29, %v1263_v20  ;;  %v1204_v16 = vrot.slane %v1202_v31, 7  ;;  %v5152_v39 = vcombine.low %v662_v3, %v662_v3  ;;  %v1278_v0 = vld [vmem:[#allocation2 + $0xd8] sm:$0xf]  ;;  %v1281_v14 = vld [vmem:[#allocation2 + $0xdc] sm:$0x1] }
 0x18f   : > { %1262 = vst [vmem:[#allocation2 + $0xc0] sm:$0xf] %v1261_v36  ;;  %1265 = vst [vmem:[#allocation2 + $0xc4] sm:$0x1] %v1264_v25  ;;  %v716_v17 = vor.u32 %v714_v30, %v713_v34  ;;  %v717_v41 = vrot.slane %v713_v34, 4  ;;  %v1210_v50 = vshrl.u32 %v5188_v62, 16  ;;  %v1127_v6 = vsel %vm653_vm8, %v5178_v28, %v1106_v35 }
 0x190   : > { %v1213_v52 = vshll.u32 %v5188_v62, 16  ;;  %v1207_v53 = vor.u32 %v1205_v57, %v1204_v16  ;;  %v1208_v54 = vrot.slane %v1204_v16, 4  ;;  %v719_v55 = vshrl.u32 %v5152_v39, 16  ;;  %v646_v59 = vpop.permute.xlu1 %645  ;;  %v799_v40 = vld [vmem:[#allocation2 + $0x18] sm:$0xf] }
 0x191   : > { %v722_v56 = vshll.u32 %v5152_v39, 16  ;;  %v794_v46 = vsel %vm6365_vm4, %v716_v17, %v793_v61  ;;  %v797_v44 = vsel %vm6370_vm6, %v717_v41, %v796_v37  ;;  %v1212_v18 = vrot.slane %v1210_v50, 7  ;;  %v644_v2 = vpop.permute.xlu0 %643  ;;  %v802_v13 = vld [vmem:[#allocation2 + $0x1c] sm:$0x1]  ;;  %v627_v21 = vld [vmem:[%s6472_s15 + $0x18] sm:$0xf] }
 0x192   : > { %795 = vst [vmem:[#allocation2 + $0x10] sm:$0xf] %v794_v46  ;;  %798 = vst [vmem:[#allocation2 + $0x14] sm:$0x1] %v797_v44  ;;  %v1273_v51 = vsel %vm6365_vm4, %v1207_v53, %v1272_v45  ;;  %v1276_v5 = vsel %vm6370_vm6, %v1208_v54, %v1275_v48  ;;  %v721_v7 = vrot.slane %v719_v55, 7  ;;  %v5186_v12 = vcombine.low %v1127_v6, %v1127_v6 }
 0x193   : > { %1274 = vst [vmem:[#allocation2 + $0xd0] sm:$0xf] %v1273_v51  ;;  %1277 = vst [vmem:[#allocation2 + $0xd4] sm:$0x1] %v1276_v5  ;;  %v1215_v4 = vor.u32 %v1213_v52, %v1212_v18  ;;  %v1216_v19 = vrot.slane %v1212_v18, 4  ;;  %v668_v9 = vsel %vm653_vm8, %v625_v11, %v646_v59  ;;  %v665_v20 = vsel %vm653_vm8, %v624_v60, %v644_v2 }
 0x194   : > { %v724_v22 = vor.u32 %v722_v56, %v721_v7  ;;  %v725_v27 = vrot.slane %v721_v7, 4  ;;  %v1194_v29 = vshrl.u32 %v5186_v12, 16  ;;  %v1197_v61 = vshll.u32 %v5186_v12, 16  ;;  %v650_v30 = vpop.permute.xlu1 %649  ;;  %v626_v57 = vld [vmem:[%s6472_s15 + $0x14] sm:$0xf] }
 0x195   : > { %v1279_v31 = vsel %vm6365_vm4, %v1215_v4, %v1278_v0  ;;  %v1282_v32 = vsel %vm6370_vm6, %v1216_v19, %v1281_v14  ;;  %v5154_v34 = vcombine.low %v668_v9, %v668_v9  ;;  %v5153_v45 = vcombine.low %v665_v20, %v665_v20  ;;  %v648_v62 = vpop.permute.xlu0 %647  ;;  %v1266_v35 = vld [vmem:[#allocation2 + $0xc8] sm:$0xf]  ;;  %v5190_v37 = vld [vmem:[%s6472_s15 + $0x60] sm:$0xf]  ;;  %v1269_v16 = vld [vmem:[#allocation2 + $0xcc] sm:$0x1] }
 0x196   : > { %1280 = vst [vmem:[#allocation2 + $0xd8] sm:$0xf] %v1279_v31  ;;  %1283 = vst [vmem:[#allocation2 + $0xdc] sm:$0x1] %v1282_v32  ;;  %v800_v3 = vsel %vm6365_vm4, %v724_v22, %v799_v40  ;;  %v803_v28 = vsel %vm6370_vm6, %v725_v27, %v802_v13  ;;  %v1196_v36 = vrot.slane %v1194_v29, 7  ;;  %v674_v25 = vsel %vm653_vm8, %v627_v21, %v650_v30 }
 0x197   : > { %801 = vst [vmem:[#allocation2 + $0x18] sm:$0xf] %v800_v3  ;;  %804 = vst [vmem:[#allocation2 + $0x1c] sm:$0x1] %v803_v28  ;;  %v735_v39 = vshrl.u32 %v5154_v34, 16  ;;  %v738_v11 = vshll.u32 %v5154_v34, 16  ;;  %v5156_v52 = vcombine.low %v674_v25, %v674_v25  ;;  %v671_v53 = vsel %vm653_vm8, %v626_v57, %v648_v62 }
 0x198   : > { %v727_v17 = vshrl.u32 %v5153_v45, 16  ;;  %v730_v41 = vshll.u32 %v5153_v45, 16  ;;  %v1199_v48 = vor.u32 %v1197_v61, %v1196_v36  ;;  %v1200_v50 = vrot.slane %v1196_v36, 4  ;;  %v1333_v54 = vpop.permute.xlu1 %1332  ;;  %v811_v55 = vld [vmem:[#allocation2 + $0x28] sm:$0xf] }
 0x199   : > { %v737_v56 = vrot.slane %v735_v39, 7  ;;  %v805_v59 = vld [vmem:[#allocation2 + $0x20] sm:$0xf]  ;;  %v5155_v46 = vcombine.low %v671_v53, %v671_v53  ;;  %v1350_v44 = vsel %vm653_vm8, %v5190_v37, %v1333_v54  ;;  %v652_v0 = vpop.permute.xlu0 %651  ;;  %v814_v2 = vld [vmem:[#allocation2 + $0x2c] sm:$0x1]  ;;  %v751_v5 = vshrl.u32 %v5156_v52, 16 }
 0x19a   : > { %v729_v60 = vrot.slane %v727_v17, 7  ;;  %v1267_v18 = vsel %vm6365_vm4, %v1199_v48, %v1266_v35  ;;  %v1270_v6 = vsel %vm6370_vm6, %v1200_v50, %v1269_v16  ;;  %v808_v51 = vld [vmem:[#allocation2 + $0x24] sm:$0x1]  ;;  %v754_v14 = vshll.u32 %v5156_v52, 16  ;;  %v823_v19 = vld [vmem:[#allocation2 + $0x38] sm:$0xf] }
 0x19b   : > { %1268 = vst [vmem:[#allocation2 + $0xc8] sm:$0xf] %v1267_v18  ;;  %1271 = vst [vmem:[#allocation2 + $0xcc] sm:$0x1] %v1270_v6  ;;  %v740_v40 = vor.u32 %v738_v11, %v737_v56  ;;  %v741_v7 = vrot.slane %v737_v56, 4  ;;  %v753_v9 = vrot.slane %v751_v5, 7  ;;  %v5198_v22 = vcombine.low %v1350_v44, %v1350_v44 }
 0x19c   : > { %v732_v12 = vor.u32 %v730_v41, %v729_v60  ;;  %v733_v4 = vrot.slane %v729_v60, 4  ;;  %v628_v13 = vld [vmem:[%s6472_s15 + $0x1c] sm:$0xf]  ;;  %v743_v20 = vshrl.u32 %v5155_v46, 16  ;;  %v746_v21 = vshll.u32 %v5155_v46, 16  ;;  %v1337_v11 = vpop.permute.xlu1 %1336 }
 0x19d   : > { %v3214_v27 = vld [vmem:[#allocation2 + $0xa8] sm:$0xf]  ;;  %v812_v29 = vsel %vm6365_vm4, %v740_v40, %v811_v55  ;;  %v815_v61 = vsel %vm6370_vm6, %v741_v7, %v814_v2  ;;  %v826_v32 = vld [vmem:[#allocation2 + $0x3c] sm:$0x1]  ;;  %v817_v34 = vld [vmem:[#allocation2 + $0x30] sm:$0xf]  ;;  %v756_v57 = vor.u32 %v754_v14, %v753_v9  ;;  %v677_v25 = vsel %vm653_vm8, %v628_v13, %v652_v0  ;;  %v1335_v17 = vpop.permute.xlu0 %1334 }
 0x19e   : > { %v806_v30 = vsel %vm6365_vm4, %v732_v12, %v805_v59  ;;  %v809_v31 = vsel %vm6370_vm6, %v733_v4, %v808_v51  ;;  %v5192_v45 = vld [vmem:[%s6472_s15 + $0x68] sm:$0xf]  ;;  %813 = vst [vmem:[#allocation2 + $0x28] sm:$0xf] %v812_v29  ;;  %816 = vst [vmem:[#allocation2 + $0x2c] sm:$0x1] %v815_v61  ;;  %v5157_v55 = vcombine.low %v677_v25, %v677_v25 }
 0x19f   : > { %807 = vst [vmem:[#allocation2 + $0x20] sm:$0xf] %v806_v30  ;;  %810 = vst [vmem:[#allocation2 + $0x24] sm:$0x1] %v809_v31  ;;  %v757_v62 = vrot.slane %v753_v9, 4  ;;  %v745_v28 = vrot.slane %v743_v20, 7  ;;  %v824_v41 = vsel %vm6365_vm4, %v756_v57, %v823_v19  ;;  %v1356_v6 = vsel %vm653_vm8, %v5192_v45, %v1337_v11 }
 0x1a0   : > { %v820_v3 = vld [vmem:[#allocation2 + $0x34] sm:$0x1]  ;;  %v1397_v35 = vshrl.u32 %v5198_v22, 16  ;;  %v1400_v36 = vshll.u32 %v5198_v22, 16  ;;  %v6887_v37 = vld [vmem:[#allocation2 + $0xac] sm:$0x1]  ;;  %v5200_v13 = vcombine.low %v1356_v6, %v1356_v6  ;;  %v1341_v31 = vpop.permute.xlu1 %1340 }
 0x1a1   : > { %v3243_v16 = vshrl.u32 %v3214_v27, 16  ;;  %v3246_v39 = vshll.u32 %v3214_v27, 16  ;;  %v827_v48 = vsel %vm6370_vm6, %v757_v62, %v826_v32  ;;  %v748_v50 = vor.u32 %v746_v21, %v745_v28  ;;  %v1480_v53 = vld [vmem:[#allocation2 + $0xfc] sm:$0x1]  ;;  %825 = vst [vmem:[#allocation2 + $0x38] sm:$0xf] %v824_v41  ;;  %v1339_v32 = vpop.permute.xlu0 %1338 }
 0x1a2   : > { %v749_v52 = vrot.slane %v745_v28, 4  ;;  %828 = vst [vmem:[#allocation2 + $0x3c] sm:$0x1] %v827_v48  ;;  %v1399_v54 = vrot.slane %v1397_v35, 7  ;;  %v1664_v60 = vld [vmem:[#allocation2 + $0x8] sm:$0xe] }
 0x1a3   : > { %v3245_v56 = vrot.slane %v3243_v16, 4  ;;  %v3248_v59 = vrot.slane %v3246_v39, 5  ;;  %v818_v46 = vsel %vm6365_vm4, %v748_v50, %v817_v34  ;;  %v1477_v0 = vld [vmem:[#allocation2 + $0xf8] sm:$0xf]  ;;  %v3252_v18 = vshll.u32 %v6887_v37, 16 }
 0x1a4   : > { %v821_v44 = vsel %vm6370_vm6, %v749_v52, %v820_v3  ;;  %v6899_v2 = vld [vmem:[#allocation2 + $0xc] sm:$0x1]  ;;  %819 = vst [vmem:[#allocation2 + $0x30] sm:$0xf] %v818_v46  ;;  %v1402_v51 = vor.u32 %v1400_v36, %v1399_v54  ;;  %v1403_v5 = vrot.slane %v1399_v54, 4  ;;  %v759_v14 = vshrl.u32 %v5157_v55, 16 }
 0x1a5   : > { %822 = vst [vmem:[#allocation2 + $0x34] sm:$0x1] %v821_v44  ;;  %v762_v40 = vshll.u32 %v5157_v55, 16  ;;  %v1665_v7 = vld [vmem:[#allocation2 + $0x10] sm:$0xe]  ;;  %v3249_v4 = vor.u32 %v3248_v59, %v3245_v56  ;;  %v3254_v19 = vrot.slane %v3252_v18, 5 }
 0x1a6   : > { %v829_v12 = vld [vmem:[#allocation2 + $0x40] sm:$0xf]  ;;  %v6901_v9 = vld [vmem:[#allocation2 + $0x14] sm:$0x1]  ;;  %v5206_v20 = vrot.slane %v1664_v60, 9  ;;  %v1478_v21 = vsel %vm6365_vm4, %v1402_v51, %v1477_v0  ;;  %v1481_v22 = vsel %vm6370_vm6, %v1403_v5, %v1480_v53  ;;  %v761_v27 = vrot.slane %v759_v14, 7  ;;  %v1345_v5 = vpop.permute.xlu1 %1344  ;;  %v1343_v14 = vpop.permute.xlu0 %1342 }
 0x1a7   : > { %v1693_v29 = vrot.slane %v6899_v2, 5  ;;  %v5191_v61 = vld [vmem:[%s6472_s15 + $0x64] sm:$0xf]  ;;  %v3216_v30 = vld [vmem:[#allocation2 + $0xb0] sm:$0xf]  ;;  %v3250_v45 = vrot.slane %v3249_v4, 4 }
 0x1a8   : > { %1479 = vst [vmem:[#allocation2 + $0xf8] sm:$0xf] %v1478_v21  ;;  %1482 = vst [vmem:[#allocation2 + $0xfc] sm:$0x1] %v1481_v22  ;;  %v832_v34 = vld [vmem:[#allocation2 + $0x44] sm:$0x1]  ;;  %v764_v28 = vor.u32 %v762_v40, %v761_v27  ;;  %v1353_v11 = vsel %vm653_vm8, %v5191_v61, %v1335_v17 }
 0x1a9   : > { %v1413_v57 = vshrl.u32 %v5200_v13, 16  ;;  %v1416_v62 = vshll.u32 %v5200_v13, 16  ;;  %v5207_v3 = vrot.slane %v1665_v7, 9  ;;  %v765_v35 = vrot.slane %v761_v27, 4  ;;  %v6915_v41 = vld [vmem:[#allocation2 + $0xb4] sm:$0x1] }
 0x1aa   : > { %v1694_v36 = vsel %vm6765_vm14, %v5206_v20, %v1693_v29  ;;  %v1697_v25 = vrot.slane %v6901_v9, 5  ;;  %v3255_v16 = vsel %vm6625_vm11, %v3250_v45, %v3254_v19  ;;  %v3218_v48 = vld [vmem:[#allocation2 + $0xb8] sm:$0xf]  ;;  %v3257_v50 = vshrl.u32 %v3216_v30, 16  ;;  %v1489_v55 = vld [vmem:[#allocation2 + $0x108] sm:$0xf] }
 0x1ab   : > { %v1415_v39 = vrot.slane %v1413_v57, 7  ;;  %v830_v52 = vsel %vm6365_vm4, %v764_v28, %v829_v12  ;;  %v833_v53 = vsel %vm6370_vm6, %v765_v35, %v832_v34  ;;  %v5382_v54 = vcombine.low %v3241_v24, %v3255_v16  ;;  %v1492_v17 = vld [vmem:[#allocation2 + $0x10c] sm:$0x1]  ;;  %v5194_v0 = vld [vmem:[%s6472_s15 + $0x70] sm:$0xf] }
 0x1ac   : > { %v1698_v56 = vsel %vm6765_vm14, %v5207_v3, %v1697_v25  ;;  %831 = vst [vmem:[#allocation2 + $0x40] sm:$0xf] %v830_v52  ;;  %834 = vst [vmem:[#allocation2 + $0x44] sm:$0x1] %v833_v53  ;;  %v5199_v44 = vcombine.low %v1353_v11, %v1353_v11  ;;  %v5193_v18 = vld [vmem:[%s6472_s15 + $0x6c] sm:$0xf]  ;;  %v1362_v61 = vsel %vm653_vm8, %v5194_v0, %v1341_v31  ;;  %v1347_v53 = vpop.permute.xlu1 %1346 }
 0x1ad   : > { %v1418_v59 = vor.u32 %v1416_v62, %v1415_v39  ;;  %v1419_v60 = vrot.slane %v1415_v39, 4  ;;  %v5222_v46 = vcombine.low %v1694_v36, %v1698_v56  ;;  %5892 = vmatprep.mubr.msk.bf16.mxu1 %vm387_vm0, %v5382_v54  ;;  %v6931_v6 = vld [vmem:[#allocation2 + $0xbc] sm:$0x1]  ;;  %v3259_v63 = vrot.slane %v3257_v50, 4  ;;  %v5196_v19 = vld [vmem:[%s6472_s15 + $0x78] sm:$0xf]  ;;  %v1112_v54 = vpop.permute.xlu0 %1111 }
 0x1ae   : > { %v3260_v43 = vshll.u32 %v3216_v30, 16  ;;  %v3266_v24 = vshll.u32 %v6915_v41, 16  ;;  %v3271_v51 = vshrl.u32 %v3218_v48, 16  ;;  %v1405_v12 = vshrl.u32 %v5199_v44, 16  ;;  %v1483_v34 = vld [vmem:[#allocation2 + $0x100] sm:$0xf] }
 0x1af   : > { %v1490_v40 = vsel %vm6365_vm4, %v1418_v59, %v1489_v55  ;;  %v1493_v7 = vsel %vm6370_vm6, %v1419_v60, %v1492_v17  ;;  %5764 = vmatprep.mubr.msk.bf16.mxu0 %vm387_vm0, %v5222_v46  ;;  %v1408_v4 = vshll.u32 %v5199_v44, 16  ;;  %v3274_v22 = vshll.u32 %v3218_v48, 16  ;;  %v1486_v45 = vld [vmem:[#allocation2 + $0x104] sm:$0x1]  ;;  %v5195_v39 = vld [vmem:[%s6472_s15 + $0x74] sm:$0xf] }
 0x1b0   : > { %1491 = vst [vmem:[#allocation2 + $0x108] sm:$0xf] %v1490_v40  ;;  %1494 = vst [vmem:[#allocation2 + $0x10c] sm:$0x1] %v1493_v7  ;;  %v3262_v13 = vrot.slane %v3260_v43, 5  ;;  %v3268_v20 = vrot.slane %v3266_v24, 5  ;;  %v1359_v30 = vsel %vm653_vm8, %v5193_v18, %v1339_v32  ;;  %v5202_v3 = vcombine.low %v1362_v61, %v1362_v61 }
 0x1b1   : > { %v3273_v21 = vrot.slane %v3271_v51, 4  ;;  %v1407_v27 = vrot.slane %v1405_v12, 7  ;;  %v3280_v29 = vshll.u32 %v6931_v6, 16  ;;  %v3276_v62 = vrot.slane %v3274_v22, 5  ;;  %v5197_v11 = vld [vmem:[%s6472_s15 + $0x7c] sm:$0xf] }
 0x1b2   : > { %v3263_v57 = vor.u32 %v3262_v13, %v3259_v63  ;;  %v5201_v28 = vcombine.low %v1359_v30, %v1359_v30  ;;  %v1368_v16 = vsel %vm653_vm8, %v5196_v19, %v1345_v5  ;;  %v1429_v52 = vshrl.u32 %v5202_v3, 16  ;;  %v5181_v32 = vld [vmem:[%s6472_s15 + $0x5c] sm:$0xf]  ;;  %v1501_v63 = vld [vmem:[#allocation2 + $0x118] sm:$0xf] }
 0x1b3   : > { %v1410_v35 = vor.u32 %v1408_v4, %v1407_v27  ;;  %v1411_v36 = vrot.slane %v1407_v27, 4  ;;  %v3282_v25 = vrot.slane %v3280_v29, 5  ;;  %v3277_v50 = vor.u32 %v3276_v62, %v3273_v21  ;;  %v1504_v44 = vld [vmem:[#allocation2 + $0x11c] sm:$0x1]  ;;  %v1495_v4 = vld [vmem:[#allocation2 + $0x110] sm:$0xf] }
 0x1b4   : > { %v3264_v48 = vrot.slane %v3263_v57, 4  ;;  %v1432_v31 = vshll.u32 %v5202_v3, 16  ;;  %v1421_v56 = vshrl.u32 %v5201_v28, 16  ;;  %v1424_v59 = vshll.u32 %v5201_v28, 16  ;;  %v1498_v19 = vld [vmem:[#allocation2 + $0x114] sm:$0x1] }
 0x1b5   : > { %v1484_v55 = vsel %vm6365_vm4, %v1410_v35, %v1483_v34  ;;  %v1487_v17 = vsel %vm6370_vm6, %v1411_v36, %v1486_v45  ;;  %v3278_v46 = vrot.slane %v3277_v50, 4  ;;  %v1431_v0 = vrot.slane %v1429_v52, 7  ;;  %v1513_v30 = vld [vmem:[#allocation2 + $0x128] sm:$0xf]  ;;  %v1516_v34 = vld [vmem:[#allocation2 + $0x12c] sm:$0x1] }
 0x1b6   : > { %1485 = vst [vmem:[#allocation2 + $0x100] sm:$0xf] %v1484_v55  ;;  %1488 = vst [vmem:[#allocation2 + $0x104] sm:$0x1] %v1487_v17  ;;  %v3269_v60 = vsel %vm6625_vm11, %v3264_v48, %v3268_v20  ;;  %v5204_v18 = vcombine.low %v1368_v16, %v1368_v16  ;;  %v1423_v43 = vrot.slane %v1421_v56, 7  ;;  %v1365_v24 = vsel %vm653_vm8, %v5195_v39, %v1343_v14  ;;  %v6174_v14 = vld [vmem:[%s7573_s5 + $0x128] sm:$0xff]  }
 0x1b7   : > { %v1371_v51 = vsel %vm653_vm8, %v5197_v11, %v1347_v53  ;;  %v1136_v5 = vsel %vm653_vm8, %v5181_v32, %v1112_v54  ;;  %v3283_v40 = vsel %vm6625_vm11, %v3278_v46, %v3282_v25  ;;  %v1434_v7 = vor.u32 %v1432_v31, %v1431_v0  ;;  %v6970_v36 = vld [vmem:[#allocation2 + $0x1c] sm:$0x1]  ;;  %v6972_v25 = vld [vmem:[#allocation2 + $0x24] sm:$0x1]  ;;  %v1666_v16 = vld [vmem:[#allocation2 + $0x18] sm:$0xe] }
 0x1b8   : > { %v1435_v12 = vrot.slane %v1431_v0, 4  ;;  %v1445_v13 = vshrl.u32 %v5204_v18, 16  ;;  %v5383_v20 = vcombine.low %v3269_v60, %v3283_v40  ;;  %v1426_v21 = vor.u32 %v1424_v59, %v1423_v43  ;;  %v6974_v39 = vld [vmem:[#allocation2 + $0xc0] sm:$0xf]  ;;  %v6176_v32 = vld [vmem:[%s7573_s5 + $0x130] sm:$0xff]  }
 0x1b9   : > { %v1427_v22 = vrot.slane %v1423_v43, 4  ;;  %v1448_v27 = vshll.u32 %v5204_v18, 16  ;;  %v1502_v29 = vsel %vm6365_vm4, %v1434_v7, %v1501_v63  ;;  %v5203_v57 = vcombine.low %v1365_v24, %v1365_v24  ;;  %v6272_v31 = vld [vmem:[%s7573_s5 + $0x120] sm:$0xff]   ;;  %v1522_v18 = vld [vmem:[#allocation2 + $0x134] sm:$0x1] }
 0x1ba   : > { %v1505_v61 = vsel %vm6370_vm6, %v1435_v12, %v1504_v44  ;;  %v1447_v45 = vrot.slane %v1445_v13, 7  ;;  %5893 = vmatmul.mubr.msk.bf16.vlgmr.msra.gmra.mrb[0].mxu1 %vm387_vm0, %v5383_v20  ;;  %1503 = vst [vmem:[#allocation2 + $0x118] sm:$0xf] %v1502_v29  ;;  %v1496_v62 = vsel %vm6365_vm4, %v1426_v21, %v1495_v4  ;;  %v5205_v28 = vcombine.low %v1371_v51, %v1371_v51  ;;  %v1667_v53 = vld [vmem:[#allocation2 + $0x20] sm:$0xe]  ;;  %v6178_v21 = vld [vmem:[%s7573_s5 + $0x138] sm:$0xff]  }
 0x1bb   : > { %1506 = vst [vmem:[#allocation2 + $0x11c] sm:$0x1] %v1505_v61  ;;  %v1499_v3 = vsel %vm6370_vm6, %v1427_v22, %v1498_v19  ;;  %v5189_v35 = vcombine.low %v1136_v5, %v1136_v5  ;;  %1497 = vst [vmem:[#allocation2 + $0x110] sm:$0xf] %v1496_v62  ;;  %v1437_v50 = vshrl.u32 %v5203_v57, 16  ;;  %v1440_v52 = vshll.u32 %v5203_v57, 16  ;;  %5901 = vmatpush3.bf16.msra.mxu1 %v6272_v31 }
 0x1bc   : > { %1500 = vst [vmem:[#allocation2 + $0x114] sm:$0x1] %v1499_v3  ;;  %v1450_v11 = vor.u32 %v1448_v27, %v1447_v45  ;;  %v1451_v48 = vrot.slane %v1447_v45, 4  ;;  %v1510_v54 = vld [vmem:[#allocation2 + $0x124] sm:$0x1]  ;;  %v1453_v55 = vshrl.u32 %v5205_v28, 16  ;;  %5902 = vmatprep.subr.bf16.mxu1 %v6174_v14 }
 0x1bd   : > { %v1456_v17 = vshll.u32 %v5205_v28, 16  ;;  %v1218_v56 = vshrl.u32 %v5189_v35, 16  ;;  %v1221_v59 = vshll.u32 %v5189_v35, 16  ;;  %v1507_v44 = vld [vmem:[#allocation2 + $0x120] sm:$0xf]  ;;  %v1439_v0 = vrot.slane %v1437_v50, 7 }
 0x1be   : > { %v1514_v60 = vsel %vm6365_vm4, %v1450_v11, %v1513_v30  ;;  %v1517_v46 = vsel %vm6370_vm6, %v1451_v48, %v1516_v34  ;;  %v1284_v63 = vld [vmem:[#allocation2 + $0xe0] sm:$0xf]  ;;  %v5208_v43 = vrot.slane %v1666_v16, 9  ;;  %v1519_v24 = vld [vmem:[#allocation2 + $0x130] sm:$0xf]  ;;  %v1455_v51 = vrot.slane %v1453_v55, 7 }
 0x1bf   : > { %1515 = vst [vmem:[#allocation2 + $0x128] sm:$0xf] %v1514_v60  ;;  %1518 = vst [vmem:[#allocation2 + $0x12c] sm:$0x1] %v1517_v46  ;;  %v1220_v5 = vrot.slane %v1218_v56, 7  ;;  %v1701_v40 = vrot.slane %v6970_v36, 5  ;;  %v1442_v12 = vor.u32 %v1440_v52, %v1439_v0  ;;  %5903 = vmatpush3.bf16.msra.mxu1 %v6174_v14 }
 0x1c0   : > { %v5209_v7 = vrot.slane %v1667_v53, 9  ;;  %v1443_v4 = vrot.slane %v1439_v0, 4  ;;  %v1287_v19 = vld [vmem:[#allocation2 + $0xe4] sm:$0x1]  ;;  %v1705_v13 = vrot.slane %v6972_v25, 5  ;;  %v3285_v20 = vshrl.u32 %v6974_v39, 16  ;;  %5904 = vmatprep.subr.bf16.mxu1 %v6176_v32 }
 0x1c1   : > { %v1458_v22 = vor.u32 %v1456_v17, %v1455_v51  ;;  %v1459_v27 = vrot.slane %v1455_v51, 4  ;;  %v1223_v29 = vor.u32 %v1221_v59, %v1220_v5  ;;  %v1224_v61 = vrot.slane %v1220_v5, 4  ;;  %v6992_v30 = vld [vmem:[#allocation2 + $0xc4] sm:$0x1]  ;;  %v3224_v34 = vld [vmem:[#allocation2 + $0xd0] sm:$0xf] }
 0x1c2   : > { %v1508_v45 = vsel %vm6365_vm4, %v1442_v12, %v1507_v44  ;;  %v1511_v14 = vsel %vm6370_vm6, %v1443_v4, %v1510_v54  ;;  %v1702_v57 = vsel %vm6765_vm14, %v5208_v43, %v1701_v40  ;;  %v1706_v62 = vsel %vm6765_vm14, %v5209_v7, %v1705_v13  ;;  %v3222_v3 = vld [vmem:[#allocation2 + $0xc8] sm:$0xf]  ;;  %v7002_v28 = vld [vmem:[#allocation2 + $0xcc] sm:$0x1]  ;;  %v7015_v52 = vld [vmem:[#allocation2 + $0xd4] sm:$0x1] }
 0x1c3   : > { %v6175_v35 = vld [vmem:[%s7573_s5 + $0x8] sm:$0xff]   ;;  %1509 = vst [vmem:[#allocation2 + $0x120] sm:$0xf] %v1508_v45  ;;  %1512 = vst [vmem:[#allocation2 + $0x124] sm:$0x1] %v1511_v14  ;;  %v1520_v16 = vsel %vm6365_vm4, %v1458_v22, %v1519_v24  ;;  %v1523_v11 = vsel %vm6370_vm6, %v1459_v27, %v1522_v18  ;;  %v1285_v48 = vsel %vm6365_vm4, %v1223_v29, %v1284_v63  ;;  %v3287_v54 = vrot.slane %v3285_v20, 4 }
 0x1c4   : > { %v1288_v50 = vsel %vm6370_vm6, %v1224_v61, %v1287_v19  ;;  %v3226_v31 = vld [vmem:[#allocation2 + $0xd8] sm:$0xf]  ;;  %1521 = vst [vmem:[#allocation2 + $0x130] sm:$0xf] %v1520_v16  ;;  %1524 = vst [vmem:[#allocation2 + $0x134] sm:$0x1] %v1523_v11  ;;  %v5223_v53 = vcombine.low %v1702_v57, %v1706_v62  ;;  %5905 = vmatpush3.bf16.msra.mxu1 %v6176_v32 }
 0x1c5   : > { %1286 = vst [vmem:[#allocation2 + $0xe0] sm:$0xf] %v1285_v48  ;;  %1289 = vst [vmem:[#allocation2 + $0xe4] sm:$0x1] %v1288_v50  ;;  %v3288_v55 = vshll.u32 %v6974_v39, 16  ;;  %v3294_v17 = vshll.u32 %v6992_v30, 16  ;;  %5906 = vmatprep.subr.bf16.mxu1 %v6178_v21 }
 0x1c6   : > { %v7019_v56 = vld [vmem:[#allocation2 + $0xdc] sm:$0x1]  ;;  %v3299_v10 = vshrl.u32 %v3222_v3, 16  ;;  %v3302_v59 = vshll.u32 %v3222_v3, 16  ;;  %v3308_v60 = vshll.u32 %v7002_v28, 16  ;;  %v3313_v46 = vshrl.u32 %v3224_v34, 16  ;;  %5765 = vmatmul.mubr.msk.bf16.vlgmr.msra.gmra.mrb[8].mxu0 %vm387_vm0, %v5223_v53 }
 0x1c7   : > { %v1668_v44 = vld [vmem:[#allocation2 + $0x28] sm:$0xe]  ;;  %v3290_v39 = vrot.slane %v3288_v55, 5  ;;  %v3296_v0 = vrot.slane %v3294_v17, 5  ;;  %v3316_v18 = vshll.u32 %v3224_v34, 16  ;;  %v3322_v63 = vshll.u32 %v7015_v52, 16 }
 0x1c8   : > { %v6273_v32 = vld [vmem:[%s7573_s5] sm:$0xff]   ;;  %v3301_v43 = vrot.slane %v3299_v10, 4  ;;  %v3304_v24 = vrot.slane %v3302_v59, 5  ;;  %v3310_v51 = vrot.slane %v3308_v60, 5  ;;  %v3315_v5 = vrot.slane %v3313_v46, 4  ;;  %v6177_v22 = vld [vmem:[%s7573_s5 + $0x10] sm:$0xff]   ;;  %5907 = vmatpush3.bf16.msra.mxu1 %v6178_v21 }
 0x1c9   : > { %5773 = vmatpush3.bf16.msra.mxu0 %v6273_v32  ;;  %v7032_v40 = vld [vmem:[#allocation2 + $0x2c] sm:$0x1]  ;;  %v3291_v7 = vor.u32 %v3290_v39, %v3287_v54  ;;  %v3318_v12 = vrot.slane %v3316_v18, 5  ;;  %v3324_v4 = vrot.slane %v3322_v63, 5  ;;  %v3327_v19 = vshrl.u32 %v3226_v31, 16  ;;  %5916 = vmatprep.subr.bf16.mxu1 %v7024_v8  ;;  %v6179_v16 = vld [vmem:[%s7573_s5 + $0x18] sm:$0xff]  }
 0x1ca   : > { %5774 = vmatprep.subr.bf16.mxu0 %v6175_v35  ;;  %v1669_v13 = vld [vmem:[#allocation2 + $0x30] sm:$0xe]  ;;  %v3471_v20 = vld [vmem:[#allocation2 + $0xa8] sm:$0xe]  ;;  %v3305_v27 = vor.u32 %v3304_v24, %v3301_v43  ;;  %v3330_v29 = vshll.u32 %v3226_v31, 16  ;;  %v3336_v61 = vshll.u32 %v7019_v56, 16 }
 0x1cb   : > { %v7038_v34 = vld [vmem:[#allocation2 + $0x34] sm:$0x1]  ;;  %v5210_v45 = vrot.slane %v1668_v44, 9  ;;  %v3292_v14 = vrot.slane %v3291_v7, 4  ;;  %v3319_v57 = vor.u32 %v3318_v12, %v3315_v5  ;;  %v3329_v62 = vrot.slane %v3327_v19, 4 }
 0x1cc   : > { %v1709_v3 = vrot.slane %v7032_v40, 5  ;;  %v3306_v11 = vrot.slane %v3305_v27, 4  ;;  %v3332_v21 = vrot.slane %v3330_v29, 5  ;;  %v3338_v48 = vrot.slane %v3336_v61, 5  ;;  %v1670_v31 = vld [vmem:[#allocation2 + $0x38] sm:$0xe] }
 0x1cd   : > { %v5211_v50 = vrot.slane %v1669_v13, 9  ;;  %5775 = vmatpush3.bf16.msra.mxu0 %v6175_v35  ;;  %v3297_v53 = vsel %vm6625_vm11, %v3292_v14, %v3296_v0  ;;  %v3320_v54 = vrot.slane %v3319_v57, 4  ;;  %v1713_v17 = vrot.slane %v7038_v34, 5  ;;  %v7050_v10 = vld [vmem:[#allocation2 + $0x3c] sm:$0x1] }
 0x1ce   : > { %v1710_v55 = vsel %vm6765_vm14, %v5210_v45, %v1709_v3  ;;  %5776 = vmatprep.subr.bf16.mxu0 %v6177_v22  ;;  %v1525_v59 = vld [vmem:[#allocation2 + $0x8] sm:$0xf]  ;;  %v3311_v60 = vsel %vm6625_vm11, %v3306_v11, %v3310_v51  ;;  %v3333_v46 = vor.u32 %v3332_v21, %v3329_v62  ;;  %v5395_v44 = vrot.slane %v3471_v20, 9  ;;  %v7055_v39 = vld [vmem:[#allocation2 + $0x44] sm:$0x1] }
 0x1cf   : > { %v3500_v35 = vrot.slane %v6887_v37, 5  ;;  %v1671_v0 = vld [vmem:[#allocation2 + $0x40] sm:$0xe]  ;;  %v5384_v18 = vcombine.low %v3297_v53, %v3311_v60  ;;  %v3325_v63 = vsel %vm6625_vm11, %v3320_v54, %v3324_v4  ;;  %v1714_v32 = vsel %vm6765_vm14, %v5211_v50, %v1713_v17  ;;  %v1527_v37 = vld [vmem:[#allocation2 + $0x10] sm:$0xf] }
 0x1d0   : > { %v5212_v43 = vrot.slane %v1670_v31, 9  ;;  %v3334_v24 = vrot.slane %v3333_v46, 4  ;;  %v5224_v5 = vcombine.low %v1710_v55, %v1714_v32  ;;  %v1717_v7 = vrot.slane %v7050_v10, 5  ;;  %v7070_v20 = vld [vmem:[%s7573_s5 + $0x40] sm:$0xff]   ;;  %v3472_v61 = vld [vmem:[#allocation2 + $0xb0] sm:$0xe] }
 0x1d1   : > { %v3501_v51 = vsel %vm6765_vm14, %v5395_v44, %v3500_v35  ;;  %5777 = vmatpush3.bf16.msra.mxu0 %v6177_v22  ;;  %5896 = vmatprep.mubr.msk.bf16.mxu1 %vm387_vm0, %v5384_v18  ;;  %v5213_v19 = vrot.slane %v1671_v0, 9  ;;  %v1721_v4 = vrot.slane %v7055_v39, 5  ;;  %v1545_v13 = vshrl.u32 %v1525_v59, 16  ;;  %v3473_v3 = vld [vmem:[#allocation2 + $0xb8] sm:$0xe] }
 0x1d2   : > { %v5410_v12 = vcombine.low %v6782_v26, %v3501_v51  ;;  %5778 = vmatprep.subr.bf16.mxu0 %v6179_v16  ;;  %v3339_v27 = vsel %vm6625_vm11, %v3334_v24, %v3338_v48  ;;  %5768 = vmatprep.mubr.msk.bf16.mxu0 %vm387_vm0, %v5224_v5  ;;  %v1718_v22 = vsel %vm6765_vm14, %v5212_v43, %v1717_v7  ;;  %v1548_v29 = vshll.u32 %v1525_v59, 16  ;;  %v3474_v11 = vld [vmem:[#allocation2 + $0xc0] sm:$0xe]  ;;  %v1529_v53 = vld [vmem:[#allocation2 + $0x18] sm:$0xf] }
 0x1d3   : > { %v1554_v26 = vshll.u32 %v6899_v2, 16  ;;  %v5385_v45 = vcombine.low %v3325_v63, %v3339_v27  ;;  %v1722_v14 = vsel %vm6765_vm14, %v5213_v19, %v1721_v4  ;;  %v1547_v57 = vrot.slane %v1545_v13, 4  ;;  %v3475_v59 = vld [vmem:[#allocation2 + $0xc8] sm:$0xe]  ;;  %v1531_v24 = vld [vmem:[#allocation2 + $0x20] sm:$0xf] }
 0x1d4   : > { %v1559_v62 = vshrl.u32 %v1527_v37, 16  ;;  %v5225_v21 = vcombine.low %v1718_v22, %v1722_v14  ;;  %v1550_v50 = vrot.slane %v1548_v29, 5  ;;  %v1562_v31 = vshll.u32 %v1527_v37, 16  ;;  %v1533_v37 = vld [vmem:[#allocation2 + $0x28] sm:$0xf] }
 0x1d5   : > { %v1556_v48 = vrot.slane %v1554_v26, 5  ;;  %5779 = vmatpush3.bf16.msra.mxu0 %v6179_v16  ;;  %5897 = vmatmul.mubr.msk.bf16.gmra.mrb[4].mxu1 %vm387_vm0, %v5385_v45  ;;  %v1568_v2 = vshll.u32 %v6901_v9, 16  ;;  %v5396_v55 = vrot.slane %v3472_v61, 9  ;;  %v3504_v17 = vrot.slane %v6915_v41, 5  ;;  %v6182_v27 = vld [vmem:[%s7573_s5 + $0x148] sm:$0xff]  }
 0x1d6   : > { %v1561_v54 = vrot.slane %v1559_v62, 4  ;;  %5788 = vmatprep.subr.bf16.mxu0 %v7070_v20  ;;  %5908 = vmatprep.mubr.msk.bf16.mxu1 %vm387_vm0, %v5410_v12  ;;  %v1551_v60 = vor.u32 %v1550_v50, %v1547_v57  ;;  %v1564_v46 = vrot.slane %v1562_v31, 5  ;;  %v5397_v44 = vrot.slane %v3473_v3, 9 }
 0x1d7   : > { %5769 = vmatmul.mubr.msk.bf16.gmra.mrb[12].mxu0 %vm387_vm0, %v5225_v21  ;;  %v3508_v16 = vrot.slane %v6931_v6, 5  ;;  %v1570_v35 = vrot.slane %v1568_v2, 5  ;;  %v3505_v0 = vsel %vm6765_vm14, %v5396_v55, %v3504_v17  ;;  %v5398_v9 = vrot.slane %v3474_v11, 9  ;;  %v3476_v21 = vld [vmem:[#allocation2 + $0xd0] sm:$0xe] }
 0x1d8   : > { %v3512_v18 = vrot.slane %v6992_v30, 5  ;;  %v1552_v41 = vrot.slane %v1551_v60, 4  ;;  %v1565_v63 = vor.u32 %v1564_v46, %v1561_v54  ;;  %v5399_v43 = vrot.slane %v3475_v59, 9 }
 0x1d9   : > { %v3509_v32 = vsel %vm6765_vm14, %v5397_v44, %v3508_v16  ;;  %v3516_v6 = vrot.slane %v7002_v28, 5  ;;  %v1573_v7 = vshrl.u32 %v1529_v53, 16  ;;  %v1576_v30 = vshll.u32 %v1529_v53, 16  ;;  %v1535_v28 = vld [vmem:[#allocation2 + $0x30] sm:$0xf] }
 0x1da   : > { %v5411_v5 = vcombine.low %v3505_v0, %v3509_v32  ;;  %v3513_v51 = vsel %vm6765_vm14, %v5398_v9, %v3512_v18  ;;  %v1557_v12 = vsel %vm6625_vm11, %v1552_v41, %v1556_v48  ;;  %v1566_v19 = vrot.slane %v1565_v63, 4  ;;  %v3477_v44 = vld [vmem:[#allocation2 + $0xd8] sm:$0xe] }
 0x1db   : > { %v1582_v4 = vshll.u32 %v6970_v36, 16  ;;  %v3517_v13 = vsel %vm6765_vm14, %v5399_v43, %v3516_v6  ;;  %v1575_v22 = vrot.slane %v1573_v7, 4  ;;  %v1587_v29 = vshrl.u32 %v1531_v24, 16  ;;  %v1537_v32 = vld [vmem:[#allocation2 + $0x38] sm:$0xf] }
 0x1dc   : > { %v1590_v26 = vshll.u32 %v1531_v24, 16  ;;  %v1571_v61 = vsel %vm6625_vm11, %v1566_v19, %v1570_v35  ;;  %v5412_v45 = vcombine.low %v3513_v51, %v3517_v13  ;;  %v1578_v14 = vrot.slane %v1576_v30, 5  ;;  %v1539_v6 = vld [vmem:[#allocation2 + $0x40] sm:$0xf] }
 0x1dd   : > { %v1584_v57 = vrot.slane %v1582_v4, 5  ;;  %v5234_v62 = vcombine.low %v1557_v12, %v1571_v61  ;;  %5909 = vmatmul.mubr.msk.bf16.vlgmr.msra.gmra.mrb[0].mxu1 %vm387_vm0, %v5411_v5  ;;  %v1589_v36 = vrot.slane %v1587_v29, 4  ;;  %v1596_v11 = vshll.u32 %v6972_v25, 16  ;;  %v6184_v25 = vld [vmem:[%s7573_s5 + $0x150] sm:$0xff]   ;;  %v6183_v12 = vld [vmem:[%s7573_s5 + $0x48] sm:$0xff]  }
 0x1de   : > { %v1592_v3 = vrot.slane %v1590_v26, 5  ;;  %5912 = vmatprep.mubr.msk.bf16.mxu1 %vm387_vm0, %v5412_v45  ;;  %5917 = vmatpush3.bf16.msra.mxu1 %v7024_v8  ;;  %v1579_v50 = vor.u32 %v1578_v14, %v1575_v22  ;;  %v1601_v48 = vshrl.u32 %v1533_v37, 16  ;;  %v1604_v31 = vshll.u32 %v1533_v37, 16  ;;  %v3804_v61 = vld [vmem:[#allocation2 + $0xf8] sm:$0xf] }
 0x1df   : > { %v1610_v53 = vshll.u32 %v7032_v40, 16  ;;  %5780 = vmatprep.mubr.msk.bf16.mxu0 %vm387_vm0, %v5234_v62  ;;  %5918 = vmatprep.subr.bf16.mxu1 %v6182_v27  ;;  %v1598_v2 = vrot.slane %v1596_v11, 5  ;;  %v1615_v55 = vshrl.u32 %v1535_v28, 16  ;;  %v1618_v17 = vshll.u32 %v1535_v28, 16  ;;  %v7144_v62 = vld [vmem:[%s7573_s5 + $0x160] sm:$0xff]  }
 0x1e0   : > { %v1593_v54 = vor.u32 %v1592_v3, %v1589_v36  ;;  %v1580_v59 = vrot.slane %v1579_v50, 4  ;;  %v1603_v60 = vrot.slane %v1601_v48, 4  ;;  %v1606_v46 = vrot.slane %v1604_v31, 5  ;;  %v3806_v36 = vld [vmem:[#allocation2 + $0x100] sm:$0xf] }
 0x1e1   : > { %v1612_v8 = vrot.slane %v1610_v53, 5  ;;  %v1617_v35 = vrot.slane %v1615_v55, 4  ;;  %v1620_v0 = vrot.slane %v1618_v17, 5  ;;  %v1624_v40 = vshll.u32 %v7038_v34, 16  ;;  %v6187_v34 = vld [vmem:[%s7573_s5 + $0x158] sm:$0xff]  }
 0x1e2   : > { %v1594_v16 = vrot.slane %v1593_v54, 4  ;;  %v1585_v9 = vsel %vm6625_vm11, %v1580_v59, %v1584_v57  ;;  %5919 = vmatpush3.bf16.msra.mxu1 %v6182_v27  ;;  %v1607_v18 = vor.u32 %v1606_v46, %v1603_v60  ;;  %v5400_v41 = vrot.slane %v3476_v21, 9  ;;  %v3805_v50 = vld [vmem:[#allocation2 + $0xfc] sm:$0x1]  ;;  %v3808_v55 = vld [vmem:[#allocation2 + $0x108] sm:$0xf] }
 0x1e3   : > { %v3520_v63 = vrot.slane %v7015_v52, 5  ;;  %v1621_v24 = vor.u32 %v1620_v0, %v1617_v35  ;;  %v1626_v5 = vrot.slane %v1624_v40, 5  ;;  %v5401_v51 = vrot.slane %v3477_v44, 9  ;;  %5920 = vmatprep.subr.bf16.mxu1 %v6184_v25  ;;  %v3807_v59 = vld [vmem:[#allocation2 + $0x104] sm:$0x1] }
 0x1e4   : > { %v1599_v43 = vsel %vm6625_vm11, %v1594_v16, %v1598_v2  ;;  %v1608_v37 = vrot.slane %v1607_v18, 4  ;;  %v3524_v19 = vrot.slane %v7019_v56, 5  ;;  %v1629_v4 = vshrl.u32 %v1537_v32, 16  ;;  %v3809_v0 = vld [vmem:[#allocation2 + $0x10c] sm:$0x1] }
 0x1e5   : > { %v5235_v7 = vcombine.low %v1585_v9, %v1599_v43  ;;  %v3521_v52 = vsel %vm6765_vm14, %v5400_v41, %v3520_v63  ;;  %v1622_v30 = vrot.slane %v1621_v24, 4  ;;  %v1632_v13 = vshll.u32 %v1537_v32, 16  ;;  %v6189_v9 = vld [vmem:[%s7573_s5 + $0x58] sm:$0xff]   ;;  %v6190_v32 = vld [vmem:[#allocation2 + $0x100] ss:$8 sps:$4 sm:$0xff]  }
 0x1e6   : > { %v1638_v27 = vshll.u32 %v7050_v10, 16  ;;  %v1613_v22 = vsel %vm6625_vm11, %v1608_v37, %v1612_v8  ;;  %v3525_v29 = vsel %vm6765_vm14, %v5401_v51, %v3524_v19  ;;  %5921 = vmatpush3.bf16.msra.mxu1 %v6184_v25  ;;  %v1643_v26 = vshrl.u32 %v1539_v6, 16  ;;  %v6186_v10 = vld [vmem:[%s7573_s5 + $0x50] sm:$0xff]  }
 0x1e7   : > { %5781 = vmatmul.mubr.msk.bf16.vlgmr.msra.gmra.mrb[8].mxu0 %vm387_vm0, %v5235_v7  ;;  %v1646_v28 = vshll.u32 %v1539_v6, 16  ;;  %v1627_v56 = vsel %vm6625_vm11, %v1622_v30, %v1626_v5  ;;  %v5413_v45 = vcombine.low %v3521_v52, %v3525_v29  ;;  %5922 = vmatprep.subr.bf16.mxu1 %v6187_v34  ;;  %v1631_v14 = vrot.slane %v1629_v4, 4  ;;  %v3810_v51 = vld [vmem:[#allocation2 + $0x110] sm:$0xf]  ;;  %v6188_v6 = vld [vmem:[#allocation2 + $0x58] ss:$8 sps:$4 sm:$0xff]  }
 0x1e8   : > { %5789 = vmatpush3.bf16.msra.mxu0 %v7070_v20  ;;  %v1634_v57 = vrot.slane %v1632_v13, 5  ;;  %v5236_v3 = vcombine.low %v1613_v22, %v1627_v56  ;;  %v6185_v20 = vld [vmem:[#allocation2 + $0xf0] ss:$8 sps:$4 sm:$0xff]   ;;  %v1645_v11 = vrot.slane %v1643_v26, 4  ;;  %v3831_v48 = vsel %vm6625_vm11, %v6835_v23, %v6837_v15  ;;  %v7165_v7 = vld [vmem:[%s7573_s5 + $0x60] sm:$0xff]   ;;  %v6194_v13 = vld [vmem:[%s7573_s5 + $0x168] sm:$0xff]  }
 0x1e9   : > { %5790 = vmatprep.subr.bf16.mxu0 %v6183_v12  ;;  %v1648_v21 = vrot.slane %v1646_v28, 5  ;;  %5913 = vmatmul.mubr.msk.bf16.gmra.mrb[4].mxu1 %vm387_vm0, %v5413_v45  ;;  %v1652_v53 = vshll.u32 %v7055_v39, 16  ;;  %v3833_v54 = vshrl.u32 %v3804_v61, 16  ;;  %v3836_v2 = vshll.u32 %v3804_v61, 16  ;;  %v3811_v19 = vld [vmem:[#allocation2 + $0x114] sm:$0x1] }
 0x1ea   : > { %v1635_v31 = vor.u32 %v1634_v57, %v1631_v14  ;;  %5784 = vmatprep.mubr.msk.bf16.mxu0 %vm387_vm0, %v5236_v3  ;;  %5924 = vmatprep.mubr.msk.bf16.mxu1 %vm387_vm0, %v6185_v20  ;;  %v1640_v17 = vrot.slane %v1638_v27, 5  ;;  %v3847_v60 = vshrl.u32 %v3806_v36, 16  ;;  %v3850_v46 = vshll.u32 %v3806_v36, 16  ;;  %v3812_v30 = vld [vmem:[#allocation2 + $0x118] sm:$0xf]  ;;  %v6199_v23 = vld [vmem:[%s7573_s5 + $0x170] sm:$0xff]  }
 0x1eb   : > { %v1649_v25 = vor.u32 %v1648_v21, %v1645_v11  ;;  %5923 = vmatpush3.bf16.msra.mxu1 %v6187_v34  ;;  %v3835_v44 = vrot.slane %v3833_v54, 4  ;;  %v3838_v16 = vrot.slane %v3836_v2, 5  ;;  %v3842_v35 = vshll.u32 %v3805_v50, 16  ;;  %v3813_v26 = vld [vmem:[#allocation2 + $0x11c] sm:$0x1] }
 0x1ec   : > { %5791 = vmatpush3.bf16.msra.mxu0 %v6183_v12  ;;  %v1636_v8 = vrot.slane %v1635_v31, 4  ;;  %v1654_v40 = vrot.slane %v1652_v53, 5  ;;  %5932 = vmatprep.subr.bf16.mxu1 %v7144_v62  ;;  %v3849_v18 = vrot.slane %v3847_v60, 4  ;;  %v3852_v41 = vrot.slane %v3850_v46, 5  ;;  %v6192_v28 = vld [vmem:[#allocation2 + $0x110] ss:$8 sps:$4 sm:$0xff]  }
 0x1ed   : > { %5792 = vmatprep.subr.bf16.mxu0 %v6186_v10  ;;  %v1650_v39 = vrot.slane %v1649_v25, 4  ;;  %v3839_v43 = vor.u32 %v3838_v16, %v3835_v44  ;;  %v3856_v24 = vshll.u32 %v3807_v59, 16  ;;  %v3861_v5 = vshrl.u32 %v3808_v55, 16  ;;  %v3814_v20 = vld [vmem:[#allocation2 + $0x120] sm:$0xf] }
 0x1ee   : > { %v1641_v63 = vsel %vm6625_vm11, %v1636_v8, %v1640_v17  ;;  %v3853_v37 = vor.u32 %v3852_v41, %v3849_v18  ;;  %v3864_v12 = vshll.u32 %v3808_v55, 16  ;;  %v3870_v52 = vshll.u32 %v3809_v0, 16  ;;  %v3816_v53 = vld [vmem:[#allocation2 + $0x128] sm:$0xf]  ;;  %v3815_v25 = vld [vmem:[#allocation2 + $0x124] sm:$0x1] }
 0x1ef   : > { %v1655_v34 = vsel %vm6625_vm11, %v1650_v39, %v1654_v40  ;;  %v3840_v27 = vrot.slane %v3839_v43, 4  ;;  %v3844_v22 = vrot.slane %v3842_v35, 5  ;;  %v3863_v29 = vrot.slane %v3861_v5, 4  ;;  %v6195_v46 = vld [vmem:[#allocation2 + $0x68] ss:$8 sps:$4 sm:$0xff]  }
 0x1f0   : > { %v5237_v4 = vcombine.low %v1641_v63, %v1655_v34  ;;  %5793 = vmatpush3.bf16.msra.mxu0 %v6186_v10  ;;  %v3854_v61 = vrot.slane %v3853_v37, 4  ;;  %v3858_v56 = vrot.slane %v3856_v24, 5  ;;  %v3866_v45 = vrot.slane %v3864_v12, 5  ;;  %v3817_v16 = vld [vmem:[#allocation2 + $0x12c] sm:$0x1] }
 0x1f1   : > { %5794 = vmatprep.subr.bf16.mxu0 %v6189_v9  ;;  %v3875_v14 = vshrl.u32 %v3810_v51, 16  ;;  %5925 = vmatmul.mubr.msk.bf16.vlgmr.msra.gmra.mrb[0].mxu1 %vm387_vm0, %v6190_v32  ;;  %v3845_v10 = vsel %vm6625_vm11, %v3840_v27, %v3844_v22  ;;  %v3878_v57 = vshll.u32 %v3810_v51, 16  ;;  %v3884_v36 = vshll.u32 %v3811_v19, 16  ;;  %v6196_v0 = vld [vmem:[#allocation2 + $0x78] ss:$8 sps:$4 sm:$0xff]   ;;  %v6197_v39 = vld [vmem:[%s7573_s5 + $0x68] sm:$0xff]  }
 0x1f2   : > { %5785 = vmatmul.mubr.msk.bf16.gmra.mrb[12].mxu0 %vm387_vm0, %v5237_v4  ;;  %v3889_v3 = vshrl.u32 %v3812_v30, 16  ;;  %5928 = vmatprep.mubr.msk.bf16.mxu1 %vm387_vm0, %v6192_v28  ;;  %v7181_v11 = vcombine.low %v3831_v48, %v3845_v10  ;;  %v3867_v21 = vor.u32 %v3866_v45, %v3863_v29  ;;  %v3872_v50 = vrot.slane %v3870_v52, 5  ;;  %v4060_v63 = vld [vmem:[#allocation2 + $0xa8] sm:$0xf]  ;;  %v7197_v34 = vld [vmem:[#allocation2 + $0xac] sm:$0x1] }
 0x1f3   : > { %5796 = vmatprep.mubr.msk.bf16.mxu0 %vm387_vm0, %v6188_v6  ;;  %v3877_v31 = vrot.slane %v3875_v14, 4  ;;  %5933 = vmatpush3.bf16.msra.mxu1 %v7144_v62  ;;  %v3859_v54 = vsel %vm6625_vm11, %v3854_v61, %v3858_v56  ;;  %v3880_v2 = vrot.slane %v3878_v57, 5  ;;  %v3892_v17 = vshll.u32 %v3812_v30, 16  ;;  %v6198_v32 = vld [vmem:[#allocation2 + $0x120] ss:$8 sps:$4 sm:$0xff]   ;;  %v6201_v6 = vld [vmem:[%s7573_s5 + $0x178] sm:$0xff]  }
 0x1f4   : > { %5795 = vmatpush3.bf16.msra.mxu0 %v6189_v9  ;;  %v3891_v55 = vrot.slane %v3889_v3, 4  ;;  %5934 = vmatprep.subr.bf16.mxu1 %v6194_v13  ;;  %v3868_v15 = vrot.slane %v3867_v21, 4  ;;  %v3898_v48 = vshll.u32 %v3813_v26, 16  ;;  %v3903_v59 = vshrl.u32 %v3814_v20, 16  ;;  %v4062_v30 = vld [vmem:[#allocation2 + $0xb0] sm:$0xf] }
 0x1f5   : > { %5804 = vmatprep.subr.bf16.mxu0 %v7165_v7  ;;  %v3906_v60 = vshll.u32 %v3814_v20, 16  ;;  %v3881_v62 = vor.u32 %v3880_v2, %v3877_v31  ;;  %v3886_v8 = vrot.slane %v3884_v36, 5  ;;  %v3894_v44 = vrot.slane %v3892_v17, 5  ;;  %v7206_v27 = vld [vmem:[#allocation2 + $0xb4] sm:$0x1]  ;;  %v6204_v20 = vld [vmem:[%s7573_s5 + $0x180] sm:$0xff]  }
 0x1f6   : > { %v3917_v35 = vshrl.u32 %v3816_v53, 16  ;;  %v3873_v40 = vsel %vm6625_vm11, %v3868_v15, %v3872_v50  ;;  %v3905_v9 = vrot.slane %v3903_v59, 4  ;;  %v3912_v41 = vshll.u32 %v3815_v25, 16  ;;  %v2363_v45 = vld [vmem:[#allocation2 + $0x10] sm:$0xf] }
 0x1f7   : > { %v3908_v18 = vrot.slane %v3906_v60, 5  ;;  %5935 = vmatpush3.bf16.msra.mxu1 %v6194_v13  ;;  %v7195_v43 = vcombine.low %v3859_v54, %v3873_v40  ;;  %v3882_v24 = vrot.slane %v3881_v62, 4  ;;  %v3895_v5 = vor.u32 %v3894_v44, %v3891_v55  ;;  %v6200_v14 = vld [vmem:[%s7573_s5 + $0x70] sm:$0xff]   ;;  %v2365_v54 = vld [vmem:[#allocation2 + $0x18] sm:$0xf] }
 0x1f8   : > { %v3900_v51 = vrot.slane %v3898_v48, 5  ;;  %5936 = vmatprep.subr.bf16.mxu1 %v6199_v23  ;;  %v3919_v12 = vrot.slane %v3917_v35, 4  ;;  %v3920_v52 = vshll.u32 %v3816_v53, 16  ;;  %v3926_v19 = vshll.u32 %v3817_v16, 16  ;;  %v7216_v3 = vld [vmem:[#allocation2 + $0x14] sm:$0x1] }
 0x1f9   : > { %v3909_v37 = vor.u32 %v3908_v18, %v3905_v9  ;;  %5929 = vmatmul.mubr.msk.bf16.gmra.mrb[4].mxu1 %vm387_vm0, %v6198_v32  ;;  %v3887_v4 = vsel %vm6625_vm11, %v3882_v24, %v3886_v8  ;;  %v3896_v13 = vrot.slane %v3895_v5, 4  ;;  %v4077_v22 = vshrl.u32 %v4060_v63, 16  ;;  %v6202_v2 = vld [vmem:[#allocation2 + $0x88] ss:$8 sps:$4 sm:$0xff]   ;;  %v6203_v55 = vld [vmem:[%s7573_s5 + $0x78] sm:$0xff]  }
 0x1fa   : > { %5797 = vmatmul.mubr.msk.bf16.vlgmr.msra.gmra.mrb[8].mxu0 %vm387_vm0, %v6195_v46  ;;  %v4080_v29 = vshll.u32 %v4060_v63, 16  ;;  %v3914_v28 = vrot.slane %v3912_v41, 5  ;;  %v3922_v61 = vrot.slane %v3920_v52, 5  ;;  %v4086_v56 = vshll.u32 %v7197_v34, 16  ;;  %5940 = vmatprep.mubr.msk.bf16.mxu1 %vm387_vm0, %v7181_v11  ;;  %v4064_v15 = vld [vmem:[#allocation2 + $0xb8] sm:$0xf] }
 0x1fb   : > { %5805 = vmatpush3.bf16.msra.mxu0 %v7165_v7  ;;  %5800 = vmatprep.mubr.msk.bf16.mxu0 %vm387_vm0, %v6196_v0  ;;  %v3910_v26 = vrot.slane %v3909_v37, 4  ;;  %v3901_v10 = vsel %vm6625_vm11, %v3896_v13, %v3900_v51  ;;  %v4079_v57 = vrot.slane %v4077_v22, 4  ;;  %v4091_v7 = vshrl.u32 %v4062_v30, 16  ;;  %v7230_v62 = vld [vmem:[#allocation2 + $0xbc] sm:$0x1]  ;;  %v6206_v63 = vld [vmem:[%s7573_s5 + $0x188] sm:$0xff]  }
 0x1fc   : > { %5806 = vmatprep.subr.bf16.mxu0 %v6197_v39  ;;  %5937 = vmatpush3.bf16.msra.mxu1 %v6199_v23  ;;  %v4082_v36 = vrot.slane %v4080_v29, 5  ;;  %v5452_v21 = vcombine.low %v3887_v4, %v3901_v10  ;;  %v3923_v31 = vor.u32 %v3922_v61, %v3919_v12  ;;  %v3928_v53 = vrot.slane %v3926_v19, 5  ;;  %v7232_v35 = vld [vmem:[#allocation2 + $0x1c] sm:$0x1]  ;;  %v4066_v41 = vld [vmem:[#allocation2 + $0xc0] sm:$0xf] }
 0x1fd   : > { %5938 = vmatprep.subr.bf16.mxu1 %v6201_v6  ;;  %v3915_v50 = vsel %vm6625_vm11, %v3910_v26, %v3914_v28  ;;  %v4093_v25 = vrot.slane %v4091_v7, 4  ;;  %v4094_v11 = vshll.u32 %v4062_v30, 16  ;;  %v4100_v23 = vshll.u32 %v7206_v27, 16  ;;  %v7250_v19 = vld [vmem:[#allocation2 + $0xc4] sm:$0x1] }
 0x1fe   : > { %v4083_v17 = vor.u32 %v4082_v36, %v4079_v57  ;;  %v3924_v48 = vrot.slane %v3923_v31, 4  ;;  %v2380_v59 = vshrl.u32 %v2363_v45, 16  ;;  %v2383_v60 = vshll.u32 %v2363_v45, 16  ;;  %v4068_v29 = vld [vmem:[#allocation2 + $0xc8] sm:$0xf] }
 0x1ff   : > { %5807 = vmatpush3.bf16.msra.mxu0 %v6197_v39  ;;  %v2389_v46 = vshll.u32 %v7216_v3, 16  ;;  %v4088_v44 = vrot.slane %v4086_v56, 5  ;;  %v4096_v16 = vrot.slane %v4094_v11, 5  ;;  %v2394_v0 = vshrl.u32 %v2365_v54, 16  ;;  %v7258_v45 = vld [vmem:[#allocation2 + $0xcc] sm:$0x1] }
 0x200   : > { %5808 = vmatprep.subr.bf16.mxu0 %v6200_v14  ;;  %5939 = vmatpush3.bf16.msra.mxu1 %v6201_v6  ;;  %v4084_v8 = vrot.slane %v4083_v17, 4  ;;  %v3929_v40 = vsel %vm6625_vm11, %v3924_v48, %v3928_v53  ;;  %v4102_v39 = vrot.slane %v4100_v23, 5  ;;  %v2382_v9 = vrot.slane %v2380_v59, 4  ;;  %v6205_v6 = vld [vmem:[%s7573_s5 + $0x80] sm:$0xff]   ;;  %v4070_v7 = vld [vmem:[#allocation2 + $0xd0] sm:$0xf] }
 0x201   : > { %5948 = vmatprep.subr.bf16.mxu1 %v6204_v20  ;;  %v2385_v18 = vrot.slane %v2383_v60, 5  ;;  %v7240_v32 = vcombine.low %v3915_v50, %v3929_v40  ;;  %v4097_v24 = vor.u32 %v4096_v16, %v4093_v25  ;;  %v7242_v5 = vrot.slane %v2389_v46, 5  ;;  %v6207_v53 = vld [vmem:[%s7573_s5 + $0x88] sm:$0xff]   ;;  %v6210_v59 = vld [vmem:[%s7573_s5 + $0x198] sm:$0xff]   ;;  %v2367_v16 = vld [vmem:[#allocation2 + $0x20] sm:$0xf] }
 0x202   : > { %5801 = vmatmul.mubr.msk.bf16.gmra.mrb[12].mxu0 %vm387_vm0, %v6202_v2  ;;  %v2396_v51 = vrot.slane %v2394_v0, 4  ;;  %v2397_v12 = vshll.u32 %v2365_v54, 16  ;;  %v2403_v52 = vshll.u32 %v7232_v35, 16  ;;  %v4105_v30 = vshrl.u32 %v4064_v15, 16 }
 0x203   : > { %5809 = vmatpush3.bf16.msra.mxu0 %v6200_v14  ;;  %5812 = vmatprep.mubr.msk.bf16.mxu0 %vm387_vm0, %v6784_v47  ;;  %v2386_v37 = vor.u32 %v2385_v18, %v2382_v9  ;;  %v4098_v4 = vrot.slane %v4097_v24, 4  ;;  %v4108_v13 = vshll.u32 %v4064_v15, 16  ;;  %v4114_v22 = vshll.u32 %v7230_v62, 16  ;;  %v7271_v15 = vld [vmem:[#allocation2 + $0xd4] sm:$0x1] }
 0x204   : > { %5810 = vmatprep.subr.bf16.mxu0 %v6203_v55  ;;  %5941 = vmatmul.mubr.msk.bf16.vlgmr.msra.gmra.mrb[0].mxu1 %vm387_vm0, %v7195_v43  ;;  %v4119_v47 = vshrl.u32 %v4066_v41, 16  ;;  %v4089_v26 = vsel %vm6625_vm11, %v4084_v8, %v4088_v44  ;;  %v2399_v61 = vrot.slane %v2397_v12, 5  ;;  %v4107_v56 = vrot.slane %v4105_v30, 4  ;;  %v6208_v43 = vld [vmem:[%s7573_s5 + $0x190] sm:$0xff]   ;;  %v2369_v9 = vld [vmem:[#allocation2 + $0x28] sm:$0xf] }
 0x205   : > { %5944 = vmatprep.mubr.msk.bf16.mxu1 %vm387_vm0, %v5452_v21  ;;  %5949 = vmatpush3.bf16.msra.mxu1 %v6204_v20  ;;  %v2387_v28 = vrot.slane %v2386_v37, 4  ;;  %v4103_v14 = vsel %vm6625_vm11, %v4098_v4, %v4102_v39  ;;  %v2405_v10 = vrot.slane %v2403_v52, 5  ;;  %v4110_v57 = vrot.slane %v4108_v13, 5  ;;  %v6209_v18 = vld [vmem:[%s7573_s5 + $0x90] sm:$0xff]   ;;  %v7297_v37 = vld [vmem:[#allocation2 + $0x2c] sm:$0x1] }
 0x206   : > { %5950 = vmatprep.subr.bf16.mxu1 %v6206_v63  ;;  %v7265_v36 = vrot.slane %v4114_v22, 5  ;;  %v5470_v20 = vcombine.low %v4089_v26, %v4103_v14  ;;  %v2400_v21 = vor.u32 %v2399_v61, %v2396_v51  ;;  %v4121_v50 = vrot.slane %v4119_v47, 4  ;;  %v6212_v30 = vld [vmem:[%s7573_s5 + $0x1a0] sm:$0xff]   ;;  %v2371_v47 = vld [vmem:[#allocation2 + $0x30] sm:$0xf] }
 0x207   : > { %5811 = vmatpush3.bf16.msra.mxu0 %v6203_v55  ;;  %v4122_v31 = vshll.u32 %v4066_v41, 16  ;;  %v4111_v54 = vor.u32 %v4110_v57, %v4107_v56  ;;  %v4128_v2 = vshll.u32 %v7250_v19, 16  ;;  %v4133_v17 = vshrl.u32 %v4068_v29, 16  ;;  %v7308_v56 = vld [vmem:[#allocation2 + $0x34] sm:$0x1] }
 0x208   : > { %5820 = vmatprep.subr.bf16.mxu0 %v6205_v6  ;;  %v4136_v25 = vshll.u32 %v4068_v29, 16  ;;  %v2401_v11 = vrot.slane %v2400_v21, 4  ;;  %v4142_v55 = vshll.u32 %v7258_v45, 16  ;;  %v4147_v48 = vshrl.u32 %v4070_v7, 16 }
 0x209   : > { %5951 = vmatpush3.bf16.msra.mxu1 %v6206_v63  ;;  %v4124_v23 = vrot.slane %v4122_v31, 5  ;;  %v2392_v60 = vsel %vm6625_vm11, %v2387_v28, %v7242_v5  ;;  %v4112_v46 = vrot.slane %v4111_v54, 4  ;;  %v4135_v8 = vrot.slane %v4133_v17, 4  ;;  %v7293_v5 = vld [vmem:[#allocation2 + $0x24] sm:$0x1] }
 0x20a   : > { %5813 = vmatmul.mubr.msk.bf16.vlgmr.msra.gmra.mrb[8].mxu0 %vm387_vm0, %v6795_v49  ;;  %5952 = vmatprep.subr.bf16.mxu1 %v6208_v43  ;;  %v4138_v44 = vrot.slane %v4136_v25, 5  ;;  %v2406_v49 = vsel %vm6625_vm11, %v2401_v11, %v2405_v10  ;;  %v4130_v40 = vrot.slane %v4128_v2, 5  ;;  %v7286_v39 = vrot.slane %v4142_v55, 5  ;;  %v7322_v2 = vld [vmem:[#allocation2 + $0x3c] sm:$0x1] }
 0x20b   : > { %5821 = vmatpush3.bf16.msra.mxu0 %v6205_v6  ;;  %5816 = vmatprep.mubr.msk.bf16.mxu0 %vm387_vm0, %v6797_v38  ;;  %v4125_v0 = vor.u32 %v4124_v23, %v4121_v50  ;;  %v5294_v41 = vcombine.low %v2392_v60, %v2406_v49  ;;  %v4149_v24 = vrot.slane %v4147_v48, 4  ;;  %v4150_v38 = vshll.u32 %v4070_v7, 16  ;;  %v2373_v7 = vld [vmem:[#allocation2 + $0x38] sm:$0xf]  ;;  %v4074_v49 = vld [vmem:[#allocation2 + $0xe0] sm:$0xf] }
 0x20c   : > { %5822 = vmatprep.subr.bf16.mxu0 %v6207_v53  ;;  %5945 = vmatmul.mubr.msk.bf16.gmra.mrb[4].mxu1 %vm387_vm0, %v7240_v32  ;;  %v4139_v63 = vor.u32 %v4138_v44, %v4135_v8  ;;  %v4156_v6 = vshll.u32 %v7271_v15, 16  ;;  %v2408_v12 = vshrl.u32 %v2367_v16, 16  ;;  %v2411_v32 = vshll.u32 %v2367_v16, 16  ;;  %v4072_v60 = vld [vmem:[#allocation2 + $0xd8] sm:$0xf] }
 0x20d   : > { %5953 = vmatpush3.bf16.msra.mxu1 %v6208_v43  ;;  %5956 = vmatprep.mubr.msk.bf16.mxu1 %vm387_vm0, %v5470_v20  ;;  %v4126_v51 = vrot.slane %v4125_v0, 4  ;;  %v4117_v52 = vsel %vm6625_vm11, %v4112_v46, %v7265_v36  ;;  %v4152_v13 = vrot.slane %v4150_v38, 5  ;;  %v2422_v22 = vshrl.u32 %v2369_v9, 16  ;;  %v6211_v43 = vld [vmem:[%s7573_s5 + $0x98] sm:$0xff]   ;;  %v6214_v20 = vld [vmem:[%s7573_s5 + $0x1a8] sm:$0xff]   ;;  %v6213_v46 = vld [vmem:[%s7573_s5 + $0xa0] sm:$0xff]  }
 0x20e   : > { %5954 = vmatprep.subr.bf16.mxu1 %v6210_v59  ;;  %v4140_v4 = vrot.slane %v4139_v63, 4  ;;  %v2410_v26 = vrot.slane %v2408_v12, 4  ;;  %v2413_v28 = vrot.slane %v2411_v32, 5  ;;  %v2417_v61 = vshll.u32 %v7293_v5, 16 }
 0x20f   : > { %5823 = vmatpush3.bf16.msra.mxu0 %v6207_v53  ;;  %v4131_v29 = vsel %vm6625_vm11, %v4126_v51, %v4130_v40  ;;  %v4153_v57 = vor.u32 %v4152_v13, %v4149_v24  ;;  %v4158_v36 = vrot.slane %v4156_v6, 5  ;;  %v2424_v50 = vrot.slane %v2422_v22, 4  ;;  %v6216_v51 = vld [vmem:[%s7573_s5 + $0x1b0] sm:$0xff]   ;;  %v7343_v22 = vld [vmem:[#allocation2 + $0xe4] sm:$0x1] }
 0x210   : > { %5824 = vmatprep.subr.bf16.mxu0 %v6209_v18  ;;  %v5471_v14 = vcombine.low %v4117_v52, %v4131_v29  ;;  %v4145_v10 = vsel %vm6625_vm11, %v4140_v4, %v7286_v39  ;;  %v2414_v21 = vor.u32 %v2413_v28, %v2410_v26  ;;  %v2425_v31 = vshll.u32 %v2369_v9, 16 }
 0x211   : > { %5955 = vmatpush3.bf16.msra.mxu1 %v6210_v59  ;;  %v2431_v53 = vshll.u32 %v7297_v37, 16  ;;  %v4154_v54 = vrot.slane %v4153_v57, 4  ;;  %v2436_v17 = vshrl.u32 %v2371_v47, 16  ;;  %v2439_v25 = vshll.u32 %v2371_v47, 16 }
 0x212   : > { %5817 = vmatmul.mubr.msk.bf16.gmra.mrb[12].mxu0 %vm387_vm0, %v6799_v1  ;;  %5964 = vmatprep.subr.bf16.mxu1 %v6212_v30  ;;  %v2445_v11 = vshll.u32 %v7308_v56, 16  ;;  %v2415_v23 = vrot.slane %v2414_v21, 4  ;;  %v2419_v55 = vrot.slane %v2417_v61, 5  ;;  %v2427_v48 = vrot.slane %v2425_v31, 5 }
 0x213   : > { %5825 = vmatpush3.bf16.msra.mxu0 %v6209_v18  ;;  %5828 = vmatprep.mubr.msk.bf16.mxu0 %vm387_vm0, %v5294_v41  ;;  %v2450_v59 = vshrl.u32 %v2373_v7, 16  ;;  %v4159_v1 = vsel %vm6625_vm11, %v4154_v54, %v4158_v36  ;;  %v2433_v8 = vrot.slane %v2431_v53, 5  ;;  %v2438_v44 = vrot.slane %v2436_v17, 4  ;;  %v7334_v18 = vld [vmem:[#allocation2 + $0xdc] sm:$0x1] }
 0x214   : > { %5826 = vmatprep.subr.bf16.mxu0 %v6211_v43  ;;  %5957 = vmatmul.mubr.msk.bf16.vlgmr.msra.gmra.mrb[0].mxu1 %vm387_vm0, %v5471_v14  ;;  %v2441_v16 = vrot.slane %v2439_v25, 5  ;;  %v5472_v0 = vcombine.low %v4145_v10, %v4159_v1  ;;  %v2428_v40 = vor.u32 %v2427_v48, %v2424_v50  ;;  %v7332_v39 = vrot.slane %v2445_v11, 5  ;;  %v4319_v14 = vld [vmem:[#allocation2 + $0xb0] sm:$0xe]  ;;  %v606_v50 = vld [vmem:[#allocation2 + $0x4c] sm:$0x1] }
 0x215   : > { %5965 = vmatpush3.bf16.msra.mxu1 %v6212_v30  ;;  %v2452_v9 = vrot.slane %v2450_v59, 4  ;;  %v2453_v63 = vshll.u32 %v2373_v7, 16  ;;  %v2459_v24 = vshll.u32 %v7322_v2, 16  ;;  %v4161_v38 = vshrl.u32 %v4072_v60, 16  ;;  %v4318_v30 = vld [vmem:[#allocation2 + $0xa8] sm:$0xe] }
 0x216   : > { %5966 = vmatprep.subr.bf16.mxu1 %v6214_v20  ;;  %v2442_v41 = vor.u32 %v2441_v16, %v2438_v44  ;;  %5960 = vmatprep.mubr.msk.bf16.mxu1 %vm387_vm0, %v5472_v0  ;;  %v2420_v6 = vsel %vm6625_vm11, %v2415_v23, %v2419_v55  ;;  %v2429_v12 = vrot.slane %v2428_v40, 4  ;;  %v4164_v32 = vshll.u32 %v4072_v60, 16  ;;  %v6215_v7 = vld [vmem:[%s7573_s5 + $0xa8] sm:$0xff]   ;;  %v2375_v25 = vld [vmem:[#allocation2 + $0x40] sm:$0xf] }
 0x217   : > { %5827 = vmatpush3.bf16.msra.mxu0 %v6211_v43  ;;  %v4175_v52 = vshrl.u32 %v4074_v49, 16  ;;  %v2455_v13 = vrot.slane %v2453_v63, 5  ;;  %v4163_v47 = vrot.slane %v4161_v38, 4  ;;  %v4170_v29 = vshll.u32 %v7334_v18, 16  ;;  %v2622_v63 = vld [vmem:[#allocation2 + $0x18] sm:$0xe] }
 0x218   : > { %5836 = vmatprep.subr.bf16.mxu0 %v6213_v46  ;;  %v2443_v4 = vrot.slane %v2442_v41, 4  ;;  %v2434_v26 = vsel %vm6625_vm11, %v2429_v12, %v2433_v8  ;;  %v2461_v28 = vrot.slane %v2459_v24, 5  ;;  %v4166_v61 = vrot.slane %v4164_v32, 5  ;;  %v2377_v8 = vld [vmem:[#allocation2 + $0x48] sm:$0xf] }
 0x219   : > { %5967 = vmatpush3.bf16.msra.mxu1 %v6214_v20  ;;  %v4177_v43 = vrot.slane %v4175_v52, 4  ;;  %v5295_v10 = vcombine.low %v2420_v6, %v2434_v26  ;;  %v2456_v36 = vor.u32 %v2455_v13, %v2452_v9  ;;  %v4178_v21 = vshll.u32 %v4074_v49, 16  ;;  %v6218_v20 = vld [vmem:[%s7573_s5 + $0x1b8] sm:$0xff]   ;;  %v2621_v41 = vld [vmem:[#allocation2 + $0x10] sm:$0xe] }
 0x21a   : > { %v2448_v57 = vsel %vm6625_vm11, %v2443_v4, %v7332_v39  ;;  %5968 = vmatprep.subr.bf16.mxu1 %v6216_v51  ;;  %v4167_v31 = vor.u32 %v4166_v61, %v4163_v47  ;;  %v4184_v53 = vshll.u32 %v7343_v22, 16  ;;  %v5482_v54 = vrot.slane %v4318_v30, 9  ;;  %v4320_v12 = vld [vmem:[#allocation2 + $0xb8] sm:$0xe]  ;;  %v4321_v13 = vld [vmem:[#allocation2 + $0xc0] sm:$0xe] }
 0x21b   : > { %v4344_v17 = vrot.slane %v7197_v34, 5  ;;  %5829 = vmatmul.mubr.msk.bf16.vlgmr.msra.gmra.mrb[8].mxu0 %vm387_vm0, %v5295_v10  ;;  %v2457_v11 = vrot.slane %v2456_v36, 4  ;;  %v4180_v23 = vrot.slane %v4178_v21, 5  ;;  %v5483_v55 = vrot.slane %v4319_v14, 9  ;;  %v6219_v61 = vld [vmem:[%s7573_s5 + $0xb8] sm:$0xff]  }
 0x21c   : > { %v4348_v48 = vrot.slane %v7206_v27, 5  ;;  %5837 = vmatpush3.bf16.msra.mxu0 %v6213_v46  ;;  %v4168_v59 = vrot.slane %v4167_v31, 4  ;;  %v4172_v60 = vrot.slane %v4170_v29, 5  ;;  %v607_v1 = vsel %vm6414_vm7, 0, %v606_v50  ;;  %v6217_v27 = vld [vmem:[%s7573_s5 + $0xb0] sm:$0xff]  }
 0x21d   : > { %5969 = vmatpush3.bf16.msra.mxu1 %v6216_v51  ;;  %v2462_v44 = vsel %vm6625_vm11, %v2457_v11, %v2461_v28  ;;  %5838 = vmatprep.subr.bf16.mxu0 %v6215_v7  ;;  %v4181_v34 = vor.u32 %v4180_v23, %v4177_v43  ;;  %608 = vst [vmem:[#allocation2 + $0x4c] sm:$0x1] %v607_v1  ;;  %v7370_v46 = vld [vmem:[#allocation2 + $0x44] sm:$0x1]  ;;  %v2464_v49 = vshrl.u32 %v2375_v25, 16  ;;  %v4186_v40 = vrot.slane %v4184_v53, 5 }
 0x21e   : > { %v4349_v16 = vsel %vm6765_vm14, %v5483_v55, %v4348_v48  ;;  %5970 = vmatprep.subr.bf16.mxu1 %v6218_v20  ;;  %v5296_v0 = vcombine.low %v2448_v57, %v2462_v44  ;;  %v4345_v39 = vsel %vm6765_vm14, %v5482_v54, %v4344_v17  ;;  %v2467_v9 = vshll.u32 %v2375_v25, 16  ;;  %v4322_v43 = vld [vmem:[#allocation2 + $0xc8] sm:$0xe]  ;;  %v4323_v31 = vld [vmem:[#allocation2 + $0xd0] sm:$0xe]  ;;  %v7402_v23 = vld [vmem:[%s7573_s5 + $0xc0] sm:$0xff]  }
 0x21f   : > { %v4173_v24 = vsel %vm6625_vm11, %v4168_v59, %v4172_v60  ;;  %v4182_v38 = vrot.slane %v4181_v34, 4  ;;  %v2466_v51 = vrot.slane %v2464_v49, 4  ;;  %v2478_v6 = vshrl.u32 %v2377_v8, 16  ;;  %v2623_v59 = vld [vmem:[#allocation2 + $0x20] sm:$0xe] }
 0x220   : > { %5832 = vmatprep.mubr.msk.bf16.mxu0 %vm387_vm0, %v5296_v0  ;;  %5839 = vmatpush3.bf16.msra.mxu0 %v6215_v7  ;;  %v5498_v32 = vcombine.low %v4345_v39, %v4349_v16  ;;  %v2469_v52 = vrot.slane %v2467_v9, 5  ;;  %v2473_v30 = vshll.u32 %v7370_v46, 16  ;;  %v2481_v4 = vshll.u32 %v2377_v8, 16  ;;  %v2624_v44 = vld [vmem:[#allocation2 + $0x28] sm:$0xe] }
 0x221   : > { %v4187_v47 = vsel %vm6625_vm11, %v4182_v38, %v4186_v40  ;;  %5840 = vmatprep.subr.bf16.mxu0 %v6217_v27  ;;  %v2480_v29 = vrot.slane %v2478_v6, 4  ;;  %5971 = vmatpush3.bf16.msra.mxu1 %v6218_v20  ;;  %v5306_v26 = vrot.slane %v2621_v41, 9  ;;  %v2647_v28 = vrot.slane %v7216_v3, 5  ;;  %v2625_v49 = vld [vmem:[#allocation2 + $0x30] sm:$0xe] }
 0x222   : > { %v5473_v14 = vcombine.low %v4173_v24, %v4187_v47  ;;  %v2470_v10 = vor.u32 %v2469_v52, %v2466_v51  ;;  %v2483_v57 = vrot.slane %v2481_v4, 5  ;;  %v5307_v36 = vrot.slane %v2622_v63, 9  ;;  %5980 = vmatprep.subr.bf16.mxu1 %v7375_v33  ;;  %v2626_v41 = vld [vmem:[#allocation2 + $0x38] sm:$0xe]  ;;  %v4325_v63 = vld [vmem:[#allocation2 + $0xe0] sm:$0xe] }
 0x223   : > { %v2651_v7 = vrot.slane %v7232_v35, 5  ;;  %v5484_v21 = vrot.slane %v4320_v12, 9  ;;  %v4352_v50 = vrot.slane %v7230_v62, 5  ;;  %v5485_v20 = vrot.slane %v4321_v13, 9  ;;  %v6222_v52 = vld [vmem:[%s7573_s5 + $0x1c8] sm:$0xff]  }
 0x224   : > { %5961 = vmatmul.mubr.msk.bf16.gmra.mrb[4].mxu1 %vm387_vm0, %v5473_v14  ;;  %v7393_v3 = vld [vmem:[#allocation2 + $0x4c] sm:$0x1]  ;;  %v2471_v53 = vrot.slane %v2470_v10, 4  ;;  %v2484_v54 = vor.u32 %v2483_v57, %v2480_v29  ;;  %5841 = vmatpush3.bf16.msra.mxu0 %v6217_v27  ;;  %v4356_v17 = vrot.slane %v7250_v19, 5  ;;  %v5486_v25 = vrot.slane %v4322_v43, 9 }
 0x225   : > { %5972 = vmatprep.mubr.msk.bf16.mxu1 %vm387_vm0, %v5498_v32  ;;  %v2475_v11 = vrot.slane %v2473_v30, 5  ;;  %v2487_v35 = vshll.u32 %v7393_v3, 16  ;;  %5842 = vmatprep.subr.bf16.mxu0 %v6219_v61  ;;  %v4360_v62 = vrot.slane %v7258_v45, 5  ;;  %v2648_v1 = vsel %vm6765_vm14, %v5306_v26, %v2647_v28  ;;  %v2627_v43 = vld [vmem:[#allocation2 + $0x40] sm:$0xe] }
 0x226   : > { %v2485_v55 = vrot.slane %v2484_v54, 4  ;;  %v4357_v48 = vsel %vm6765_vm14, %v5485_v20, %v4356_v17  ;;  %v5487_v8 = vrot.slane %v4323_v31, 9  ;;  %v2652_v45 = vsel %vm6765_vm14, %v5307_v36, %v2651_v7  ;;  %v2628_v14 = vld [vmem:[#allocation2 + $0x48] sm:$0xe]  ;;  %v4658_v36 = vld [vmem:[#allocation2 + $0x118] sm:$0xf] }
 0x227   : > { %v2476_v19 = vsel %vm6625_vm11, %v2471_v53, %v2475_v11  ;;  %v2489_v60 = vrot.slane %v2487_v35, 5  ;;  %v4353_v34 = vsel %vm6765_vm14, %v5484_v21, %v4352_v50  ;;  %v4361_v16 = vsel %vm6765_vm14, %v5486_v25, %v4360_v62  ;;  %v6223_v7 = vld [vmem:[%s7573_s5 + $0xc8] sm:$0xff]   ;;  %v6227_v54 = vld [vmem:[%s7573_s5 + $0x1d8] sm:$0xff]  }
 0x228   : > { %5843 = vmatpush3.bf16.msra.mxu0 %v6219_v61  ;;  %v4364_v27 = vrot.slane %v7271_v15, 5  ;;  %v5499_v40 = vcombine.low %v4353_v34, %v4357_v48  ;;  %v5308_v39 = vrot.slane %v2623_v59, 9  ;;  %v2655_v9 = vrot.slane %v7293_v5, 5  ;;  %v4324_v15 = vld [vmem:[#allocation2 + $0xd8] sm:$0xe]  ;;  %v6224_v61 = vld [vmem:[%s7573_s5 + $0x1d0] sm:$0xff]  }
 0x229   : > { %v2490_v0 = vsel %vm6625_vm11, %v2485_v55, %v2489_v60  ;;  %5852 = vmatprep.subr.bf16.mxu0 %v7402_v23  ;;  %v5309_v51 = vrot.slane %v2624_v44, 9  ;;  %v2659_v6 = vrot.slane %v7297_v37, 5  ;;  %v5322_v12 = vcombine.low %v2648_v1, %v2652_v45  ;;  %v4652_v55 = vld [vmem:[#allocation2 + $0x100] sm:$0xf]  ;;  %v4650_v59 = vld [vmem:[#allocation2 + $0xf8] sm:$0xf] }
 0x22a   : > { %v5297_v24 = vcombine.low %v2476_v19, %v2490_v0  ;;  %v4365_v38 = vsel %vm6765_vm14, %v5487_v8, %v4364_v27  ;;  %v5310_v30 = vrot.slane %v2625_v49, 9  ;;  %v2663_v5 = vrot.slane %v7308_v56, 5  ;;  %v6225_v48 = vld [vmem:[#allocation2 + $0xf8] ss:$8 sps:$4 sm:$0xff]   ;;  %v4661_v0 = vld [vmem:[#allocation2 + $0x124] sm:$0x1] }
 0x22b   : > { %v5500_v32 = vcombine.low %v4361_v16, %v4365_v38  ;;  %v5311_v4 = vrot.slane %v2626_v41, 9  ;;  %v2667_v13 = vrot.slane %v7322_v2, 5  ;;  %v5489_v47 = vrot.slane %v4325_v63, 9  ;;  %v7474_v1 = vld [vmem:[%s7573_s5 + $0x1e0] sm:$0xff]   ;;  %v4664_v41 = vld [vmem:[#allocation2 + $0x130] sm:$0xf] }
 0x22c   : > { %5833 = vmatmul.mubr.msk.bf16.gmra.mrb[12].mxu0 %vm387_vm0, %v5297_v24  ;;  %5973 = vmatmul.mubr.msk.bf16.vlgmr.msra.gmra.mrb[0].mxu1 %vm387_vm0, %v5499_v40  ;;  %v5488_v37 = vrot.slane %v4324_v15, 9  ;;  %v4368_v29 = vrot.slane %v7334_v18, 5  ;;  %v4372_v26 = vrot.slane %v7343_v22, 5  ;;  %v2656_v28 = vsel %vm6765_vm14, %v5308_v39, %v2655_v9  ;;  %v4660_v18 = vld [vmem:[#allocation2 + $0x120] sm:$0xf] }
 0x22d   : > { %5844 = vmatprep.mubr.msk.bf16.mxu0 %vm387_vm0, %v5322_v12  ;;  %5976 = vmatprep.mubr.msk.bf16.mxu1 %vm387_vm0, %v5500_v32  ;;  %v2660_v56 = vsel %vm6765_vm14, %v5309_v51, %v2659_v6  ;;  %v2664_v22 = vsel %vm6765_vm14, %v5310_v30, %v2663_v5  ;;  %v5312_v50 = vrot.slane %v2627_v43, 9  ;;  %v4737_v20 = vshrl.u32 %v4660_v18, 16  ;;  %v6228_v49 = vld [vmem:[#allocation2 + $0x60] ss:$8 sps:$4 sm:$0xff]   ;;  %v4659_v63 = vld [vmem:[#allocation2 + $0x11c] sm:$0x1] }
 0x22e   : > { %5981 = vmatpush3.bf16.msra.mxu1 %v7375_v33  ;;  %v4373_v2 = vsel %vm6765_vm14, %v5489_v47, %v4372_v26  ;;  %v2668_v33 = vsel %vm6765_vm14, %v5311_v4, %v2667_v13  ;;  %v5323_v10 = vcombine.low %v2656_v28, %v2660_v56  ;;  %v4369_v57 = vsel %vm6765_vm14, %v5488_v37, %v4368_v29  ;;  %v6230_v39 = vld [vmem:[#allocation2 + $0x108] ss:$8 sps:$4 sm:$0xff]   ;;  %v6232_v5 = vld [vmem:[#allocation2 + $0x118] ss:$8 sps:$4 sm:$0xff]   ;;  %v4653_v4 = vld [vmem:[#allocation2 + $0x104] sm:$0x1] }
 0x22f   : > { %5982 = vmatprep.subr.bf16.mxu1 %v6222_v52  ;;  %v5501_v21 = vcombine.low %v4369_v57, %v4373_v2  ;;  %v4740_v31 = vshll.u32 %v4660_v18, 16  ;;  %v5324_v53 = vcombine.low %v2664_v22, %v2668_v33  ;;  %v2671_v17 = vrot.slane %v7370_v46, 5  ;;  %v6226_v46 = vld [vmem:[%s7573_s5 + $0xd0] sm:$0xff]   ;;  %v4662_v51 = vld [vmem:[#allocation2 + $0x128] sm:$0xf] }
 0x230   : > { %v5313_v25 = vrot.slane %v2628_v14, 9  ;;  %v2675_v11 = vrot.slane %v7393_v3, 5  ;;  %v4723_v35 = vshrl.u32 %v4658_v36, 16  ;;  %v4726_v62 = vshll.u32 %v4658_v36, 16  ;;  %v7484_v6 = vld [vmem:[%s7573_s5 + $0x1e8] sm:$0xff]   ;;  %v6237_v14 = vld [vmem:[%s7573_s5 + $0x1f0] sm:$0xff]  }
 0x231   : > { %v4739_v3 = vrot.slane %v4737_v20, 4  ;;  %v4742_v19 = vrot.slane %v4740_v31, 5  ;;  %v2672_v60 = vsel %vm6765_vm14, %v5312_v50, %v2671_v17  ;;  %v4681_v8 = vshrl.u32 %v4652_v55, 16  ;;  %v4656_v30 = vld [vmem:[#allocation2 + $0x110] sm:$0xf] }
 0x232   : > { %5983 = vmatpush3.bf16.msra.mxu1 %v6222_v52  ;;  %v4684_v44 = vshll.u32 %v4652_v55, 16  ;;  %v4725_v45 = vrot.slane %v4723_v35, 4  ;;  %v4728_v34 = vrot.slane %v4726_v62, 5  ;;  %v4667_v16 = vshrl.u32 %v4650_v59, 16  ;;  %v4654_v28 = vld [vmem:[#allocation2 + $0x108] sm:$0xf] }
 0x233   : > { %5984 = vmatprep.subr.bf16.mxu1 %v6224_v61  ;;  %v4670_v27 = vshll.u32 %v4650_v59, 16  ;;  %v4743_v9 = vor.u32 %v4742_v19, %v4739_v3  ;;  %v4683_v24 = vrot.slane %v4681_v8, 4  ;;  %v4746_v12 = vshll.u32 %v4661_v0, 16  ;;  %v4651_v56 = vld [vmem:[#allocation2 + $0xfc] sm:$0x1] }
 0x234   : > { %5845 = vmatmul.mubr.msk.bf16.vlgmr.msra.gmra.mrb[8].mxu0 %vm387_vm0, %v5323_v10  ;;  %5977 = vmatmul.mubr.msk.bf16.gmra.mrb[4].mxu1 %vm387_vm0, %v5501_v21  ;;  %v4686_v38 = vrot.slane %v4684_v44, 5  ;;  %v4729_v15 = vor.u32 %v4728_v34, %v4725_v45  ;;  %v4669_v32 = vrot.slane %v4667_v16, 4  ;;  %v4765_v13 = vshrl.u32 %v4664_v41, 16  ;;  %v6233_v36 = vld [vmem:[#allocation2 + $0x70] ss:$8 sps:$4 sm:$0xff]  }
 0x235   : > { %5853 = vmatpush3.bf16.msra.mxu0 %v7402_v23  ;;  %5848 = vmatprep.mubr.msk.bf16.mxu0 %vm387_vm0, %v5324_v53  ;;  %v2676_v23 = vsel %vm6765_vm14, %v5313_v25, %v2675_v11  ;;  %v4672_v52 = vrot.slane %v4670_v27, 5  ;;  %v4768_v47 = vshll.u32 %v4664_v41, 16  ;;  %v4732_v37 = vshll.u32 %v4659_v63, 16  ;;  %v6235_v31 = vld [vmem:[#allocation2 + $0x80] ss:$8 sps:$4 sm:$0xff]   ;;  %v6239_v35 = vld [vmem:[%s7573_s5 + $0x1f8] sm:$0xff]  }
 0x236   : > { %5854 = vmatprep.subr.bf16.mxu0 %v6223_v7  ;;  %5985 = vmatpush3.bf16.msra.mxu1 %v6224_v61  ;;  %v5325_v40 = vcombine.low %v2672_v60, %v2676_v23  ;;  %v4744_v29 = vrot.slane %v4743_v9, 4  ;;  %v4751_v26 = vshrl.u32 %v4662_v51, 16  ;;  %v4687_v2 = vor.u32 %v4686_v38, %v4683_v24  ;;  %v6236_v59 = vld [vmem:[#allocation2 + $0x128] ss:$8 sps:$4 sm:$0xff]   ;;  %v4665_v60 = vld [vmem:[#allocation2 + $0x134] sm:$0x1] }
 0x237   : > { %5988 = vmatprep.mubr.msk.bf16.mxu1 %vm387_vm0, %v6225_v48  ;;  %5986 = vmatprep.subr.bf16.mxu1 %v6227_v54  ;;  %v4754_v61 = vshll.u32 %v4662_v51, 16  ;;  %v4709_v43 = vshrl.u32 %v4656_v30, 16  ;;  %v4712_v18 = vshll.u32 %v4656_v30, 16  ;;  %v4730_v22 = vrot.slane %v4729_v15, 4  ;;  %v4663_v8 = vld [vmem:[#allocation2 + $0x12c] sm:$0x1] }
 0x238   : > { %v4748_v33 = vrot.slane %v4746_v12, 5  ;;  %v4673_v10 = vor.u32 %v4672_v52, %v4669_v32  ;;  %v4690_v57 = vshll.u32 %v4653_v4, 16  ;;  %v4770_v21 = vrot.slane %v4768_v47, 5  ;;  %v4657_v27 = vld [vmem:[#allocation2 + $0x114] sm:$0x1] }
 0x239   : > { %5855 = vmatpush3.bf16.msra.mxu0 %v6223_v7  ;;  %v4767_v7 = vrot.slane %v4765_v13, 4  ;;  %v4695_v50 = vshrl.u32 %v4654_v28, 16  ;;  %v4698_v20 = vshll.u32 %v4654_v28, 16  ;;  %v4734_v53 = vrot.slane %v4732_v37, 5  ;;  %v6238_v38 = vld [vmem:[#allocation2 + $0x90] ss:$8 sps:$4 sm:$0xff]  }
 0x23a   : > { %5856 = vmatprep.subr.bf16.mxu0 %v6226_v46  ;;  %5987 = vmatpush3.bf16.msra.mxu1 %v6227_v54  ;;  %v4749_v54 = vsel %vm6625_vm11, %v4744_v29, %v4748_v33  ;;  %v4676_v17 = vshll.u32 %v4651_v56, 16  ;;  %v4753_v25 = vrot.slane %v4751_v26, 4  ;;  %v4688_v11 = vrot.slane %v4687_v2, 4 }
 0x23b   : > { %6012 = vmatprep.subr.bf16.mxu1 %v7474_v1  ;;  %v4756_v62 = vrot.slane %v4754_v61, 5  ;;  %v4711_v55 = vrot.slane %v4709_v43, 4  ;;  %v4714_v48 = vrot.slane %v4712_v18, 5  ;;  %v4674_v3 = vrot.slane %v4673_v10, 4 }
 0x23c   : > { %5849 = vmatmul.mubr.msk.bf16.gmra.mrb[12].mxu0 %vm387_vm0, %v5325_v40  ;;  %v4692_v19 = vrot.slane %v4690_v57, 5  ;;  %v4771_v44 = vor.u32 %v4770_v21, %v4767_v7  ;;  %v4697_v45 = vrot.slane %v4695_v50, 4  ;;  %v4700_v34 = vrot.slane %v4698_v20, 5 }
 0x23d   : > { %5857 = vmatpush3.bf16.msra.mxu0 %v6226_v46  ;;  %5860 = vmatprep.mubr.msk.bf16.mxu0 %vm387_vm0, %v6228_v49  ;;  %v4735_v46 = vsel %vm6625_vm11, %v4730_v22, %v4734_v53  ;;  %v4678_v16 = vrot.slane %v4676_v17, 5  ;;  %v4774_v0 = vshll.u32 %v4665_v60, 16  ;;  %v4715_v40 = vor.u32 %v4714_v48, %v4711_v55  ;;  %v5550_v53 = vld [vmem:[%s7574_s6] ss:$0 sm:$0xff] }
 0x23e   : > { %5858 = vmatprep.subr.bf16.mxu0 %v6229_v42  ;;  %5989 = vmatmul.mubr.msk.bf16.vlgmr.msra.gmra.mrb[0].mxu1 %vm387_vm0, %v6230_v39  ;;  %v5540_v23 = vcombine.low %v4735_v46, %v4749_v54  ;;  %v4693_v49 = vsel %vm6625_vm11, %v4688_v11, %v4692_v19  ;;  %v4655_v39 = vld [vmem:[#allocation2 + $0x10c] sm:$0x1]  ;;  %v4772_v41 = vrot.slane %v4771_v44, 4  ;;  %v4701_v63 = vor.u32 %v4700_v34, %v4697_v45 }
 0x23f   : > { %5992 = vmatprep.mubr.msk.bf16.mxu1 %vm387_vm0, %v6232_v5  ;;  %6016 = vmatpush3.bf16.msra.mxu1 %v7474_v1  ;;  %v4679_v9 = vsel %vm6625_vm11, %v4674_v3, %v4678_v16  ;;  %v4718_v24 = vshll.u32 %v4657_v27, 16  ;;  %v4776_v12 = vrot.slane %v4774_v0, 5  ;;  %v4704_v32 = vshll.u32 %v4655_v39, 16 }
 0x240   : > { %6013 = vmatprep.subr.bf16.mxu1 %v7484_v6  ;;  %v5538_v51 = vcombine.low %v4679_v9, %v4693_v49  ;;  %v4716_v52 = vrot.slane %v4715_v40, 4  ;;  %v4702_v5 = vrot.slane %v4701_v63, 4 }
 0x241   : > { %5859 = vmatpush3.bf16.msra.mxu0 %v6229_v42  ;;  %v4760_v42 = vshll.u32 %v4663_v8, 16  ;;  %v4777_v30 = vsel %vm6625_vm11, %v4772_v41, %v4776_v12  ;;  %v4720_v4 = vrot.slane %v4718_v24, 5  ;;  %v4706_v47 = vrot.slane %v4704_v32, 5 }
 0x242   : > { %5996 = vmatprep.subr.bf16.mxu0 %v7474_v1 }
 0x243   : > { %6017 = vmatpush3.bf16.msra.mxu1 %v7484_v6  ;;  %v4721_v37 = vsel %vm6625_vm11, %v4716_v52, %v4720_v4  ;;  %v4707_v26 = vsel %vm6625_vm11, %v4702_v5, %v4706_v47 }
 0x244   : > { %5861 = vmatmul.mubr.msk.bf16.vlgmr.msra.gmra.mrb[8].mxu0 %vm387_vm0, %v6233_v36  ;;  %6014 = vmatprep.subr.bf16.mxu1 %v6237_v14  ;;  %v5539_v28 = vcombine.low %v4707_v26, %v4721_v37 }
 0x245   : > { %5997 = vmatpush3.bf16.msra.mxu0 %v7474_v1  ;;  %5864 = vmatprep.mubr.msk.bf16.mxu0 %vm387_vm0, %v6235_v31  ;;  %v4757_v1 = vor.u32 %v4756_v62, %v4753_v25  ;;  %v5551_v25 = vld [vmem:[%s7575_s7] ss:$0 sm:$0xff] }
 0x246   : > { %5993 = vmatmul.mubr.msk.bf16.gmra.mrb[4].mxu1 %vm387_vm0, %v6236_v59  ;;  %5998 = vmatprep.subr.bf16.mxu0 %v7484_v6 }
 0x247   : > { %6008 = vmatprep.mubr.msk.bf16.mxu1 %vm387_vm0, %v5540_v23  ;;  %6018 = vmatpush3.bf16.msra.mxu1 %v6237_v14  ;;  %v4758_v15 = vrot.slane %v4757_v1, 4 }
 0x248   : > { %6015 = vmatprep.subr.bf16.mxu1 %v6239_v35 }
 0x249   : > { %5999 = vmatpush3.bf16.msra.mxu0 %v7484_v6  ;;  %v4762_v6 = vrot.slane %v4760_v42, 5 }
 0x24a   : > { %6000 = vmatprep.subr.bf16.mxu0 %v6237_v14 }
 0x24b   : > { %6019 = vmatpush3.bf16.msra.mxu1 %v6239_v35  ;;  %v4763_v13 = vsel %vm6625_vm11, %v4758_v15, %v4762_v6 }
 0x24c   : > { %5865 = vmatmul.mubr.msk.bf16.gmra.mrb[12].mxu0 %vm387_vm0, %v6238_v38  ;;  %v5541_v29 = vcombine.low %v4763_v13, %v4777_v30 }
 0x24d   : > { %6001 = vmatpush3.bf16.msra.mxu0 %v6237_v14  ;;  %6004 = vmatprep.mubr.msk.bf16.mxu0 %vm387_vm0, %v5538_v51 }
 0x24e   : > { %6002 = vmatprep.subr.bf16.mxu0 %v6239_v35 }
 0x251   : > { %6003 = vmatpush3.bf16.msra.mxu0 %v6239_v35 }
 0x252   : > { %6009 = vmatmul.mubr.msk.bf16.vlgmr.msra.gmra.mrb[4].mxu1 %vm387_vm0, %v5541_v29 }
 0x254   : > { %6005 = vmatmul.mubr.msk.bf16.vlgmr.msra.gmra.mrb[16].mxu0 %vm387_vm0, %v5539_v28 }
 0x311   : > { %v5990_v56 = vpop.f32.mrb[0].mxu1 }
 0x312   : > { %v4611_v2 = vpop.f32.mrb[1].mxu1 }
 0x313   : > { %v5991_v61 = vpop.f32.mrb[2].mxu1 }
 0x314   : > { %v4614_v43 = vpop.f32.mrb[3].mxu1 }
 0x317   : > { %v5862_v18 = vpop.f32.mrb[8].mxu0 }
 0x318   : > { %v6020_v22 = vadd.f32 %v5990_v56, %v5862_v18  ;;  %v2915_v33 = vpop.f32.mrb[9].mxu0 }
 0x319   : > { %v6022_v14 = vadd.f32 %v4611_v2, %v2915_v33  ;;  %v5863_v10 = vpop.f32.mrb[10].mxu0 }
 0x31a   : > { %v6024_v57 = vadd.f32 %v5991_v61, %v5863_v10  ;;  %v2918_v36 = vpop.f32.mrb[11].mxu0 }
 0x31b   : > { %v6026_v7 = vadd.f32 %v4614_v43, %v2918_v36 }
 0x31f   : > { %v5866_v21 = vpop.f32.mrb[12].mxu0 }
 0x320   : > { %v2931_v58 = vpop.f32.mrb[13].mxu0 }
 0x321   : > { %v5867_v50 = vpop.f32.mrb[14].mxu0 }
 0x322   : > { %v2934_v20 = vpop.f32.mrb[15].mxu0 }
 0x325   : > { %v6010_v31 = vpop.f32.mrb[4].mxu1 }
 0x326   : > { %v6028_v54 = vadd.f32 %v6010_v31, %v5866_v21  ;;  %v4885_v17 = vpop.f32.mrb[5].mxu1 }
 0x327   : > { %v6006_v11 = vpop.f32.mrb[16].mxu0  ;;  %v6029_v35 = vadd.f32 %v4885_v17, %v2931_v58  ;;  %v6011_v62 = vpop.f32.mrb[6].mxu1 }
 0x328   : > { %v4921_v55 = vmul.f32 %v6028_v54, %v5550_v53  ;;  %v6021_v48 = vadd.f32 %v6020_v22, %v6006_v11  ;;  %v4869_v59 = vpop.f32.mrb[17].mxu0  ;;  %v6030_v46 = vadd.f32 %v6011_v62, %v5867_v50  ;;  %v4888_v3 = vpop.f32.mrb[7].mxu1 }
 0x329   : > { %v4919_v19 = vmul.f32 %v6029_v35, %v5550_v53  ;;  %v6023_v60 = vadd.f32 %v6022_v14, %v4869_v59  ;;  %v6007_v23 = vpop.f32.mrb[18].mxu0  ;;  %v6031_v8 = vadd.f32 %v4888_v3, %v2934_v20 }
 0x32a   : > { %v7532_v44 = vadd.f32 %v5551_v25, %v4921_v55  ;;  %v4917_v45 = vmul.f32 %v6021_v48, %v5550_v53  ;;  %v4922_v34 = vmul.f32 %v6030_v46, %v5550_v53  ;;  %v6025_v16 = vadd.f32 %v6024_v57, %v6007_v23  ;;  %v4872_v27 = vpop.f32.mrb[19].mxu0 }
 0x32b   : > { %v7534_v49 = vadd.f32 %v5551_v25, %v4919_v19  ;;  %v4915_v1 = vmul.f32 %v6023_v60, %v5550_v53  ;;  %v6027_v0 = vadd.f32 %v6026_v7, %v4872_v27  ;;  %v4920_v9 = vmul.f32 %v6031_v8, %v5550_v53 }
 0x32c   : > { %v4952_v40 = vmul.f32 %v7532_v44, %v7532_v44  ;;  %v7538_v42 = vadd.f32 %v5551_v25, %v4917_v45  ;;  %v4937_v39 = vadd.f32 %v5551_v25, %v4922_v34  ;;  %v4918_v24 = vmul.f32 %v6025_v16, %v5550_v53 }
 0x32d   : > { %v4950_v41 = vmul.f32 %v7534_v49, %v7534_v49  ;;  %v7542_v63 = vadd.f32 %v5551_v25, %v4915_v1  ;;  %v4935_v5 = vadd.f32 %v5551_v25, %v4920_v9  ;;  %v4916_v37 = vmul.f32 %v6027_v0, %v5550_v53 }
 0x32e   : > { %v4960_v38 = vmul.f32 %v4952_v40, %v7532_v44  ;;  %v4948_v51 = vmul.f32 %v7538_v42, %v7538_v42  ;;  %v4953_v32 = vmul.f32 %v4937_v39, %v4937_v39  ;;  %v4933_v30 = vadd.f32 %v5551_v25, %v4918_v24 }
 0x32f   : > { %v4958_v15 = vmul.f32 %v4950_v41, %v7534_v49  ;;  %v4946_v12 = vmul.f32 %v7542_v63, %v7542_v63  ;;  %v4951_v33 = vmul.f32 %v4935_v5, %v4935_v5  ;;  %v4931_v36 = vadd.f32 %v5551_v25, %v4916_v37 }
 0x330   : > { %v4968_v52 = vmul.f32 0.044715, %v4960_v38  ;;  %v4956_v6 = vmul.f32 %v4948_v51, %v7538_v42  ;;  %v4961_v47 = vmul.f32 %v4953_v32, %v4937_v39  ;;  %v4949_v28 = vmul.f32 %v4933_v30, %v4933_v30 }
 0x331   : > { %v4966_v4 = vmul.f32 0.044715, %v4958_v15  ;;  %v4954_v13 = vmul.f32 %v4946_v12, %v7542_v63  ;;  %v4959_v58 = vmul.f32 %v4951_v33, %v4935_v5  ;;  %v4947_v53 = vmul.f32 %v4931_v36, %v4931_v36 }
 0x332   : > { %v4976_v29 = vadd.f32 %v4968_v52, %v7532_v44  ;;  %v4964_v26 = vmul.f32 0.044715, %v4956_v6  ;;  %v4969_v61 = vmul.f32 0.044715, %v4961_v47  ;;  %v4957_v22 = vmul.f32 %v4949_v28, %v4933_v30 }
 0x333   : > { %v4974_v56 = vadd.f32 %v4966_v4, %v7534_v49  ;;  %v4962_v2 = vmul.f32 0.044715, %v4954_v13  ;;  %v4967_v31 = vmul.f32 0.044715, %v4959_v58  ;;  %v4955_v35 = vmul.f32 %v4947_v53, %v4931_v36 }
 0x334   : > { %v4984_v43 = vmul.f32 0.7978846, %v4976_v29  ;;  %v4972_v18 = vadd.f32 %v4964_v26, %v7538_v42  ;;  %v4977_v57 = vadd.f32 %v4969_v61, %v4937_v39  ;;  %v4965_v21 = vmul.f32 0.044715, %v4957_v22 }
 0x335   : > { %v4982_v14 = vmul.f32 0.7978846, %v4974_v56  ;;  %v4970_v10 = vadd.f32 %v4962_v2, %v7542_v63  ;;  %v4975_v11 = vadd.f32 %v4967_v31, %v4935_v5  ;;  %v4963_v55 = vmul.f32 0.044715, %v4955_v35 }
 0x336   : > { %6256 = vtanh.f32 %v4984_v43  ;;  %v4980_v7 = vmul.f32 0.7978846, %v4972_v18  ;;  %v4985_v50 = vmul.f32 0.7978846, %v4977_v57  ;;  %v4973_v20 = vadd.f32 %v4965_v21, %v4933_v30 }
 0x337   : > { %v4978_v54 = vmul.f32 0.7978846, %v4970_v10  ;;  %v4983_v62 = vmul.f32 0.7978846, %v4975_v11  ;;  %v4971_v25 = vadd.f32 %v4963_v55, %v4931_v36  ;;  %v4944_v23 = vmul.f32 0.5, %v7532_v44 }
 0x338   : > { %6258 = vtanh.f32 %v4980_v7  ;;  %v4981_v17 = vmul.f32 0.7978846, %v4973_v20  ;;  %v4945_v45 = vmul.f32 0.5, %v4937_v39  ;;  %v4940_v27 = vmul.f32 0.5, %v7538_v42 }
 0x339   : > { %6260 = vtanh.f32 %v4982_v14  ;;  %v4979_v59 = vmul.f32 0.7978846, %v4971_v25  ;;  %v4941_v1 = vmul.f32 0.5, %v4933_v30  ;;  %v4942_v44 = vmul.f32 0.5, %v7534_v49 }
 0x33a   : > { %6262 = vtanh.f32 %v4985_v50  ;;  %v4943_v51 = vmul.f32 0.5, %v4935_v5  ;;  %v4938_v13 = vmul.f32 0.5, %v7542_v63  ;;  %v4939_v37 = vmul.f32 0.5, %v4931_v36 }
 0x33b   : > { %6264 = vtanh.f32 %v4981_v17 }
 0x33c   : > { %6266 = vtanh.f32 %v4978_v54 }
 0x33d   : > { %6268 = vtanh.f32 %v4983_v62 }
 0x33e   : > { %6270 = vtanh.f32 %v4979_v59 }
 0x340   : > { %v6257_v48 = vpop.eup %6256 }
 0x341   : > { %v5000_v19 = vadd.f32 1.0, %v6257_v48 }
 0x342   : > { %v6259_v46 = vpop.eup %6258 }
 0x343   : > { %v6261_v3 = vpop.eup %6260  ;;  %v4996_v8 = vadd.f32 1.0, %v6259_v46  ;;  %v5008_v40 = vmul.f32 %v5000_v19, %v4944_v23 }
 0x344   : > { %v6263_v60 = vpop.eup %6262  ;;  %v4998_v9 = vadd.f32 1.0, %v6261_v3 }
 0x345   : > { %v5001_v34 = vadd.f32 1.0, %v6263_v60  ;;  %v6265_v16 = vpop.eup %6264  ;;  %v5004_v39 = vmul.f32 %v4996_v8, %v4940_v27 }
 0x346   : > { %v6267_v0 = vpop.eup %6266  ;;  %v4997_v24 = vadd.f32 1.0, %v6265_v16  ;;  %v5006_v42 = vmul.f32 %v4998_v9, %v4942_v44 }
 0x347   : > { %v5009_v41 = vmul.f32 %v5001_v34, %v4945_v45  ;;  %v6269_v38 = vpop.eup %6268  ;;  %v4994_v52 = vadd.f32 1.0, %v6267_v0 }
 0x348   : > { %v5005_v12 = vmul.f32 %v4997_v24, %v4941_v1  ;;  %v4999_v32 = vadd.f32 1.0, %v6269_v38  ;;  %v6271_v4 = vpop.eup %6270 }
 0x349   : > { %v5599_v15 = vpack.c.bf16 %v5009_v41, %v5008_v40  ;;  %v4995_v29 = vadd.f32 1.0, %v6271_v4  ;;  %v5002_v26 = vmul.f32 %v4994_v52, %v4938_v13 }
 0x34a   : > { %v5589_v6 = vpack.c.bf16 %v5005_v12, %v5004_v39  ;;  %v5007_v30 = vmul.f32 %v4999_v32, %v4943_v51 }
 0x34b   : > { %5603 = vst [vmem:[%s325_s17 + $0x18] sm:$0xff] %v5599_v15   ;;  %v5003_v49 = vmul.f32 %v4995_v29, %v4939_v37 }
 0x34c   : > { %5601 = vst [vmem:[%s325_s17 + $0x8] sm:$0xff] %v5589_v6   ;;  %v5594_v47 = vpack.c.bf16 %v5007_v30, %v5006_v42 }
 0x34d   : > { %v5584_v5 = vpack.c.bf16 %v5003_v49, %v5002_v26 }
 0x34e   : > { %5602 = vst [vmem:[%s325_s17 + $0x10] sm:$0xff] %v5594_v47  }
 0x34f   : > { %5585 = vst [vmem:[%s325_s17] sm:$0xff] %v5584_v5  }
 0x350 PF: > { %s18_s27 = sadd.s32 1, %s6280_s27  }
 0x351   : > { %p15_p4 = scmp.ge.s32.totalorder %s18_s27, 4  }
 0x353   :  { %17 = sbr.rel (!%p15_p4) target bundleno = 1 (0x1), region = 114 }

</bundles_post_ra>
